<compile_context>
chip_gen: v5e
topology: v5e:2x2
jax: 0.10.0
libtpu: 0.0.40
codegen_flags: <defaults>
</compile_context>

<pallas_src>
import numpy as np
import jax
import jax.numpy as jnp
from jax.experimental import pallas as pl
from jax.experimental.pallas import tpu as pltpu


def _round_up(x, m):
    return ((x + m - 1) // m) * m


# ----------------------------- Pallas kernel ------------------------------ #
def _make_head_kernel(with_vmult: bool, n_win_blocks: int, compute_dtype):
    """Fused per-task MLP -> optional *V_st -> windowed segment-sum scatter.

    Grid: (num_tasks [parallel], num_row_tiles [arbitrary/accumulation]).
    Refs (leading squeezed dims omitted):
      starts_ref : [num_tiles]        int32 SMEM  window block-start per row tile
      x_ref      : [D_pad, tile_n]    bf16        x^T row tile (rows on lanes)
      idx_ref    : [tile_n, 1]        int32       scatter destination (-1 = pad)
      v_ref      : [p_pad, tile_n]    f32         V_st^T (forces head only)
      wh_ref     : [L, D_pad, D_pad]  bf16        hidden weights^T (VMEM-resident)
      bh_ref     : [L, D_pad, 1]      f32         hidden biases^T
      wo_ref     : [tgt, D_pad]       bf16        output weight^T
      bo_ref     : [tgt, 1]           f32         output bias^T
      out_ref    : [out_blks, p_pad, 128] f32     resident accumulator
    """

    def kernel(*refs):
        if with_vmult:
            (starts_ref, x_ref, idx_ref, v_ref,
             wh_ref, bh_ref, wo_ref, bo_ref, out_ref) = refs
        else:
            (starts_ref, x_ref, idx_ref,
             wh_ref, bh_ref, wo_ref, bo_ref, out_ref) = refs
            v_ref = None

        # Zero the resident per-task accumulator on the first row tile.
        @pl.when(pl.program_id(1) == 0)
        def _init():
            out_ref[...] = jnp.zeros(out_ref.shape, out_ref.dtype)

        cdt = compute_dtype

        # ---- MLP, transposed orientation: bf16 on the MXU, f32 accumulate,
        #      f32 bias/SiLU on VPU/EUP.
        h = x_ref[...]                                        # [D_pad, tile_n] bf16
        for l in range(wh_ref.shape[0]):                      # static unroll, L small
            a = jnp.dot(wh_ref[l], h.astype(cdt),
                        preferred_element_type=jnp.float32) + bh_ref[l]
            h = jax.nn.silu(a)                                # f32
        y = jnp.dot(wo_ref[...], h.astype(cdt),
                    preferred_element_type=jnp.float32) + bo_ref[...]   # [tgt, tile_n]

        if with_vmult:
            # F_st (tgt==1 broadcast over sublanes) * V_st^T -> [p_pad, tile_n]
            y = y * v_ref[...]

        # ---- windowed segment-sum scatter (all f32, cheap relative to the MLP).
        start_blk = starts_ref[pl.program_id(1)]              # int32 scalar (SMEM)
        rel = idx_ref[...] - start_blk * 128                  # [tile_n, 1]; pads -> <0
        w = n_win_blocks * 128
        lane = jax.lax.broadcasted_iota(jnp.int32, (rel.shape[0], w), 1)
        onehot = (lane == rel).astype(jnp.float32)            # [tile_n, W]
        part = jnp.dot(y, onehot,
                       preferred_element_type=jnp.float32)    # [p_pad, W]
        for j in range(n_win_blocks):                         # W//128 small & static
            out_ref[start_blk + j] = (out_ref[start_blk + j]
                                      + part[:, j * 128:(j + 1) * 128])

    return kernel


# ------------------------------ host wrapper ------------------------------- #
def fused_output_head(x, idx, wh, bh, wo, bo, v=None, *, out_rows,
                      tile_n=256, compute_dtype=jnp.bfloat16,
                      assume_sorted=False,
                      vmem_limit_bytes=48 * 1024 * 1024):
    """Run ALL tasks of one head family (energy or forces) in one pallas_call.

    x   : [N, D] f32      atom/edge embeddings
    idx : [N]    int      scatter destination (batch or idx_t)
    wh  : [T, L, D, D]    hidden weights
    bh  : [T, L, 1, D]    hidden biases
    wo  : [T, D, Tgt]     output weight
    bo  : [T, 1, Tgt]     output bias
    v   : [N, P] or None  V_st multiplier (forces head only)
    Returns [T, P_out, out_rows] f32, P_out = P if v is given else Tgt.
    """
    n, d = x.shape
    num_tasks, n_hidden = int(wh.shape[0]), int(wh.shape[1])
    n_targets = int(wo.shape[-1])
    with_vmult = v is not None
    p_out = int(v.shape[-1]) if with_vmult else n_targets
    if with_vmult and n_targets not in (1, p_out):
        raise ValueError("F_st * V_st broadcast requires num_targets == 1 (or == V_st dim)")
    p_pad = _round_up(max(p_out, 1), 8)       # sublane-aligned target rows

    idx = idx.astype(jnp.int32)
    if not assume_sorted:
        # Sort rows by destination so every row tile touches a narrow, contiguous
        # output window (segment-sum is permutation invariant).  `batch` is
        # already sorted; `idx_t` generally is not.
        order = jnp.argsort(idx)
        idx = idx[order]
        x = x[order]
        if with_vmult:
            v = v[order]

    d_pad = _round_up(d, 128)                 # MXU-shaped contraction dim
    n_pad = _round_up(max(n, 1), tile_n)
    num_tiles = n_pad // tile_n
    out_blks = _round_up(max(out_rows, 1), 128) // 128

    # ---- per-row-tile output windows (host side; needs concrete indices).
    # TODO(synk): if this wrapper must run under jit, the window table / width
    # have to be precomputed outside (the window width must be static).
    idx_np = np.asarray(jax.device_get(idx))
    mins, maxs = [], []
    for i in range(num_tiles):
        seg = idx_np[i * tile_n: min((i + 1) * tile_n, n)]
        mins.append(int(seg.min()))
        maxs.append(int(seg.max()))
    need = max((mx - (mn // 128) * 128) // 128 + 1 for mn, mx in zip(mins, maxs))
    n_win_blocks = min(max(need, 1), out_blks)
    starts = jnp.asarray(
        np.array([min(mn // 128, out_blks - n_win_blocks) for mn in mins],
                 dtype=np.int32))

    # ---- layout prep: transpose + zero-pad + cast ONCE on the host.
    pad_n, pad_d = n_pad - n, d_pad - d
    xT = jnp.pad(x, ((0, pad_n), (0, pad_d))).T.astype(compute_dtype)          # [d_pad, n_pad]
    idx_col = jnp.pad(idx, (0, pad_n), constant_values=-1).reshape(n_pad, 1)   # pads never hit
    whT = jnp.pad(jnp.swapaxes(wh, -1, -2),
                  ((0, 0), (0, 0), (0, pad_d), (0, pad_d))).astype(compute_dtype)
    bhT = jnp.pad(jnp.swapaxes(bh, -1, -2),
                  ((0, 0), (0, 0), (0, pad_d), (0, 0))).astype(jnp.float32)
    woT = jnp.swapaxes(wo, -1, -2)                                             # [T, Tgt, d]
    boT = jnp.swapaxes(bo, -1, -2)                                             # [T, Tgt, 1]
    tgt_rows = n_targets
    if n_targets == p_out:
        # Pad target rows to a sublane multiple; extra rows are exact zeros.
        woT = jnp.pad(woT, ((0, 0), (0, p_pad - n_targets), (0, 0)))
        boT = jnp.pad(boT, ((0, 0), (0, p_pad - n_targets), (0, 0)))
        tgt_rows = p_pad
    woT = jnp.pad(woT, ((0, 0), (0, 0), (0, pad_d))).astype(compute_dtype)
    boT = boT.astype(jnp.float32)
    if with_vmult:
        # V_st kept in f32 (tiny vs x) so per-edge contributions stay full precision.
        vT = jnp.pad(v, ((0, pad_n), (0, p_pad - p_out))).T.astype(jnp.float32)  # [p_pad, n_pad]

    args = [xT, idx_col]
    in_specs = [
        pl.BlockSpec((d_pad, tile_n), lambda t, i, s: (0, i)),    # x^T row tile
        pl.BlockSpec((tile_n, 1), lambda t, i, s: (i, 0)),        # idx column
    ]
    if with_vmult:
        args.append(vT)
        in_specs.append(pl.BlockSpec((p_pad, tile_n), lambda t, i, s: (0, i)))
    # Per-task weights: block index depends only on the task axis, so each
    # task's weights stay resident in VMEM across all row tiles.
    # (pl.Buffered(1) on these specs would additionally halve their VMEM on
    #  v7x; left at the default double-buffering for portability.)
    args += [whT, bhT, woT, boT]
    in_specs += [
        pl.BlockSpec((None, n_hidden, d_pad, d_pad), lambda t, i, s: (t, 0, 0, 0)),
        pl.BlockSpec((None, n_hidden, d_pad, 1), lambda t, i, s: (t, 0, 0, 0)),
        pl.BlockSpec((None, tgt_rows, d_pad), lambda t, i, s: (t, 0, 0)),
        pl.BlockSpec((None, tgt_rows, 1), lambda t, i, s: (t, 0, 0)),
    ]

    out_specs = pl.BlockSpec((None, out_blks, p_pad, 128), lambda t, i, s: (t, 0, 0, 0))
    out_shape = jax.ShapeDtypeStruct((num_tasks, out_blks, p_pad, 128), jnp.float32)

    grid_spec = pltpu.PrefetchScalarGridSpec(
        num_scalar_prefetch=1,
        grid=(num_tasks, num_tiles),
        in_specs=in_specs,
        out_specs=out_specs,
    )

    flops = 2 * num_tasks * n_pad * (n_hidden * d_pad * d_pad
                                     + tgt_rows * d_pad
                                     + p_pad * n_win_blocks * 128)
    transcendentals = num_tasks * n_pad * n_hidden * d_pad
    bytes_accessed = int(
        num_tasks * (xT.nbytes + idx_col.nbytes + (vT.nbytes if with_vmult else 0))
        + whT.nbytes + bhT.nbytes + woT.nbytes + boT.nbytes
        + num_tasks * out_blks * p_pad * 128 * 4)

    out = pl.pallas_call(
        _make_head_kernel(with_vmult, n_win_blocks, compute_dtype),
        grid_spec=grid_spec,
        out_shape=out_shape,
        compiler_params=pltpu.CompilerParams(
            # tasks shard across TensorCores; row tiles are the accumulation axis
            # of the resident output block.
            dimension_semantics=("parallel", "arbitrary"),
            # <= 48 MiB keeps headroom on v7x's 64 MiB VMEM; v5e/v6e have 128 MiB.
            vmem_limit_bytes=vmem_limit_bytes,
        ),
        cost_estimate=pl.CostEstimate(flops=flops,
                                      transcendentals=transcendentals,
                                      bytes_accessed=bytes_accessed),
    )(starts, *args)

    # [T, out_blks, p_pad, 128] -> [T, p_out, out_rows] (cheap host-side reshape).
    out = jnp.transpose(out, (0, 2, 1, 3)).reshape(num_tasks, p_pad, out_blks * 128)
    return out[:, :p_out, :out_rows]


# ------------------------------ parameter init ----------------------------- #
def init_mlp_params(key, in_dim, num_mlps, num_targets):
    """nt.nn.MLP with dims = [in_dim]*num_mlps + [num_targets]."""
    assert num_mlps >= 2
    n_hidden = num_mlps - 1
    keys = jax.random.split(key, 2 * num_mlps)
    scale = 1.0 / np.sqrt(in_dim)
    wh = jnp.stack([scale * jax.random.normal(keys[2 * i], (in_dim, in_dim), jnp.float32)
                    for i in range(n_hidden)])                       # [L, D, D]
    bh = jnp.stack([0.01 * jax.random.normal(keys[2 * i + 1], (1, in_dim), jnp.float32)
                    for i in range(n_hidden)])                       # [L, 1, D]
    wo = scale * jax.random.normal(keys[-2], (in_dim, num_targets), jnp.float32)
    bo = 0.01 * jax.random.normal(keys[-1], (1, num_targets), jnp.float32)
    return wh, bh, wo, bo


# ------------------------------ reference (JAX) ----------------------------- #
def ref_head_family(x, idx, wh, bh, wo, bo, v, out_rows, compute_dtype):
    """Pure-JAX reference mirroring the kernel's bf16-at-dot / f32-everything-else policy."""
    outs = []
    for t in range(wh.shape[0]):
        h = x
        for l in range(wh.shape[1]):
            h = jnp.dot(h.astype(compute_dtype), wh[t, l].astype(compute_dtype),
                        preferred_element_type=jnp.float32) + bh[t, l]
            h = jax.nn.silu(h)
        y = jnp.dot(h.astype(compute_dtype), wo[t].astype(compute_dtype),
                    preferred_element_type=jnp.float32) + bo[t]
        if v is not None:
            y = y * v
        out = jnp.zeros((out_rows, y.shape[-1]), jnp.float32).at[idx].add(y)
        outs.append(out)
    return jnp.stack(outs, 0)                 # [T, out_rows, P_out]


# ----------------------------------- main ----------------------------------- #
if __name__ == "__main__":
    # Small shapes consistent with the module's forward.
    n_atoms, n_edges, n_molecules = 16, 64, 2
    emb_size_atom = emb_size_edge = 32
    num_mlps, num_targets, num_tasks = 5, 1, 2
    tile_n = 256
    compute_dtype = jnp.bfloat16
    node_energy_reduction = "sum"             # TaskConfig default

    key = jax.random.PRNGKey(0)
    k_e, k_f, k_v, k_idx, k_params = jax.random.split(key, 5)

    energy = jax.random.normal(k_e, (n_atoms, emb_size_atom), jnp.float32)
    forces = jax.random.normal(k_f, (n_edges, emb_size_edge), jnp.float32)
    V_st = jax.random.normal(k_v, (n_edges, 3), jnp.float32)
    idx_t = jax.random.randint(k_idx, (n_edges,), 0, n_atoms, dtype=jnp.int32)
    batch = jnp.concatenate([jnp.zeros(n_atoms // 2, jnp.int32),
                             jnp.ones(n_atoms - n_atoms // 2, jnp.int32)])

    # Per-task parameters, stacked along a leading task axis.
    pkeys = jax.random.split(k_params, 2 * num_tasks)
    e_params = [init_mlp_params(pkeys[2 * t], emb_size_atom, num_mlps, num_targets)
                for t in range(num_tasks)]
    f_params = [init_mlp_params(pkeys[2 * t + 1], emb_size_edge, num_mlps, num_targets)
                for t in range(num_tasks)]
    e_wh, e_bh, e_wo, e_bo = (jnp.stack(z) for z in zip(*e_params))
    f_wh, f_bh, f_wo, f_bo = (jnp.stack(z) for z in zip(*f_params))

    # One fused pallas_call per head family (all tasks inside).
    E_all = fused_output_head(energy, batch, e_wh, e_bh, e_wo, e_bo, v=None,
                              out_rows=n_molecules, tile_n=tile_n,
                              compute_dtype=compute_dtype,
                              assume_sorted=True)                    # [T, Tgt, M]
    F_all = fused_output_head(forces, idx_t, f_wh, f_bh, f_wo, f_bo, v=V_st,
                              out_rows=n_atoms, tile_n=tile_n,
                              compute_dtype=compute_dtype,
                              assume_sorted=False)                   # [T, 3, n_atoms]

    if node_energy_reduction == "mean":
        # TODO(synk): 'mean' node-energy reduction is applied outside the kernel
        # (kernel computes the sum; divide by per-molecule atom counts here).
        counts = jnp.zeros((n_molecules,), jnp.float32).at[batch].add(1.0)
        E_all = E_all / jnp.maximum(counts, 1.0)[None, None, :]

    # pack(energy_list, 'bsz *')        -> [n_molecules, num_tasks*num_targets]
    E = jnp.transpose(E_all, (2, 0, 1)).reshape(n_molecules, num_tasks * num_targets)
    # pack(forces_list, 'n_atoms p *')  -> [n_atoms, 3, num_tasks]
    F = jnp.transpose(F_all, (2, 1, 0))

    E = jax.block_until_ready(E)
    F = jax.block_until_ready(F)

    # Reference with the same dtype policy (exact f32 scatter-add).
    E_all_ref = ref_head_family(energy, batch, e_wh, e_bh, e_wo, e_bo, None,
                                n_molecules, compute_dtype)          # [T, M, Tgt]
    F_all_ref = ref_head_family(forces, idx_t, f_wh, f_bh, f_wo, f_bo, V_st,
                                n_atoms, compute_dtype)              # [T, n_atoms, 3]
    if node_energy_reduction == "mean":
        counts = jnp.zeros((n_molecules,), jnp.float32).at[batch].add(1.0)
        E_all_ref = E_all_ref / jnp.maximum(counts, 1.0)[None, :, None]
    E_ref = jnp.transpose(E_all_ref, (1, 0, 2)).reshape(n_molecules,
                                                        num_tasks * num_targets)
    F_ref = jnp.transpose(F_all_ref, (1, 2, 0))

    assert E.shape == (n_molecules, num_tasks * num_targets)
    assert F.shape == (n_atoms, 3, num_tasks)
    np.testing.assert_allclose(np.asarray(E), np.asarray(E_ref), rtol=1e-2, atol=1e-2)
    np.testing.assert_allclose(np.asarray(F), np.asarray(F_ref), rtol=1e-2, atol=1e-2)

    print("KERNEL_OK")
</pallas_src>

<mosaic_0001>
module attributes {stable_mosaic.version = 11 : i64} {
  func.func @kernel(%arg0: i32, %arg1: i32, %arg2: memref<1xi32, #tpu.memory_space<smem>>, %arg3: memref<128x256xbf16, #tpu.memory_space<vmem>>, %arg4: memref<256x1xi32, #tpu.memory_space<vmem>>, %arg5: memref<1x4x128x128xbf16, #tpu.memory_space<vmem>>, %arg6: memref<1x4x128x1xf32, #tpu.memory_space<vmem>>, %arg7: memref<1x8x128xbf16, #tpu.memory_space<vmem>>, %arg8: memref<1x8x1xf32, #tpu.memory_space<vmem>>, %arg9: memref<1x1x8x128xf32, #tpu.memory_space<vmem>>) attributes {dimension_semantics = [#tpu.dimension_semantics<parallel>, #tpu.dimension_semantics<arbitrary>], iteration_bounds = array<i64: 2, 1>, scalar_prefetch = 1 : i64, scratch_operands = 0 : i64, tpu.core_type = #tpu.core_type<tc>, window_params = [{transform_indices = @transform_0, window_bounds = array<i64: 128, 256>}, {transform_indices = @transform_1, window_bounds = array<i64: 256, 1>}, {transform_indices = @transform_2, window_bounds = array<i64: 1, 4, 128, 128>}, {transform_indices = @transform_3, window_bounds = array<i64: 1, 4, 128, 1>}, {transform_indices = @transform_4, window_bounds = array<i64: 1, 8, 128>}, {transform_indices = @transform_5, window_bounds = array<i64: 1, 8, 1>}, {transform_indices = @transform_6, window_bounds = array<i64: 1, 1, 8, 128>}]} {
    %c0_i32 = arith.constant 0 : i32
    %0 = arith.cmpi eq, %arg1, %c0_i32 : i32
    %1 = arith.extui %0 : i1 to i32
    %c0_i32_0 = arith.constant 0 : i32
    %2 = arith.cmpi ne, %1, %c0_i32_0 : i32
    scf.if %2 {
      %cst_56 = arith.constant 0.000000e+00 : f32
      %89 = vector.broadcast %cst_56 : f32 to vector<1x8x128xf32>
      %c0_57 = arith.constant 0 : index
      %c0_58 = arith.constant 0 : index
      %c0_59 = arith.constant 0 : index
      %c0_60 = arith.constant 0 : index
      %90 = vector.load %arg9[%c0_57, %c0_58, %c0_59, %c0_60] : memref<1x1x8x128xf32, #tpu.memory_space<vmem>>, vector<1x1x8x128xf32>
      %91 = vector.shape_cast %90 : vector<1x1x8x128xf32> to vector<1x8x128xf32>
      %92 = vector.shape_cast %89 : vector<1x8x128xf32> to vector<1x1x8x128xf32>
      tpu.vector_store %arg9[%c0_57, %c0_58, %c0_59, %c0_60], %92 {strides = array<i32>} : memref<1x1x8x128xf32, #tpu.memory_space<vmem>>, vector<1x1x8x128xf32>,
    } else {
    }
    %c0 = arith.constant 0 : index
    %c0_1 = arith.constant 0 : index
    %3 = vector.load %arg3[%c0, %c0_1] : memref<128x256xbf16, #tpu.memory_space<vmem>>, vector<128x256xbf16>
    %c0_2 = arith.constant 0 : index
    %c0_3 = arith.constant 0 : index
    %c0_4 = arith.constant 0 : index
    %c0_5 = arith.constant 0 : index
    %4 = vector.load %arg5[%c0_2, %c0_3, %c0_4, %c0_5] : memref<1x4x128x128xbf16, #tpu.memory_space<vmem>>, vector<1x1x128x128xbf16>
    %5 = vector.shape_cast %4 : vector<1x1x128x128xbf16> to vector<128x128xbf16>
    %cst = arith.constant dense<0.000000e+00> : vector<128x256xf32>
    %6 = tpu.matmul %5, %3, %cst {dimension_numbers = #tpu.dot_dimension_numbers<[1], [0], [0], [1], [0, 0, 1, 1], [], []>} : vector<128x128xbf16>, vector<128x256xbf16>, vector<128x256xf32> -> vector<128x256xf32>
    %c0_6 = arith.constant 0 : index
    %c0_7 = arith.constant 0 : index
    %c0_8 = arith.constant 0 : index
    %c0_9 = arith.constant 0 : index
    %7 = vector.load %arg6[%c0_6, %c0_7, %c0_8, %c0_9] : memref<1x4x128x1xf32, #tpu.memory_space<vmem>>, vector<1x1x128x1xf32>
    %8 = vector.shape_cast %7 : vector<1x1x128x1xf32> to vector<128x1xf32>
    %9 = vector.broadcast %8 : vector<128x1xf32> to vector<128x256xf32>
    %10 = arith.addf %6, %9 : vector<128x256xf32>
    %11 = arith.negf %10 : vector<128x256xf32>
    %12 = math.exp %11 : vector<128x256xf32>
    %cst_10 = arith.constant 1.000000e+00 : f32
    %13 = vector.broadcast %cst_10 : f32 to vector<128x256xf32>
    %14 = arith.addf %13, %12 : vector<128x256xf32>
    %15 = arith.divf %13, %14 : vector<128x256xf32>
    %16 = arith.mulf %10, %15 : vector<128x256xf32>
    %c0_11 = arith.constant 0 : index
    %c1 = arith.constant 1 : index
    %c0_12 = arith.constant 0 : index
    %c0_13 = arith.constant 0 : index
    %17 = vector.load %arg5[%c0_11, %c1, %c0_12, %c0_13] : memref<1x4x128x128xbf16, #tpu.memory_space<vmem>>, vector<1x1x128x128xbf16>
    %18 = vector.shape_cast %17 : vector<1x1x128x128xbf16> to vector<128x128xbf16>
    %19 = arith.truncf %16 : vector<128x256xf32> to vector<128x256xbf16>
    %cst_14 = arith.constant dense<0.000000e+00> : vector<128x256xf32>
    %20 = tpu.matmul %18, %19, %cst_14 {dimension_numbers = #tpu.dot_dimension_numbers<[1], [0], [0], [1], [0, 0, 1, 1], [], []>} : vector<128x128xbf16>, vector<128x256xbf16>, vector<128x256xf32> -> vector<128x256xf32>
    %c0_15 = arith.constant 0 : index
    %c1_16 = arith.constant 1 : index
    %c0_17 = arith.constant 0 : index
    %c0_18 = arith.constant 0 : index
    %21 = vector.load %arg6[%c0_15, %c1_16, %c0_17, %c0_18] : memref<1x4x128x1xf32, #tpu.memory_space<vmem>>, vector<1x1x128x1xf32>
    %22 = vector.shape_cast %21 : vector<1x1x128x1xf32> to vector<128x1xf32>
    %23 = vector.broadcast %22 : vector<128x1xf32> to vector<128x256xf32>
    %24 = arith.addf %20, %23 : vector<128x256xf32>
    %25 = arith.negf %24 : vector<128x256xf32>
    %26 = math.exp %25 : vector<128x256xf32>
    %cst_19 = arith.constant 1.000000e+00 : f32
    %27 = vector.broadcast %cst_19 : f32 to vector<128x256xf32>
    %28 = arith.addf %27, %26 : vector<128x256xf32>
    %29 = arith.divf %27, %28 : vector<128x256xf32>
    %30 = arith.mulf %24, %29 : vector<128x256xf32>
    %c0_20 = arith.constant 0 : index
    %c2 = arith.constant 2 : index
    %c0_21 = arith.constant 0 : index
    %c0_22 = arith.constant 0 : index
    %31 = vector.load %arg5[%c0_20, %c2, %c0_21, %c0_22] : memref<1x4x128x128xbf16, #tpu.memory_space<vmem>>, vector<1x1x128x128xbf16>
    %32 = vector.shape_cast %31 : vector<1x1x128x128xbf16> to vector<128x128xbf16>
    %33 = arith.truncf %30 : vector<128x256xf32> to vector<128x256xbf16>
    %cst_23 = arith.constant dense<0.000000e+00> : vector<128x256xf32>
    %34 = tpu.matmul %32, %33, %cst_23 {dimension_numbers = #tpu.dot_dimension_numbers<[1], [0], [0], [1], [0, 0, 1, 1], [], []>} : vector<128x128xbf16>, vector<128x256xbf16>, vector<128x256xf32> -> vector<128x256xf32>
    %c0_24 = arith.constant 0 : index
    %c2_25 = arith.constant 2 : index
    %c0_26 = arith.constant 0 : index
    %c0_27 = arith.constant 0 : index
    %35 = vector.load %arg6[%c0_24, %c2_25, %c0_26, %c0_27] : memref<1x4x128x1xf32, #tpu.memory_space<vmem>>, vector<1x1x128x1xf32>
    %36 = vector.shape_cast %35 : vector<1x1x128x1xf32> to vector<128x1xf32>
    %37 = vector.broadcast %36 : vector<128x1xf32> to vector<128x256xf32>
    %38 = arith.addf %34, %37 : vector<128x256xf32>
    %39 = arith.negf %38 : vector<128x256xf32>
    %40 = math.exp %39 : vector<128x256xf32>
    %cst_28 = arith.constant 1.000000e+00 : f32
    %41 = vector.broadcast %cst_28 : f32 to vector<128x256xf32>
    %42 = arith.addf %41, %40 : vector<128x256xf32>
    %43 = arith.divf %41, %42 : vector<128x256xf32>
    %44 = arith.mulf %38, %43 : vector<128x256xf32>
    %c0_29 = arith.constant 0 : index
    %c3 = arith.constant 3 : index
    %c0_30 = arith.constant 0 : index
    %c0_31 = arith.constant 0 : index
    %45 = vector.load %arg5[%c0_29, %c3, %c0_30, %c0_31] : memref<1x4x128x128xbf16, #tpu.memory_space<vmem>>, vector<1x1x128x128xbf16>
    %46 = vector.shape_cast %45 : vector<1x1x128x128xbf16> to vector<128x128xbf16>
    %47 = arith.truncf %44 : vector<128x256xf32> to vector<128x256xbf16>
    %cst_32 = arith.constant dense<0.000000e+00> : vector<128x256xf32>
    %48 = tpu.matmul %46, %47, %cst_32 {dimension_numbers = #tpu.dot_dimension_numbers<[1], [0], [0], [1], [0, 0, 1, 1], [], []>} : vector<128x128xbf16>, vector<128x256xbf16>, vector<128x256xf32> -> vector<128x256xf32>
    %c0_33 = arith.constant 0 : index
    %c3_34 = arith.constant 3 : index
    %c0_35 = arith.constant 0 : index
    %c0_36 = arith.constant 0 : index
    %49 = vector.load %arg6[%c0_33, %c3_34, %c0_35, %c0_36] : memref<1x4x128x1xf32, #tpu.memory_space<vmem>>, vector<1x1x128x1xf32>
    %50 = vector.shape_cast %49 : vector<1x1x128x1xf32> to vector<128x1xf32>
    %51 = vector.broadcast %50 : vector<128x1xf32> to vector<128x256xf32>
    %52 = arith.addf %48, %51 : vector<128x256xf32>
    %53 = arith.negf %52 : vector<128x256xf32>
    %54 = math.exp %53 : vector<128x256xf32>
    %cst_37 = arith.constant 1.000000e+00 : f32
    %55 = vector.broadcast %cst_37 : f32 to vector<128x256xf32>
    %56 = arith.addf %55, %54 : vector<128x256xf32>
    %57 = arith.divf %55, %56 : vector<128x256xf32>
    %58 = arith.mulf %52, %57 : vector<128x256xf32>
    %c0_38 = arith.constant 0 : index
    %c0_39 = arith.constant 0 : index
    %c0_40 = arith.constant 0 : index
    %59 = vector.load %arg7[%c0_38, %c0_39, %c0_40] : memref<1x8x128xbf16, #tpu.memory_space<vmem>>, vector<1x8x128xbf16>
    %60 = vector.shape_cast %59 : vector<1x8x128xbf16> to vector<8x128xbf16>
    %61 = arith.truncf %58 : vector<128x256xf32> to vector<128x256xbf16>
    %cst_41 = arith.constant dense<0.000000e+00> : vector<8x256xf32>
    %62 = tpu.matmul %60, %61, %cst_41 {dimension_numbers = #tpu.dot_dimension_numbers<[1], [0], [0], [1], [0, 0, 1, 1], [], []>} : vector<8x128xbf16>, vector<128x256xbf16>, vector<8x256xf32> -> vector<8x256xf32>
    %c0_42 = arith.constant 0 : index
    %c0_43 = arith.constant 0 : index
    %c0_44 = arith.constant 0 : index
    %63 = vector.load %arg8[%c0_42, %c0_43, %c0_44] : memref<1x8x1xf32, #tpu.memory_space<vmem>>, vector<1x8x1xf32>
    %64 = vector.shape_cast %63 : vector<1x8x1xf32> to vector<8x1xf32>
    %65 = vector.broadcast %64 : vector<8x1xf32> to vector<8x256xf32>
    %66 = arith.addf %62, %65 : vector<8x256xf32>
    %67 = arith.index_cast %arg1 : i32 to index
    %68 = memref.load %arg2[%67] : memref<1xi32, #tpu.memory_space<smem>>
    %c0_45 = arith.constant 0 : index
    %c0_46 = arith.constant 0 : index
    %69 = vector.load %arg4[%c0_45, %c0_46] : memref<256x1xi32, #tpu.memory_space<vmem>>, vector<256x1xi32>
    %c128_i32 = arith.constant 128 : i32
    %70 = arith.muli %68, %c128_i32 : i32
    %71 = vector.broadcast %70 : i32 to vector<256x1xi32>
    %72 = arith.subi %69, %71 : vector<256x1xi32>
    %73 = tpu.iota {dimensions = array<i32: 1>} : vector<256x128xi32>
    %74 = vector.broadcast %72 : vector<256x1xi32> to vector<256x128xi32>
    %75 = arith.cmpi eq, %73, %74 : vector<256x128xi32>
    %76 = arith.extui %75 : vector<256x128xi1> to vector<256x128xi32>
    %77 = arith.sitofp %76 : vector<256x128xi32> to vector<256x128xf32>
    %cst_47 = arith.constant dense<0.000000e+00> : vector<8x128xf32>
    %78 = tpu.matmul %66, %77, %cst_47 {dimension_numbers = #tpu.dot_dimension_numbers<[1], [0], [0], [1], [0, 0, 1, 1], [], []>} : vector<8x256xf32>, vector<256x128xf32>, vector<8x128xf32> -> vector<8x128xf32>
    %c0_i32_48 = arith.constant 0 : i32
    %79 = arith.addi %68, %c0_i32_48 : i32
    %c0_49 = arith.constant 0 : index
    %80 = arith.index_cast %79 : i32 to index
    %c0_50 = arith.constant 0 : index
    %c0_51 = arith.constant 0 : index
    %81 = vector.load %arg9[%c0_49, %80, %c0_50, %c0_51] : memref<1x1x8x128xf32, #tpu.memory_space<vmem>>, vector<1x1x8x128xf32>
    %82 = vector.shape_cast %81 : vector<1x1x8x128xf32> to vector<8x128xf32>
    %83 = arith.addf %82, %78 : vector<8x128xf32>
    %c0_i32_52 = arith.constant 0 : i32
    %84 = arith.addi %68, %c0_i32_52 : i32
    %c0_53 = arith.constant 0 : index
    %85 = arith.index_cast %84 : i32 to index
    %c0_54 = arith.constant 0 : index
    %c0_55 = arith.constant 0 : index
    %86 = vector.load %arg9[%c0_53, %85, %c0_54, %c0_55] : memref<1x1x8x128xf32, #tpu.memory_space<vmem>>, vector<1x1x8x128xf32>
    %87 = vector.shape_cast %86 : vector<1x1x8x128xf32> to vector<8x128xf32>
    %88 = vector.shape_cast %83 : vector<8x128xf32> to vector<1x1x8x128xf32>
    tpu.vector_store %arg9[%c0_53, %85, %c0_54, %c0_55], %88 {strides = array<i32>} : memref<1x1x8x128xf32, #tpu.memory_space<vmem>>, vector<1x1x8x128xf32>,
    return
  }
  func.func @transform_0(%arg0: i32, %arg1: i32, %arg2: memref<1xi32, #tpu.memory_space<smem>>) -> (i32, i32) {
    %c0_i32 = arith.constant 0 : i32
    %c0_i32_0 = arith.constant 0 : i32
    return %c0_i32, %arg1 : i32, i32
  }
  func.func @transform_1(%arg0: i32, %arg1: i32, %arg2: memref<1xi32, #tpu.memory_space<smem>>) -> (i32, i32) {
    %c0_i32 = arith.constant 0 : i32
    %c0_i32_0 = arith.constant 0 : i32
    return %arg1, %c0_i32 : i32, i32
  }
  func.func @transform_2(%arg0: i32, %arg1: i32, %arg2: memref<1xi32, #tpu.memory_space<smem>>) -> (i32, i32, i32, i32) {
    %c0_i32 = arith.constant 0 : i32
    %c0_i32_0 = arith.constant 0 : i32
    %c0_i32_1 = arith.constant 0 : i32
    %c0_i32_2 = arith.constant 0 : i32
    return %arg0, %c0_i32, %c0_i32_0, %c0_i32_1 : i32, i32, i32, i32
  }
  func.func @transform_3(%arg0: i32, %arg1: i32, %arg2: memref<1xi32, #tpu.memory_space<smem>>) -> (i32, i32, i32, i32) {
    %c0_i32 = arith.constant 0 : i32
    %c0_i32_0 = arith.constant 0 : i32
    %c0_i32_1 = arith.constant 0 : i32
    %c0_i32_2 = arith.constant 0 : i32
    return %arg0, %c0_i32, %c0_i32_0, %c0_i32_1 : i32, i32, i32, i32
  }
  func.func @transform_4(%arg0: i32, %arg1: i32, %arg2: memref<1xi32, #tpu.memory_space<smem>>) -> (i32, i32, i32) {
    %c0_i32 = arith.constant 0 : i32
    %c0_i32_0 = arith.constant 0 : i32
    %c0_i32_1 = arith.constant 0 : i32
    return %arg0, %c0_i32, %c0_i32_0 : i32, i32, i32
  }
  func.func @transform_5(%arg0: i32, %arg1: i32, %arg2: memref<1xi32, #tpu.memory_space<smem>>) -> (i32, i32, i32) {
    %c0_i32 = arith.constant 0 : i32
    %c0_i32_0 = arith.constant 0 : i32
    %c0_i32_1 = arith.constant 0 : i32
    return %arg0, %c0_i32, %c0_i32_0 : i32, i32, i32
  }
  func.func @transform_6(%arg0: i32, %arg1: i32, %arg2: memref<1xi32, #tpu.memory_space<smem>>) -> (i32, i32, i32, i32) {
    %c0_i32 = arith.constant 0 : i32
    %c0_i32_0 = arith.constant 0 : i32
    %c0_i32_1 = arith.constant 0 : i32
    %c0_i32_2 = arith.constant 0 : i32
    return %arg0, %c0_i32, %c0_i32_0, %c0_i32_1 : i32, i32, i32, i32
  }
}

</mosaic_0001>

<bundles_post_ra>
// kernel: tpu_custom_call.1
= control target key start
LH: loop header
LB: loop body
LE: loop exit
PB: predicated region body
PF: predicated region fallthrough
CT: control target
= control target key end

     0   :  { %s10850_s0 = inlined_call_operand.<no memory space> [shape: s32[1], index: 0, kind: input, shape index: {}]   ;;  %s10851_s1 = inlined_call_operand.vmem [shape: bf16[128,256], index: 1, kind: input, shape index: {}]   ;;  %s10852_s2 = inlined_call_operand.vmem [shape: s32[256,1], index: 2, kind: input, shape index: {}]   ;;  %s10853_s3 = inlined_call_operand.vmem [shape: bf16[2,4,128,128], index: 3, kind: input, shape index: {}]   ;;  %s10854_s4 = inlined_call_operand.vmem [shape: f32[2,4,128,1], index: 4, kind: input, shape index: {}]   ;;  %s10855_s5 = inlined_call_operand.vmem [shape: bf16[2,8,128], index: 5, kind: input, shape index: {}]   ;;  %s10856_s6 = inlined_call_operand.vmem [shape: f32[2,8,1], index: 6, kind: input, shape index: {}]   ;;  %s10857_s7 = inlined_call_operand.hbm [shape: f32[2,1,8,128], index: 7, kind: output, shape index: {}]  }
   0x1   :  { %12 = sst [smem:[#allocation3]] %s10850_s0 }
   0x2   :  { %13 = vsyncpa [#allocation5], 0 }
   0x3   :  { %15 = vsyncpa [#allocation5 + $0x1], 0  ;;  %s5864_s26 = smov 0   ;;  %s5866_s27 = smov 0  }
   0x4   :  { %s5868_s28 = smov 0   ;;  %s5870_s29 = smov 0  }
   0x5   :  { %s5872_s30 = smov 0   ;;  %s5874_s8 = smov 0  }
   0x6 LB: > { %s4615_s0 = sadd.s32 4294967295, %s5816_s8   ;;  %s4616_s9 = sadd.s32 4294967294, %s5816_s8   ;;  %s5816_s8 = sphi %s5874_s8, %s21_s8   ;;  %s5812_s30 = sphi %s5872_s30, %s11620_s30   ;;  %s5808_s29 = sphi %s5870_s29, %s11619_s29   ;;  %s5804_s28 = sphi %s5868_s28, %s11618_s28   ;;  %s5800_s27 = sphi %s5866_s27, %s11617_s27   ;;  %s5796_s26 = sphi %s5864_s26, %s11616_s26  }
   0x7   : > { %s33_s10 = sadd.s32 1, %s5812_s30  ;;  %s196_s11 = sadd.s32 1, %s5804_s28 }
   0x8   : > { %p35_p0 = scmp.ge.s32.totalorder %s33_s10, 2  ;;  %p206_p1 = scmp.ne.s32.totalorder %s5804_s28, %s5800_s27 }
   0x9   : > { %p207_p2 = scmp.eq.s32.totalorder %s4615_s0, 1  ;;  %p212_p3 = scmp.ne.s32.totalorder %s5800_s27, %s5796_s26 }
   0xa   : > { %s11622_s10 = smov (%p35_p0, %s33_s10), 0  ;;  %p213_p5 = scmp.eq.s32.totalorder %s4616_s9, 1 }
   0xb   : > { %p5904_p4 = por %p207_p2, %p206_p1  ;;  %s193_s13 = ssub.s32 %s5812_s30, %s11622_s10 }
   0xc   : > { %p4621_p6 = scmp.ge.s32.totalorder %s5816_s8, 1  ;;  %p194_p7 = scmp.eq.s32.totalorder %s193_s13, 0 }
   0xd   : > { %p5911_p8 = por %p213_p5, %p212_p3  ;;  %p279_p9 = scmp.lt.s32.totalorder %s5816_s8, 3 }
   0xe   : > { %s5917_s15 = scalar_select %p194_p7, %s5804_s28, %s196_s11  }
   0xf   : > { %p280_p10 = pnand %p4621_p6, %p279_p9 }
  0x11   : > { %283 = sbr.rel (%p280_p10) target bundleno = 1609 (0x649), region = 44 }
  0x16   : > { %v4719_v0 = vld [vmem:[%s10851_s1 + $0x70] sm:$0xf]  ;;  %v5132_v1 = vld [vmem:[%s10851_s1 + $0x74] sm:$0xf0]  ;;  %v5131_v2 = vld [vmem:[%s10851_s1 + $0x74] sm:$0xf] }
  0x17   : > { %v4720_v3 = vor.u32 %v5132_v1, %v4719_v0  ;;  %v4721_v4 = vld [vmem:[%s10851_s1 + $0x78] sm:$0xf0]  ;;  %v4711_v5 = vld [vmem:[%s10851_s1 + $0x60] sm:$0xf]  ;;  %p344_p11 = scmp.lt.s32.totalorder %s5808_s29, 1  ;;  %v5818_v7 = vmov 0  }
  0x18   : > { %v4724_v6 = vor.u32 %v5131_v2, %v4721_v4  ;;  %5225 = vset.pattern.permute.xlu2 %v5818_v7  ;;  %5224 = vset.pattern.permute.xlu1 %v5818_v7  ;;  %v5130_v8 = vld [vmem:[%s10851_s1 + $0x64] sm:$0xf0]  ;;  %v5129_v9 = vld [vmem:[%s10851_s1 + $0x64] sm:$0xf]  ;;  %v4713_v10 = vld [vmem:[%s10851_s1 + $0x68] sm:$0xf0] }
  0x19   : > { %623 = vmatpush.bf16.msra.mxu0 %v4720_v3  ;;  %5223 = vset.pattern.permute.xlu0 %v5818_v7  ;;  %v4712_v11 = vor.u32 %v5130_v8, %v4711_v5  ;;  %s5945_s18 = scalar_select %p344_p11, %s5808_s29, 1  ;;  %v4716_v12 = vor.u32 %v5129_v9, %v4713_v10  ;;  %v4703_v13 = vld [vmem:[%s10851_s1 + $0x50] sm:$0xf]  ;;  %v5128_v14 = vld [vmem:[%s10851_s1 + $0x54] sm:$0xf0] }
  0x1a   : > { %672 = vmatpush.bf16.msra.mxu1 %v4724_v6  ;;  %v5127_v15 = vld [vmem:[%s10851_s1 + $0x54] sm:$0xf]  ;;  %v4705_v16 = vld [vmem:[%s10851_s1 + $0x58] sm:$0xf0]  ;;  %v4704_v20 = vor.u32 %v5128_v14, %v4703_v13  ;;  %v4695_v22 = vld [vmem:[%s10851_s1 + $0x40] sm:$0xf] }
  0x1b   : > { %s5116_s23 = sshll.u32 %s5945_s18, 9  ;;  %v4708_v21 = vor.u32 %v5127_v15, %v4705_v16  ;;  %v5126_v23 = vld [vmem:[%s10851_s1 + $0x44] sm:$0xf0]  ;;  %v5125_v24 = vld [vmem:[%s10851_s1 + $0x44] sm:$0xf]  ;;  %s5115_s17 = sshll.u32 %s5945_s18, 8 }
  0x1c   : > { %s5963_s16 = scalar_lea.vmem %s10854_s4, %s5116_s23  ;;  %v4697_v25 = vld [vmem:[%s10851_s1 + $0x48] sm:$0xf0]  ;;  %v4696_v26 = vor.u32 %v5126_v23, %v4695_v22  ;;  %v4687_v28 = vld [vmem:[%s10851_s1 + $0x30] sm:$0xf]  ;;  %v5124_v29 = vld [vmem:[%s10851_s1 + $0x34] sm:$0xf0]  ;;  %s6038_s25 = scalar_lea.vmem %s10853_s3, %s5115_s17 }
  0x1d   : > { %624 = vmatpush.bf16.msra.mxu0 %v4712_v11  ;;  %v413_v17 = vld [vmem:[%s5963_s16 + $0x70] sm:$0xff]  ;;  %v411_v18 = vld [vmem:[%s5963_s16 + $0x60] sm:$0xff]  ;;  %v4700_v27 = vor.u32 %v5125_v24, %v4697_v25  ;;  %v414_v30 = vld [vmem:[%s5963_s16 + $0x78] sm:$0xff]  ;;  %v4688_v35 = vor.u32 %v5124_v29, %v4687_v28  ;;  %s6111_s0 = sld [smem:[#allocation3]]  ;;  %s4628_s19 = sshll.u32 %s5945_s18, 3 }
  0x1e   : > { %v409_v19 = vld [vmem:[%s5963_s16 + $0x50] sm:$0xff]  ;;  %673 = vmatpush.bf16.msra.mxu1 %v4716_v12  ;;  %487 = vperm.xlu0 %5223, %v413_v17   ;;  %v4689_v32 = vld [vmem:[%s10851_s1 + $0x38] sm:$0xf0]  ;;  %v412_v33 = vld [vmem:[%s5963_s16 + $0x68] sm:$0xff]  ;;  %s5112_s23 = sshll.u32 %s5808_s29, 3 }
  0x1f   : > { %477 = vperm.xlu1 %5224, %v411_v18   ;;  %467 = vperm.xlu2 %5225, %v409_v19   ;;  %v5123_v31 = vld [vmem:[%s10851_s1 + $0x34] sm:$0xf]  ;;  %v410_v34 = vld [vmem:[%s5963_s16 + $0x58] sm:$0xff]  ;;  %v4679_v37 = vld [vmem:[%s10851_s1 + $0x20] sm:$0xf]  ;;  %s4475_s13 = scalar_lea.hbm %s10857_s7, %s5112_s23 }
  0x20   : > { %v4692_v36 = vor.u32 %v5123_v31, %v4689_v32  ;;  %v5122_v38 = vld [vmem:[%s10851_s1 + $0x24] sm:$0xf0]  ;;  %v5121_v39 = vld [vmem:[%s10851_s1 + $0x24] sm:$0xf]  ;;  %v4681_v40 = vld [vmem:[%s10851_s1 + $0x28] sm:$0xf0] }
  0x21   : > { %625 = vmatpush.bf16.msra.mxu0 %v4704_v20  ;;  %v4680_v41 = vor.u32 %v5122_v38, %v4679_v37  ;;  %v4684_v42 = vor.u32 %v5121_v39, %v4681_v40  ;;  %v4671_v43 = vld [vmem:[%s10851_s1 + $0x10] sm:$0xf]  ;;  %v5120_v44 = vld [vmem:[%s10851_s1 + $0x14] sm:$0xf0]  ;;  %v407_v45 = vld [vmem:[%s5963_s16 + $0x40] sm:$0xff]  ;;  %s4479_s17 = sshll.u32 %s4475_s13, 4  ;;  %s4480_s17 = int_to_ptr.hbm [resolvable:$true] %s4479_s17 }
  0x22   : > { %674 = vmatpush.bf16.msra.mxu1 %v4708_v21  ;;  %v5119_v46 = vld [vmem:[%s10851_s1 + $0x14] sm:$0xf]  ;;  %v4673_v47 = vld [vmem:[%s10851_s1 + $0x18] sm:$0xf0]  ;;  %v408_v48 = vld [vmem:[%s5963_s16 + $0x48] sm:$0xff]  ;;  %v4672_v50 = vor.u32 %v5120_v44, %v4671_v43 }
  0x23   : > { %v405_v49 = vld [vmem:[%s5963_s16 + $0x30] sm:$0xff]  ;;  %v4676_v51 = vor.u32 %v5119_v46, %v4673_v47  ;;  %v4663_v52 = vld [vmem:[%s10851_s1] sm:$0xf]  ;;  %v5118_v53 = vld [vmem:[%s10851_s1 + $0x4] sm:$0xf0]  ;;  %s5045_s9 = sshll.u32 %s6111_s0, 7 }
  0x24   : > { %v5117_v54 = vld [vmem:[%s10851_s1 + $0x4] sm:$0xf]  ;;  %v4665_v55 = vld [vmem:[%s10851_s1 + $0x8] sm:$0xf0]  ;;  %v4664_v56 = vor.u32 %v5118_v53, %v4663_v52  ;;  %v406_v58 = vld [vmem:[%s5963_s16 + $0x38] sm:$0xff] }
  0x25   : > { %626 = vmatpush.bf16.msra.mxu0 %v4696_v26  ;;  %v4668_v57 = vor.u32 %v5117_v54, %v4665_v55  ;;  %v404_v59 = vld [vmem:[%s5963_s16 + $0x28] sm:$0xff]  ;;  %v403_v60 = vld [vmem:[%s5963_s16 + $0x20] sm:$0xff]  ;;  %v401_v62 = vld [vmem:[%s5963_s16 + $0x10] sm:$0xff] }
  0x26   : > { %675 = vmatpush.bf16.msra.mxu1 %v4700_v27  ;;  %492 = vperm.xlu0 %5223, %v414_v30   ;;  %v5133_v61 = vld [vmem:[%s6038_s25] sm:$0xff]  ;;  %v402_v63 = vld [vmem:[%s5963_s16 + $0x18] sm:$0xff]  ;;  %v400_v1 = vld [vmem:[%s5963_s16 + $0x8] sm:$0xff] }
  0x27   : > { %482 = vperm.xlu1 %5224, %v412_v33   ;;  %472 = vperm.xlu2 %5225, %v410_v34   ;;  %v399_v0 = vld [vmem:[%s5963_s16] sm:$0xff]  ;;  %v4787_v2 = vld [vmem:[%s5963_s16 + $0xf0] sm:$0xff]  ;;  %v4788_v3 = vld [vmem:[%s5963_s16 + $0xf8] sm:$0xff] }
  0x28   : > { %v5134_v4 = vld [vmem:[%s6038_s25 + $0x8] sm:$0xff]  ;;  %v4785_v5 = vld [vmem:[%s5963_s16 + $0xe0] sm:$0xff]  ;;  %v4783_v7 = vld [vmem:[%s5963_s16 + $0xd0] sm:$0xff] }
  0x29   : > { %627 = vmatpush.bf16.msra.mxu0 %v4688_v35  ;;  %v4786_v6 = vld [vmem:[%s5963_s16 + $0xe8] sm:$0xff]  ;;  %v4784_v8 = vld [vmem:[%s5963_s16 + $0xd8] sm:$0xff]  ;;  %v4781_v9 = vld [vmem:[%s5963_s16 + $0xc0] sm:$0xff] }
  0x2a   : > { %676 = vmatpush.bf16.msra.mxu1 %v4692_v36  ;;  %v4782_v10 = vld [vmem:[%s5963_s16 + $0xc8] sm:$0xff]  ;;  %v5135_v11 = vld [vmem:[%s6038_s25 + $0x10] sm:$0xff]  ;;  %v4780_v13 = vld [vmem:[%s5963_s16 + $0xb8] sm:$0xff] }
  0x2b   : > { %v4779_v12 = vld [vmem:[%s5963_s16 + $0xb0] sm:$0xff]  ;;  %v4777_v14 = vld [vmem:[%s5963_s16 + $0xa0] sm:$0xff]  ;;  %v4778_v15 = vld [vmem:[%s5963_s16 + $0xa8] sm:$0xff] }
  0x2c   : > { %v4775_v16 = vld [vmem:[%s5963_s16 + $0x90] sm:$0xff]  ;;  %v4776_v17 = vld [vmem:[%s5963_s16 + $0x98] sm:$0xff]  ;;  %v4773_v19 = vld [vmem:[%s5963_s16 + $0x80] sm:$0xff] }
  0x2d   : > { %628 = vmatpush.bf16.msra.mxu0 %v4680_v41  ;;  %v5136_v18 = vld [vmem:[%s6038_s25 + $0x18] sm:$0xff]  ;;  %v4774_v20 = vld [vmem:[%s5963_s16 + $0x88] sm:$0xff]  ;;  %v4883_v21 = vld [vmem:[%s5963_s16 + $0x170] sm:$0xff] }
  0x2e   : > { %677 = vmatpush.bf16.msra.mxu1 %v4684_v42  ;;  %457 = vperm.xlu0 %5223, %v407_v45   ;;  %v4884_v22 = vld [vmem:[%s5963_s16 + $0x178] sm:$0xff]  ;;  %v4881_v23 = vld [vmem:[%s5963_s16 + $0x160] sm:$0xff]  ;;  %v4882_v24 = vld [vmem:[%s5963_s16 + $0x168] sm:$0xff] }
  0x2f   : > { %462 = vperm.xlu1 %5224, %v408_v48   ;;  %447 = vperm.xlu2 %5225, %v405_v49   ;;  %v5137_v25 = vld [vmem:[%s6038_s25 + $0x20] sm:$0xff]  ;;  %v4879_v26 = vld [vmem:[%s5963_s16 + $0x150] sm:$0xff]  ;;  %v4880_v27 = vld [vmem:[%s5963_s16 + $0x158] sm:$0xff] }
  0x30   : > { %v4877_v28 = vld [vmem:[%s5963_s16 + $0x140] sm:$0xff]  ;;  %v4878_v29 = vld [vmem:[%s5963_s16 + $0x148] sm:$0xff]  ;;  %v4875_v30 = vld [vmem:[%s5963_s16 + $0x130] sm:$0xff] }
  0x31   : > { %629 = vmatpush.bf16.msra.mxu0 %v4672_v50  ;;  %v4876_v31 = vld [vmem:[%s5963_s16 + $0x138] sm:$0xff]  ;;  %v5138_v32 = vld [vmem:[%s6038_s25 + $0x28] sm:$0xff]  ;;  %v4873_v33 = vld [vmem:[%s5963_s16 + $0x120] sm:$0xff] }
  0x32   : > { %678 = vmatpush.bf16.msra.mxu1 %v4676_v51  ;;  %v4874_v34 = vld [vmem:[%s5963_s16 + $0x128] sm:$0xff]  ;;  %v4871_v35 = vld [vmem:[%s5963_s16 + $0x110] sm:$0xff]  ;;  %v4872_v36 = vld [vmem:[%s5963_s16 + $0x118] sm:$0xff] }
  0x33   : > { %v4869_v37 = vld [vmem:[%s5963_s16 + $0x100] sm:$0xff]  ;;  %v4870_v38 = vld [vmem:[%s5963_s16 + $0x108] sm:$0xff]  ;;  %v5139_v39 = vld [vmem:[%s6038_s25 + $0x30] sm:$0xff] }
  0x34   : > { %v4979_v41 = vld [vmem:[%s5963_s16 + $0x1f0] sm:$0xff]  ;;  %v4980_v42 = vld [vmem:[%s5963_s16 + $0x1f8] sm:$0xff]  ;;  %v4977_v43 = vld [vmem:[%s5963_s16 + $0x1e0] sm:$0xff] }
  0x35   : > { %630 = vmatpush.bf16.msra.mxu0 %v4664_v56  ;;  %v4978_v46 = vld [vmem:[%s5963_s16 + $0x1e8] sm:$0xff]  ;;  %v4975_v47 = vld [vmem:[%s5963_s16 + $0x1d0] sm:$0xff]  ;;  %v4976_v48 = vld [vmem:[%s5963_s16 + $0x1d8] sm:$0xff] }
  0x36   : > { %679 = vmatpush.bf16.msra.mxu1 %v4668_v57  ;;  %452 = vperm.xlu0 %5223, %v406_v58   ;;  %v5140_v49 = vld [vmem:[%s6038_s25 + $0x38] sm:$0xff]  ;;  %v4973_v51 = vld [vmem:[%s5963_s16 + $0x1c0] sm:$0xff]  ;;  %v4974_v52 = vld [vmem:[%s5963_s16 + $0x1c8] sm:$0xff] }
  0x37   : > { %442 = vperm.xlu2 %5225, %v404_v59   ;;  %437 = vperm.xlu1 %5224, %v403_v60   ;;  %v4971_v53 = vld [vmem:[%s5963_s16 + $0x1b0] sm:$0xff]  ;;  %v4972_v56 = vld [vmem:[%s5963_s16 + $0x1b8] sm:$0xff]  ;;  %v4969_v57 = vld [vmem:[%s5963_s16 + $0x1a0] sm:$0xff] }
  0x38   : > { %631 = vmatmul.bf16.vlgmr.msra.gmra.mxu0 %v5133_v61  ;;  %v4970_v58 = vld [vmem:[%s5963_s16 + $0x1a8] sm:$0xff] }
  0x39   : > { %680 = vmatmul.bf16.vlgmr.msra.gmra.mxu1 %v5133_v61 }
  0x3e   : > { %427 = vperm.xlu0 %5223, %v401_v62  }
  0x3f   : > { %432 = vperm.xlu1 %5224, %v402_v63   ;;  %417 = vperm.xlu2 %5225, %v399_v0   ;;  %v4967_v63 = vld [vmem:[%s5963_s16 + $0x190] sm:$0xff] }
  0x46   : > { %422 = vperm.xlu0 %5223, %v400_v1   ;;  %v4968_v1 = vld [vmem:[%s5963_s16 + $0x198] sm:$0xff] }
  0x47   : > { %1483 = vperm.xlu1 %5224, %v4787_v2   ;;  %1488 = vperm.xlu2 %5225, %v4788_v3   ;;  %v4965_v2 = vld [vmem:[%s5963_s16 + $0x180] sm:$0xff] }
  0x48   : > { %636 = vmatmul.bf16.gmra.mxu0 %v5134_v4 }
  0x49   : > { %685 = vmatmul.bf16.gmra.mxu1 %v5134_v4 }
  0x4e   : > { %1473 = vperm.xlu0 %5223, %v4785_v5   ;;  %v4174_v5 = vld [vmem:[%s10852_s2 + $0x78] sm:$0xff] }
  0x4f   : > { %1478 = vperm.xlu1 %5224, %v4786_v6   ;;  %1463 = vperm.xlu2 %5225, %v4783_v7   ;;  %v6130_v6 = vstv %s5045_s9  ;;  %v4190_v7 = vld [vmem:[%s10852_s2 + $0xf8] sm:$0xff]  ;;  %s361_s9 = scalar_lea.vmem %s10856_s6, %s4628_s19 }
  0x56   : > { %1468 = vperm.xlu0 %5223, %v4784_v8  }
  0x57   : > { %1453 = vperm.xlu1 %5224, %v4781_v9   ;;  %1458 = vperm.xlu2 %5225, %v4782_v10  }
  0x58   : > { %641 = vmatmul.bf16.gmra.mxu0 %v5135_v11 }
  0x59   : > { %690 = vmatmul.bf16.gmra.mxu1 %v5135_v11  ;;  %v4208_v11 = vsub.s32 %v4174_v5, %v6130_v6 }
  0x5e   : > { %1443 = vperm.xlu0 %5223, %v4779_v12   ;;  %v4966_v12 = vld [vmem:[%s5963_s16 + $0x188] sm:$0xff]  ;;  %s5110_s16 = sshll.u32 %s6111_s0, 3 }
  0x5f   : > { %1448 = vperm.xlu1 %5224, %v4780_v13   ;;  %1433 = vperm.xlu2 %5225, %v4777_v14   ;;  %v4224_v13 = vsub.s32 %v4190_v7, %v6130_v6 }
  0x66   : > { %1438 = vperm.xlu0 %5223, %v4778_v15  }
  0x67   : > { %1423 = vperm.xlu1 %5224, %v4775_v16   ;;  %1428 = vperm.xlu2 %5225, %v4776_v17  }
  0x68   : > { %646 = vmatmul.bf16.gmra.mxu0 %v5136_v18 }
  0x69   : > { %695 = vmatmul.bf16.gmra.mxu1 %v5136_v18 }
  0x6e   : > { %1413 = vperm.xlu0 %5223, %v4773_v19  }
  0x6f   : > { %1418 = vperm.xlu1 %5224, %v4774_v20   ;;  %2399 = vperm.xlu2 %5225, %v4883_v21   ;;  %v4173_v20 = vld [vmem:[%s10852_s2 + $0x70] sm:$0xff] }
  0x70   : > { %v4189_v21 = vld [vmem:[%s10852_s2 + $0xf0] sm:$0xff] }
  0x76   : > { %2404 = vperm.xlu0 %5223, %v4884_v22   ;;  %v4172_v22 = vld [vmem:[%s10852_s2 + $0x68] sm:$0xff] }
  0x77   : > { %2389 = vperm.xlu1 %5224, %v4881_v23   ;;  %2394 = vperm.xlu2 %5225, %v4882_v24   ;;  %v4207_v24 = vsub.s32 %v4173_v20, %v6130_v6  ;;  %v4168_v20 = vld [vmem:[%s10852_s2 + $0x48] sm:$0xff] }
  0x78   : > { %651 = vmatmul.bf16.gmra.mxu0 %v5137_v25 }
  0x79   : > { %700 = vmatmul.bf16.gmra.mxu1 %v5137_v25  ;;  %v6086_v40 = vpop.permute.xlu2 %467 }
  0x7e   : > { %2379 = vperm.xlu0 %5223, %v4879_v26  }
  0x7f   : > { %2384 = vperm.xlu1 %5224, %v4880_v27   ;;  %2369 = vperm.xlu2 %5225, %v4877_v28   ;;  %v4223_v27 = vsub.s32 %v4189_v21, %v6130_v6  ;;  %v4206_v28 = vsub.s32 %v4172_v22, %v6130_v6  ;;  %v4184_v21 = vld [vmem:[%s10852_s2 + $0xc8] sm:$0xff] }
  0x81   : > { %v6093_v45 = vpop.permute.xlu2 %472 }
  0x86   : > { %2374 = vperm.xlu0 %5223, %v4878_v29  }
  0x87   : > { %2359 = vperm.xlu1 %5224, %v4875_v30   ;;  %2364 = vperm.xlu2 %5225, %v4876_v31   ;;  %v4188_v31 = vld [vmem:[%s10852_s2 + $0xe8] sm:$0xff] }
  0x88   : > { %656 = vmatmul.bf16.gmra.mxu0 %v5138_v32 }
  0x89   : > { %705 = vmatmul.bf16.gmra.mxu1 %v5138_v32  ;;  %v6104_v54 = vpop.permute.xlu2 %447 }
  0x8e   : > { %2349 = vperm.xlu0 %5223, %v4873_v33   ;;  %v4171_v33 = vld [vmem:[%s10852_s2 + $0x60] sm:$0xff] }
  0x8f   : > { %2354 = vperm.xlu1 %5224, %v4874_v34   ;;  %2339 = vperm.xlu2 %5225, %v4871_v35   ;;  %v4187_v34 = vld [vmem:[%s10852_s2 + $0xe0] sm:$0xff]  ;;  %v4222_v35 = vsub.s32 %v4188_v31, %v6130_v6  ;;  %v4202_v31 = vsub.s32 %v4168_v20, %v6130_v6 }
  0x90   : > { %v6091_v44 = vpop.permute.xlu0 %487 }
  0x91   : > { %v6113_v61 = vpop.permute.xlu1 %477  ;;  %v6115_v62 = vpop.permute.xlu2 %442 }
  0x96   : > { %2344 = vperm.xlu0 %5223, %v4872_v36  }
  0x97   : > { %2329 = vperm.xlu1 %5224, %v4869_v37   ;;  %2334 = vperm.xlu2 %5225, %v4870_v38  }
  0x98   : > { %661 = vmatmul.bf16.gmra.mxu0 %v5139_v39  ;;  %v6099_v50 = vpop.permute.xlu0 %492 }
  0x99   : > { %710 = vmatmul.bf16.gmra.mxu1 %v5139_v39  ;;  %v6135_v8 = vpop.permute.xlu1 %482  ;;  %v418_v9 = vpop.permute.xlu2 %417  ;;  %v4205_v39 = vsub.s32 %v4171_v33, %v6130_v6 }
  0x9e   : > { %3315 = vperm.xlu0 %5223, %v4979_v41   ;;  %v4221_v41 = vsub.s32 %v4187_v34, %v6130_v6 }
  0x9f   : > { %3320 = vperm.xlu1 %5224, %v4980_v42   ;;  %3305 = vperm.xlu2 %5225, %v4977_v43  }
  0xa0   : > { %v6106_v55 = vpop.permute.xlu0 %457 }
  0xa1   : > { %v6158_v25 = vpop.permute.xlu1 %462 }
  0xa6   : > { %3310 = vperm.xlu0 %5223, %v4978_v46  }
  0xa7   : > { %3295 = vperm.xlu1 %5224, %v4975_v47   ;;  %3300 = vperm.xlu2 %5225, %v4976_v48  }
  0xa8   : > { %666 = vmatmul.bf16.gmra.mxu0 %v5140_v49  ;;  %v6118_v0 = vpop.permute.xlu0 %452 }
  0xa9   : > { %715 = vmatmul.bf16.gmra.mxu1 %v5140_v49  ;;  %v438_v43 = vpop.permute.xlu1 %437 }
  0xae   : > { %3285 = vperm.xlu0 %5223, %v4973_v51  }
  0xaf   : > { %3290 = vperm.xlu1 %5224, %v4974_v52   ;;  %3275 = vperm.xlu2 %5225, %v4971_v53   ;;  %v4170_v52 = vld [vmem:[%s10852_s2 + $0x58] sm:$0xff] }
  0xb0   : > { %v428_v16 = vpop.permute.xlu0 %427 }
  0xb5   : > { %v632_v59 = vpop.f32.mrf.mxu0 }
  0xb6   : > { %3280 = vperm.xlu0 %5223, %v4972_v56   ;;  %v681_v60 = vpop.f32.mrf.mxu1  ;;  %v6137_v10 = vadd.f32 %v632_v59, %v418_v9 }
  0xb7   : > { %3265 = vperm.xlu1 %5224, %v4969_v57   ;;  %3270 = vperm.xlu2 %5225, %v4970_v58   ;;  %v6142_v14 = vadd.f32 %v681_v60, %v418_v9  ;;  %v4186_v57 = vld [vmem:[%s10852_s2 + $0xd8] sm:$0xff]  ;;  %v4169_v58 = vld [vmem:[%s10852_s2 + $0x50] sm:$0xff] }
  0xb8   : > { %10958 = vst [vmem:[#allocation7_spill] sm:$0xff] %v6137_v10  ;;  %v4725_v17 = vmul.f32 -1.442695, %v6137_v10  ;;  %v423_v59 = vpop.permute.xlu0 %422  ;;  %v4220_v5 = vsub.s32 %v4186_v57, %v6130_v6  ;;  %v4203_v7 = vsub.s32 %v4169_v58, %v6130_v6 }
  0xb9   : > { %10959 = vst [vmem:[#allocation8_spill] sm:$0xff] %v6142_v14  ;;  %v4726_v23 = vmul.f32 -1.442695, %v6142_v14 }
  0xba   : > { %5226 = vpow2.f32 %v4725_v17 }
  0xbb   : > { %5228 = vpow2.f32 %v4726_v23 }
  0xbd   : > { %v6122_v3 = vpop.f32.mrf.mxu0 }
  0xbe   : > { %3255 = vperm.xlu0 %5223, %v4967_v63   ;;  %v6125_v4 = vpop.f32.mrf.mxu1  ;;  %v6203_v63 = vadd.f32 %v6122_v3, %v423_v59 }
  0xbf   : > { %3260 = vperm.xlu1 %5224, %v4968_v1   ;;  %3245 = vperm.xlu2 %5225, %v4965_v2   ;;  %v4204_v2 = vsub.s32 %v4170_v52, %v6130_v6  ;;  %v6210_v9 = vadd.f32 %v6125_v4, %v423_v59  ;;  %v4185_v4 = vld [vmem:[%s10852_s2 + $0xd0] sm:$0xff] }
  0xc0   : > { %v5227_v32 = vpop.eup %5226  ;;  %10962 = vst [vmem:[#allocation11_spill] sm:$0xff] %v6203_v63  ;;  %v4727_v3 = vmul.f32 -1.442695, %v6203_v63 }
  0xc1   : > { %v5229_v36 = vpop.eup %5228  ;;  %v6175_v37 = vadd.f32 1.0, %v5227_v32  ;;  %10963 = vst [vmem:[#allocation12_spill] sm:$0xff] %v6210_v9  ;;  %v4218_v32 = vsub.s32 %v4184_v21, %v6130_v6 }
  0xc2   : > { %v6181_v47 = vadd.f32 1.0, %v5229_v36 }
  0xc3   : > { %vm854_vm1 = vweird.f32 %v6175_v37 }
  0xc4   : > { %10961 = vst [vmem:[#allocation10_spill] sm:$0xff] %v6181_v47  ;;  %vm869_vm2 = vweird.f32 %v6181_v47 }
  0xc5   : > { %v637_v15 = vpop.f32.mrf.mxu0 }
  0xc6   : > { %3250 = vperm.xlu0 %5223, %v4966_v12   ;;  %v686_v18 = vpop.f32.mrf.mxu1  ;;  %v6145_v19 = vadd.f32 %v637_v15, %v428_v16 }
  0xc7   : > { %4273 = vperm.xlu1 %5224, %v4208_v11   ;;  %4321 = vperm.xlu2 %5225, %v4224_v13   ;;  %v6177_v38 = vadd.f32 %v686_v18, %v428_v16  ;;  %v433_v16 = vpop.permute.xlu1 %432  ;;  %v4728_v18 = vmul.f32 -1.442695, %v6210_v9 }
  0xc8   : > { %v4729_v26 = vmul.f32 -1.442695, %v6145_v19 }
  0xc9   : > { %10960 = vst [vmem:[#allocation9_spill] sm:$0xff] %v6177_v38  ;;  %v4730_v51 = vmul.f32 -1.442695, %v6177_v38 }
  0xca   : > { %5230 = vpow2.f32 %v4729_v26  ;;  %v4219_v26 = vsub.s32 %v4185_v4, %v6130_v6 }
  0xcb   : > { %5232 = vrcp.f32 %v6175_v37 }
  0xcc   : > { %5234 = vrcp.f32 %v6181_v47 }
  0xcd   : > { %v639_v29 = vpop.f32.mrf.mxu0  ;;  %5236 = vpow2.f32 %v4730_v51 }
  0xce   : > { %4270 = vperm.xlu0 %5223, %v4207_v24   ;;  %v6163_v30 = vpop.f32.mrf.mxu1  ;;  %v6234_v23 = vadd.f32 %v639_v29, %v433_v16 }
  0xcf   : > { %4318 = vperm.xlu1 %5224, %v4223_v27   ;;  %4267 = vperm.xlu2 %5225, %v4206_v28   ;;  %v6247_v36 = vadd.f32 %v6163_v30, %v433_v16 }
  0xd0   : > { %v5231_v42 = vpop.eup %5230  ;;  %10965 = vst [vmem:[#allocation14_spill] sm:$0xff] %v6234_v23  ;;  %v4731_v29 = vmul.f32 -1.442695, %v6234_v23 }
  0xd1   : > { %v6190_v53 = vadd.f32 1.0, %v5231_v42  ;;  %v6213_v11 = vpop.eup %5232  ;;  %10967 = vst [vmem:[#allocation16_spill] sm:$0xff] %v6247_v36 }
  0xd2   : > { %v6223_v15 = vpop.eup %5234  ;;  %v850_v17 = vmul.f32 %v6213_v11, %v6175_v37  ;;  %vm855_vm0 = vweird.f32 %v6213_v11 }
  0xd3   : > { %5238 = vrcp.f32 %v6190_v53  ;;  %10964 = vst [vmem:[#allocation13_spill] sm:$0xff] %v6223_v15  ;;  %v5237_v22 = vpop.eup %5236  ;;  %v865_v28 = vmul.f32 %v6223_v15, %v6181_v47  ;;  %vm6305_vm3 = vmor %vm854_vm1, %vm855_vm0  ;;  %vm870_vm5 = vweird.f32 %v6223_v15  ;;  %vm914_vm8 = vweird.f32 %v6190_v53 }
  0xd4   : > { %v851_v34 = vsub.f32 1.0, %v850_v17  ;;  %vm6356_vm7 = vmor %vm869_vm2, %vm870_vm5 }
  0xd5   : > { %v642_v46 = vpop.f32.mrf.mxu0  ;;  %v866_v51 = vsub.f32 1.0, %v865_v28 }
  0xd6   : > { %4315 = vperm.xlu0 %5223, %v4222_v35   ;;  %v6183_v48 = vadd.f32 %v642_v46, %v438_v43  ;;  %v691_v49 = vpop.f32.mrf.mxu1  ;;  %v6243_v35 = vadd.f32 1.0, %v5237_v22  ;;  %v4167_v46 = vld [vmem:[%s10852_s2 + $0x40] sm:$0xff]  ;;  %v852_v57 = vmul.f32 %v6213_v11, %v851_v34 }
  0xd7   : > { %4264 = vperm.xlu1 %5224, %v4205_v39   ;;  %4312 = vperm.xlu2 %5225, %v4221_v41   ;;  %v6192_v56 = vadd.f32 %v691_v49, %v438_v43  ;;  %v858_v49 = vand.u32 2147483647, %v6175_v37  ;;  %v867_v22 = vmul.f32 %v6223_v15, %v866_v51 }
  0xd8   : > { %v4733_v60 = vmul.f32 -1.442695, %v6183_v48  ;;  %10966 = vst [vmem:[#allocation15_spill] sm:$0xff] %v6243_v35  ;;  %v853_v21 = vadd.f32 %v6213_v11, %v852_v57  ;;  %v4165_v57 = vld [vmem:[%s10852_s2 + $0x30] sm:$0xff]  ;;  %v935_v9 = vand.u32 2147483648, %v6243_v35  ;;  %vm929_vm11 = vweird.f32 %v6243_v35 }
  0xd9   : > { %v4734_v1 = vmul.f32 -1.442695, %v6192_v56  ;;  %v6236_v24 = vpop.eup %5238  ;;  %vm6309_vm4 = vcmp.eq.f32.partialorder %v858_v49, 8.507059e+37  ;;  %v6324_v51 = vadd.f32 %v6223_v15, %v867_v22 }
  0xda   : > { %5240 = vpow2.f32 %v4733_v60  ;;  %v910_v41 = vmul.f32 %v6236_v24, %v6190_v53  ;;  %v4183_v60 = vld [vmem:[%s10852_s2 + $0xc0] sm:$0xff]  ;;  %v857_v49 = vsel %vm6305_vm3, %v6213_v11, %v853_v21  ;;  %v918_v11 = vand.u32 2147483647, %v6190_v53 }
  0xdb   : > { %5242 = vpow2.f32 %v4734_v1  ;;  %v4166_v1 = vld [vmem:[%s10852_s2 + $0x38] sm:$0xff]  ;;  %10976 = vst [vmem:[#allocation21_spill] sm:$0xff] %v6324_v51  ;;  %vm915_vm6 = vweird.f32 %v6236_v24 }
  0xdc   : > { %5244 = vpow2.f32 %v4727_v3  ;;  %v911_v4 = vsub.f32 1.0, %v910_v41  ;;  %v4200_v20 = vsub.s32 %v4166_v1, %v6130_v6  ;;  %vm6372_vm9 = vmor %vm914_vm8, %vm915_vm6  ;;  %vm6376_vm10 = vcmp.eq.f32.partialorder %v918_v11, 8.507059e+37 }
  0xdd   : > { %v6215_v12 = vpop.f32.mrf.mxu0  ;;  %5246 = vpow2.f32 %v4728_v18  ;;  %v4217_v18 = vsub.s32 %v4183_v60, %v6130_v6  ;;  %v4181_v60 = vld [vmem:[%s10852_s2 + $0xb0] sm:$0xff] }
  0xde   : > { %4261 = vperm.xlu0 %5223, %v4204_v2   ;;  %v6218_v13 = vpop.f32.mrf.mxu1  ;;  %5248 = vrcp.f32 %v6243_v35  ;;  %v860_v2 = vand.u32 2147483648, %v6175_v37  ;;  %v4215_v21 = vsub.s32 %v4181_v60, %v6130_v6 }
  0xdf   : > { %4309 = vperm.xlu1 %5224, %v4220_v5   ;;  %4258 = vperm.xlu2 %5225, %v4203_v7   ;;  %5250 = vpow2.f32 %v4731_v29  ;;  %v4732_v5 = vmul.f32 -1.442695, %v6247_v36  ;;  %v4201_v7 = vsub.s32 %v4167_v46, %v6130_v6 }
  0xe0   : > { %v5241_v27 = vpop.eup %5240 }
  0xe1   : > { %v5243_v33 = vpop.eup %5242  ;;  %v6251_v42 = vadd.f32 1.0, %v5241_v27  ;;  %v6292_v27 = vadd.f32 %v6215_v12, %v6115_v62 }
  0xe2   : > { %v6257_v52 = vadd.f32 1.0, %v5243_v33  ;;  %v5245_v30 = vpop.eup %5244  ;;  %v912_v33 = vmul.f32 %v6236_v24, %v911_v4 }
  0xe3   : > { %v5247_v3 = vpop.eup %5246  ;;  %5252 = vrcp.f32 %v6251_v42  ;;  %v6279_v17 = vadd.f32 1.0, %v5245_v30  ;;  %10970 = vst [vmem:[#allocation19_spill] sm:$0xff] %v6292_v27  ;;  %v6329_v30 = vadd.f32 %v6218_v13, %v6115_v62  ;;  %v4735_v62 = vmul.f32 -1.442695, %v6292_v27 }
  0xe4   : > { %5254 = vrcp.f32 %v6257_v52  ;;  %vm974_vm13 = vweird.f32 %v6251_v42  ;;  %vm989_vm15 = vweird.f32 %v6257_v52  ;;  %v995_v51 = vand.u32 2147483648, %v6257_v52 }
  0xe5   : > { %v647_v39 = vpop.f32.mrf.mxu0  ;;  %10968 = vst [vmem:[#allocation17_spill] sm:$0xff] %v6279_v17  ;;  %v4736_v29 = vmul.f32 -1.442695, %v6329_v30 }
  0xe6   : > { %4306 = vperm.xlu0 %5223, %v4219_v26   ;;  %v696_v43 = vpop.f32.mrf.mxu1  ;;  %v6262_v58 = vadd.f32 %v647_v39, %v6104_v54  ;;  %v6288_v26 = vadd.f32 1.0, %v5247_v3  ;;  %v861_v39 = vor.u32 1.1754944e-38, %v860_v2  ;;  %10977 = vst [vmem:[#allocation22_spill] sm:$0xff] %v6329_v30 }
  0xe7   : > { %4255 = vperm.xlu1 %5224, %v4202_v31   ;;  %4303 = vperm.xlu2 %5225, %v4218_v32   ;;  %v6265_v59 = vadd.f32 %v696_v43, %v6104_v54  ;;  %v6296_v31 = vpop.eup %5248  ;;  %v4182_v43 = vld [vmem:[%s10852_s2 + $0xb8] sm:$0xff] }
  0xe8   : > { %v4737_v54 = vmul.f32 -1.442695, %v6262_v58  ;;  %10969 = vst [vmem:[#allocation18_spill] sm:$0xff] %v6288_v26  ;;  %v5251_v34 = vpop.eup %5250  ;;  %v925_v2 = vmul.f32 %v6296_v31, %v6243_v35  ;;  %v4216_v3 = vsub.s32 %v4182_v43, %v6130_v6  ;;  %vm930_vm12 = vweird.f32 %v6296_v31 }
  0xe9   : > { %v4738_v16 = vmul.f32 -1.442695, %v6265_v59  ;;  %10971 = vst [vmem:[#allocation20_spill] sm:$0xff] %v6296_v31  ;;  %v6318_v46 = vpop.eup %5252  ;;  %vm6504_vm3 = vmor %vm929_vm11, %vm930_vm12 }
  0xea   : > { %5256 = vpow2.f32 %v4737_v54  ;;  %v6337_v1 = vpop.eup %5254  ;;  %v6350_v54 = vsel %vm6309_vm4, %v861_v39, %v857_v49  ;;  %v970_v12 = vmul.f32 %v6318_v46, %v6251_v42  ;;  %v926_v43 = vsub.f32 1.0, %v925_v2  ;;  %v4164_v2 = vld [vmem:[%s10852_s2 + $0x28] sm:$0xff] }
  0xeb   : > { %5258 = vpow2.f32 %v4738_v16  ;;  %10978 = vst [vmem:[#allocation23_spill] sm:$0xff] %v6350_v54  ;;  %v10979_v16 = vmov 0  ;;  %v985_v41 = vmul.f32 %v6337_v1, %v6257_v52  ;;  %vm975_vm0 = vweird.f32 %v6318_v46 }
  0xec   : > { %5260 = vpow2.f32 %v4732_v5  ;;  %v913_v5 = vadd.f32 %v6236_v24, %v912_v33  ;;  %v10980_v16 = vsel %vm6356_vm7, 4294967295, %v10979_v16  ;;  %vm990_vm1 = vweird.f32 %v6337_v1  ;;  %vm6491_vm2 = vmor %vm974_vm13, %vm975_vm0 }
  0xed   : > { %v6294_v28 = vpop.f32.mrf.mxu0  ;;  %5262 = vrcp.f32 %v6279_v17  ;;  %10981 = vst [vmem:[#allocation24_spill] sm:$0xff] %v10980_v16  ;;  %vm6522_vm4 = vmor %vm989_vm15, %vm990_vm1 }
  0xee   : > { %4252 = vperm.xlu0 %5223, %v4201_v7   ;;  %v6301_v37 = vpop.f32.mrf.mxu1  ;;  %5264 = vrcp.f32 %v6288_v26  ;;  %v920_v7 = vand.u32 2147483648, %v6190_v53  ;;  %v917_v53 = vsel %vm6372_vm9, %v6236_v24, %v913_v5  ;;  %v971_v5 = vsub.f32 1.0, %v970_v12 }
  0xef   : > { %4300 = vperm.xlu1 %5224, %v4217_v18   ;;  %4249 = vperm.xlu2 %5225, %v4200_v20   ;;  %v6360_v18 = vadd.f32 1.0, %v5251_v34  ;;  %v4199_v20 = vsub.s32 %v4165_v57, %v6130_v6  ;;  %5266 = vpow2.f32 %v4735_v62  ;;  %v4163_v34 = vld [vmem:[%s10852_s2 + $0x20] sm:$0xff]  ;;  %v986_v12 = vsub.f32 1.0, %v985_v41 }
  0xf0   : > { %v5257_v13 = vpop.eup %5256  ;;  %v921_v33 = vor.u32 1.1754944e-38, %v920_v7  ;;  %v6429_v41 = vor.u32 1.1754944e-38, %v935_v9 }
  0xf1   : > { %v5259_v4 = vpop.eup %5258  ;;  %v6380_v49 = vadd.f32 1.0, %v5257_v13  ;;  %5268 = vrcp.f32 %v6360_v18 }
  0xf2   : > { %v5261_v22 = vpop.eup %5260  ;;  %v6389_v32 = vadd.f32 1.0, %v5259_v4  ;;  %5270 = vpow2.f32 %v4736_v29  ;;  %v4180_v4 = vld [vmem:[%s10852_s2 + $0xa8] sm:$0xff]  ;;  %10989 = vst [vmem:[#allocation28_spill] sm:$0xff] %v6429_v41  ;;  %v4175_v41 = vld [vmem:[%s10852_s2 + $0x80] sm:$0xff] }
  0xf3   : > { %v6382_v60 = vpop.eup %5262  ;;  %v6399_v24 = vadd.f32 1.0, %v5261_v22  ;;  %5272 = vrcp.f32 %v6380_v49  ;;  %v4198_v22 = vsub.s32 %v4164_v2, %v6130_v6  ;;  %v4214_v39 = vsub.s32 %v4180_v4, %v6130_v6 }
  0xf4   : > { %10986 = vst [vmem:[#allocation25_spill] sm:$0xff] %v6382_v60  ;;  %v6394_v62 = vpop.eup %5264  ;;  %5274 = vrcp.f32 %v6389_v32  ;;  %v6435_v2 = vadd.f32 %v6301_v37, %v6118_v0  ;;  %vm1034_vm6 = vweird.f32 %v6380_v49  ;;  %vm1049_vm8 = vweird.f32 %v6389_v32 }
  0xf5   : > { %v652_v57 = vpop.f32.mrf.mxu0  ;;  %10987 = vst [vmem:[#allocation26_spill] sm:$0xff] %v6394_v62  ;;  %5276 = vrcp.f32 %v6399_v24 }
  0xf6   : > { %4297 = vperm.xlu0 %5223, %v4216_v3   ;;  %v701_v11 = vpop.f32.mrf.mxu1  ;;  %10988 = vst [vmem:[#allocation27_spill] sm:$0xff] %v6399_v24  ;;  %v6402_v7 = vadd.f32 %v652_v57, %v6106_v55  ;;  %v5267_v57 = vpop.eup %5266 }
  0xf7   : > { %4246 = vperm.xlu1 %5224, %v4199_v20   ;;  %4294 = vperm.xlu2 %5225, %v4215_v21   ;;  %v6405_v3 = vadd.f32 %v701_v11, %v6106_v55  ;;  %v922_v20 = vsel %vm6376_vm10, %v921_v33, %v917_v53  ;;  %v927_v21 = vmul.f32 %v6296_v31, %v926_v43  ;;  %v978_v11 = vand.u32 2147483647, %v6251_v42  ;;  %v6437_v13 = vpop.eup %5268 }
  0xf8   : > { %v4741_v55 = vmul.f32 -1.442695, %v6402_v7  ;;  %v6425_v33 = vadd.f32 %v6294_v28, %v6118_v0  ;;  %v4197_v43 = vsub.s32 %v4163_v34, %v6130_v6  ;;  %v972_v53 = vmul.f32 %v6318_v46, %v971_v5  ;;  %10990 = vst [vmem:[#allocation29_spill] sm:$0xff] %v6435_v2  ;;  %v5271_v28 = vpop.eup %5270 }
  0xf9   : > { %v4742_v29 = vmul.f32 -1.442695, %v6405_v3  ;;  %10991 = vst [vmem:[#allocation30_spill] sm:$0xff] %v6437_v13  ;;  %v6440_v14 = vmul.f32 %v922_v20, %v6145_v19  ;;  %v6445_v4 = vadd.f32 %v6296_v31, %v927_v21  ;;  %v987_v5 = vmul.f32 %v6337_v1, %v986_v12  ;;  %v4162_v19 = vld [vmem:[%s10852_s2 + $0x18] sm:$0xff]  ;;  %v6455_v37 = vpop.eup %5272 }
  0xfa   : > { %5278 = vpow2.f32 %v4741_v55  ;;  %v6448_v34 = vadd.f32 1.0, %v5267_v57  ;;  %vm6457_vm14 = vcmp.eq.f32.partialorder %v978_v11, 8.507059e+37  ;;  %v980_v21 = vand.u32 2147483648, %v6251_v42  ;;  %v6467_v55 = vpop.eup %5274 }
  0xfb   : > { %10992 = vst [vmem:[#allocation31_spill] sm:$0xff] %v6440_v14  ;;  %5280 = vpow2.f32 %v4742_v29  ;;  %v4739_v12 = vmul.f32 -1.442695, %v6425_v33  ;;  %v973_v29 = vadd.f32 %v6318_v46, %v972_v53  ;;  %v4740_v57 = vmul.f32 -1.442695, %v6435_v2  ;;  %v6483_v53 = vpop.eup %5276 }
  0xfc   : > { %10993 = vst [vmem:[#allocation32_spill] sm:$0xff] %v6445_v4  ;;  %v6480_v15 = vadd.f32 1.0, %v5271_v28  ;;  %v4196_v16 = vsub.s32 %v4162_v19, %v6130_v6  ;;  %v988_v63 = vadd.f32 %v6337_v1, %v987_v5  ;;  %5282 = vrcp.f32 %v6448_v34 }
  0xfd   : > { %v654_v9 = vpop.f32.mrf.mxu0  ;;  %10996 = vst [vmem:[#allocation33_spill] sm:$0xff] %v6483_v53  ;;  %v1030_v28 = vmul.f32 %v6455_v37, %v6380_v49  ;;  %v1045_v19 = vmul.f32 %v6467_v55, %v6389_v32  ;;  %5284 = vpow2.f32 %v4739_v12  ;;  %v10999_v42 = vmov 0 }
  0xfe   : > { %4243 = vperm.xlu0 %5223, %v4198_v22   ;;  %v6450_v0 = vpop.f32.mrf.mxu1  ;;  %v4179_v22 = vld [vmem:[%s10852_s2 + $0xa0] sm:$0xff]  ;;  %v6473_v11 = vadd.f32 %v654_v9, %v6158_v25  ;;  %v11000_v42 = vsel %vm6504_vm3, 4294967295, %v10999_v42  ;;  %5286 = vpow2.f32 %v4740_v57  ;;  %v981_v14 = vor.u32 1.1754944e-38, %v980_v21  ;;  %v4161_v21 = vld [vmem:[%s10852_s2 + $0x10] sm:$0xff] }
  0xff   : > { %4291 = vperm.xlu1 %5224, %v4214_v39   ;;  %4240 = vperm.xlu2 %5225, %v4197_v43   ;;  %v4178_v39 = vld [vmem:[%s10852_s2 + $0x98] sm:$0xff]  ;;  %v993_v43 = vand.u32 2147483647, %v6257_v52  ;;  %v4213_v9 = vsub.s32 %v4179_v22, %v6130_v6  ;;  %11001 = vst [vmem:[#allocation34_spill] sm:$0xff] %v11000_v42  ;;  %v977_v22 = vsel %vm6491_vm2, %v6318_v46, %v973_v29  ;;  %5288 = vrcp.f32 %v6480_v15 }
 0x100   : > { %v5279_v54 = vpop.eup %5278  ;;  %v4212_v5 = vsub.s32 %v4178_v39, %v6130_v6  ;;  %v4743_v12 = vmul.f32 -1.442695, %v6473_v11  ;;  %v992_v52 = vsel %vm6522_vm4, %v6337_v1, %v988_v63  ;;  %v996_v57 = vor.u32 1.1754944e-38, %v995_v51  ;;  %v4160_v39 = vld [vmem:[%s10852_s2 + $0x8] sm:$0xff] }
 0x101   : > { %v5281_v47 = vpop.eup %5280  ;;  %v6511_v36 = vadd.f32 1.0, %v5279_v54  ;;  %v4177_v54 = vld [vmem:[%s10852_s2 + $0x90] sm:$0xff]  ;;  %vm6538_vm5 = vcmp.eq.f32.partialorder %v993_v43, 8.507059e+37  ;;  %v982_v62 = vsel %vm6457_vm14, %v981_v14, %v977_v22  ;;  %v1031_v26 = vsub.f32 1.0, %v1030_v28 }
 0x102   : > { %v6527_v10 = vadd.f32 1.0, %v5281_v47  ;;  %v1046_v23 = vsub.f32 1.0, %v1045_v19  ;;  %v6549_v38 = vpop.eup %5282  ;;  %v4211_v51 = vsub.s32 %v4177_v54, %v6130_v6  ;;  %v4195_v1 = vsub.s32 %v4161_v21, %v6130_v6 }
 0x103   : > { %5290 = vrcp.f32 %v6511_v36  ;;  %v5285_v43 = vpop.eup %5284  ;;  %v997_v14 = vsel %vm6538_vm5, %v996_v57, %v992_v52  ;;  %v6560_v20 = vadd.f32 %v6450_v0, %v6158_v25  ;;  %v6567_v19 = vmul.f32 %v982_v62, %v6183_v48 }
 0x104   : > { %5292 = vrcp.f32 %v6527_v10  ;;  %v5287_v28 = vpop.eup %5286  ;;  %v1032_v25 = vmul.f32 %v6455_v37, %v1031_v26  ;;  %v1040_v0 = vand.u32 2147483648, %v6380_v49  ;;  %v6581_v48 = vmul.f32 %v997_v14, %v6192_v56 }
 0x105   : > { %v657_v46 = vpop.f32.mrf.mxu0  ;;  %5294 = vpow2.f32 %v4743_v12  ;;  %11006 = vst [vmem:[#allocation35_spill] sm:$0xff] %v6567_v19  ;;  %v6572_v12 = vpop.eup %5288  ;;  %v1055_v62 = vand.u32 2147483648, %v6389_v32  ;;  %v6585_v54 = vadd.f32 1.0, %v5285_v43  ;;  %v6589_v26 = vadd.f32 1.0, %v5287_v28 }
 0x106   : > { %4288 = vperm.xlu0 %5223, %v4213_v9   ;;  %v706_v47 = vpop.f32.mrf.mxu1  ;;  %v6552_v63 = vadd.f32 %v657_v46, %v6086_v40  ;;  %v4194_v9 = vsub.s32 %v4160_v39, %v6130_v6  ;;  %11007 = vst [vmem:[#allocation36_spill] sm:$0xff] %v6581_v48  ;;  %v4744_v52 = vmul.f32 -1.442695, %v6560_v20  ;;  %vm1035_vm9 = vweird.f32 %v6455_v37 }
 0x107   : > { %4237 = vperm.xlu1 %5224, %v4196_v16   ;;  %4285 = vperm.xlu2 %5225, %v4212_v5   ;;  %v6563_v16 = vadd.f32 %v706_v47, %v6086_v40  ;;  %v1038_v5 = vand.u32 2147483647, %v6380_v49  ;;  %v1047_v40 = vmul.f32 %v6467_v55, %v1046_v23  ;;  %v1033_v14 = vadd.f32 %v6455_v37, %v1032_v25  ;;  %v4159_v25 = vld [vmem:[%s10852_s2] sm:$0xff]  ;;  %vm6619_vm11 = vmor %vm1034_vm6, %vm1035_vm9 }
 0x108   : > { %v4745_v22 = vmul.f32 -1.442695, %v6552_v63  ;;  %vm1050_vm10 = vweird.f32 %v6467_v55  ;;  %vm1094_vm15 = vweird.f32 %v6511_v36  ;;  %vm1109_vm2 = vweird.f32 %v6527_v10 }
 0x109   : > { %v4746_v39 = vmul.f32 -1.442695, %v6563_v16  ;;  %v6578_v46 = vpop.eup %5290  ;;  %v1048_v28 = vadd.f32 %v6467_v55, %v1047_v40  ;;  %vm6634_vm12 = vmor %vm1049_vm8, %vm1050_vm10  ;;  %vm1039_vm13 = vcmp.eq.f32.partialorder %v1038_v5, 8.507059e+37  ;;  %v1098_v5 = vand.u32 2147483647, %v6511_v36 }
 0x10a   : > { %v6587_v21 = vpop.eup %5292  ;;  %v1090_v23 = vmul.f32 %v6578_v46, %v6511_v36  ;;  %5296 = vpow2.f32 %v4745_v22  ;;  %vm1095_vm0 = vweird.f32 %v6578_v46 }
 0x10b   : > { %v5295_v56 = vpop.eup %5294  ;;  %v1105_v57 = vmul.f32 %v6587_v21, %v6527_v10  ;;  %5298 = vpow2.f32 %v4746_v39  ;;  %vm1110_vm1 = vweird.f32 %v6587_v21  ;;  %vm6680_vm4 = vmor %vm1094_vm15, %vm1095_vm0  ;;  %vm6702_vm5 = vcmp.eq.f32.partialorder %v1098_v5, 8.507059e+37 }
 0x10c   : > { %5300 = vrcp.f32 %v6585_v54  ;;  %v1091_v39 = vsub.f32 1.0, %v1090_v23  ;;  %v1041_v23 = vor.u32 1.1754944e-38, %v1040_v0  ;;  %v1052_v0 = vsel %vm6634_vm12, %v6467_v55, %v1048_v28  ;;  %vm6708_vm6 = vmor %vm1109_vm2, %vm1110_vm1 }
 0x10d   : > { %v659_v29 = vpop.f32.mrf.mxu0  ;;  %5302 = vpow2.f32 %v4744_v52 }
 0x10e   : > { %4234 = vperm.xlu0 %5223, %v4195_v1   ;;  %v6598_v47 = vadd.f32 %v659_v29, %v6093_v45  ;;  %v708_v43 = vpop.f32.mrf.mxu1  ;;  %v4176_v1 = vld [vmem:[%s10852_s2 + $0x88] sm:$0xff]  ;;  %v1106_v29 = vsub.f32 1.0, %v1105_v57  ;;  %v1056_v57 = vor.u32 1.1754944e-38, %v1055_v62 }
 0x10f   : > { %4282 = vperm.xlu1 %5224, %v4211_v51   ;;  %4231 = vperm.xlu2 %5225, %v4194_v9   ;;  %v6605_v22 = vadd.f32 %v708_v43, %v6093_v45  ;;  %v1053_v51 = vand.u32 2147483647, %v6389_v32  ;;  %v6624_v9 = vadd.f32 1.0, %v5295_v56  ;;  %v4210_v56 = vsub.s32 %v4176_v1, %v6130_v6 }
 0x110   : > { %v4747_v48 = vmul.f32 -1.442695, %v6598_v47  ;;  %v5297_v52 = vpop.eup %5296  ;;  %v1037_v43 = vsel %vm6619_vm11, %v6455_v37, %v1033_v14  ;;  %v4193_v32 = vsub.s32 %v4159_v25, %v6130_v6  ;;  %v1107_v1 = vmul.f32 %v6587_v21, %v1106_v29  ;;  %v4126_v37 = vld [vmem:[%s361_s9] sm:$0xff] }
 0x111   : > { %v4748_v40 = vmul.f32 -1.442695, %v6605_v22  ;;  %v5299_v62 = vpop.eup %5298  ;;  %v6652_v45 = vadd.f32 1.0, %v5297_v52  ;;  %vm1054_vm14 = vcmp.eq.f32.partialorder %v1053_v51, 8.507059e+37  ;;  %v1042_v25 = vsel %vm1039_vm13, %v1041_v23, %v1037_v43 }
 0x112   : > { %5304 = vpow2.f32 %v4747_v48  ;;  %v1092_v48 = vmul.f32 %v6578_v46, %v1091_v39  ;;  %v6655_v55 = vadd.f32 1.0, %v5299_v62  ;;  %v6657_v28 = vpop.eup %5300  ;;  %v4209_v29 = vsub.s32 %v4175_v41, %v6130_v6 }
 0x113   : > { %5306 = vpow2.f32 %v4748_v40  ;;  %v1057_v40 = vsel %vm1054_vm14, %v1056_v57, %v1052_v0  ;;  %v5303_v49 = vpop.eup %5302  ;;  %v1100_v51 = vand.u32 2147483648, %v6511_v36  ;;  %v1108_v57 = vadd.f32 %v6587_v21, %v1107_v1 }
 0x114   : > { %5308 = vrcp.f32 %v6589_v26  ;;  %v1093_v23 = vadd.f32 %v6578_v46, %v1092_v48  ;;  %v1113_v41 = vand.u32 2147483647, %v6527_v10  ;;  %v6684_v62 = vadd.f32 1.0, %v5303_v49 }
 0x115   : > { %5310 = vrcp.f32 %v6624_v9  ;;  %v662_v14 = vpop.f32.mrf.mxu0  ;;  %v6700_v36 = vmul.f32 %v1057_v40, %v6265_v59  ;;  %v1101_v59 = vor.u32 1.1754944e-38, %v1100_v51  ;;  %v1130_v5 = vand.u32 2147483648, %v6624_v9 }
 0x116   : > { %5312 = vrcp.f32 %v6652_v45  ;;  %4279 = vperm.xlu0 %5223, %v4210_v56   ;;  %v711_v39 = vpop.f32.mrf.mxu1  ;;  %v1115_v56 = vand.u32 2147483648, %v6527_v10  ;;  %v6689_v1 = vadd.f32 %v662_v14, %v6113_v61  ;;  %vm1114_vm8 = vcmp.eq.f32.partialorder %v1113_v41, 8.507059e+37 }
 0x117   : > { %4129 = vperm.xlu1 %5224, %v4126_v37   ;;  %4228 = vperm.xlu2 %5225, %v4193_v32   ;;  %5314 = vrcp.f32 %v6655_v55  ;;  %v6692_v10 = vadd.f32 %v711_v39, %v6113_v61  ;;  %11015 = vst [vmem:[#allocation38_spill] sm:$0xff] %v6700_v36  ;;  %v1158_v4 = vand.u32 2147483647, %v6652_v45  ;;  %vm1154_vm9 = vweird.f32 %v6652_v45 }
 0x118   : > { %v5305_v52 = vpop.eup %5304  ;;  %v1116_v40 = vor.u32 1.1754944e-38, %v1115_v56  ;;  %vm1169_vm11 = vweird.f32 %v6655_v55  ;;  %vm1124_vm13 = vweird.f32 %v6624_v9 }
 0x119   : > { %v5307_v6 = vpop.eup %5306  ;;  %v6672_v43 = vadd.f32 1.0, %v5305_v52  ;;  %v6697_v52 = vmul.f32 %v1042_v25, %v6262_v58  ;;  %v1097_v58 = vsel %vm6680_vm4, %v6578_v46, %v1093_v23  ;;  %v1112_v25 = vsel %vm6708_vm6, %v6587_v21, %v1108_v57 }
 0x11a   : > { %v6674_v0 = vpop.eup %5308  ;;  %v6686_v48 = vadd.f32 1.0, %v5307_v6  ;;  %v4749_v46 = vmul.f32 -1.442695, %v6689_v1  ;;  %v4750_v51 = vmul.f32 -1.442695, %v6692_v10  ;;  %v1102_v57 = vsel %vm6702_vm5, %v1101_v59, %v1097_v58 }
 0x11b   : > { %v6694_v37 = vpop.eup %5310  ;;  %11014 = vst [vmem:[#allocation37_spill] sm:$0xff] %v6697_v52  ;;  %5316 = vrcp.f32 %v6672_v43  ;;  %v1117_v41 = vsel %vm1114_vm8, %v1116_v40, %v1112_v25  ;;  %v6746_v59 = vor.u32 1.1754944e-38, %v1130_v5  ;;  %v1160_v40 = vand.u32 2147483648, %v6652_v45 }
 0x11c   : > { %v6713_v61 = vpop.eup %5312  ;;  %5318 = vrcp.f32 %v6686_v48  ;;  %v1120_v32 = vmul.f32 %v6694_v37, %v6624_v9  ;;  %vm1125_vm10 = vweird.f32 %v6694_v37  ;;  %vm6771_vm12 = vcmp.eq.f32.partialorder %v1158_v4, 8.507059e+37 }
 0x11d   : > { %v1150_v39 = vmul.f32 %v6713_v61, %v6652_v45  ;;  %v664_v49 = vpop.f32.mrf.mxu0  ;;  %v6725_v6 = vpop.eup %5314  ;;  %5320 = vrcp.f32 %v6684_v62  ;;  %vm1155_vm14 = vweird.f32 %v6713_v61  ;;  %vm1184_vm4 = vweird.f32 %v6672_v43 }
 0x11e   : > { %4276 = vperm.xlu0 %5223, %v4209_v29   ;;  %v713_v21 = vpop.f32.mrf.mxu1  ;;  %v1165_v56 = vmul.f32 %v6725_v6, %v6655_v55  ;;  %5322 = vpow2.f32 %v4749_v46  ;;  %v6738_v31 = vadd.f32 %v664_v49, %v6135_v8  ;;  %v6756_v46 = vmul.f32 %v1102_v57, %v6402_v7  ;;  %vm6798_vm1 = vmor %vm1154_vm9, %vm1155_vm14 }
 0x11f   : > { %v1151_v14 = vsub.f32 1.0, %v1150_v39  ;;  %v6741_v29 = vadd.f32 %v713_v21, %v6135_v8  ;;  %5324 = vpow2.f32 %v4750_v51  ;;  %v6759_v21 = vmul.f32 %v1117_v41, %v6405_v3 }
 0x120   : > { %v1166_v58 = vsub.f32 1.0, %v1165_v56  ;;  %v4751_v49 = vmul.f32 -1.442695, %v6738_v31  ;;  %v1121_v5 = vsub.f32 1.0, %v1120_v32  ;;  %v1173_v7 = vand.u32 2147483647, %v6655_v55 }
 0x121   : > { %v6743_v42 = vpop.eup %5316  ;;  %v4752_v8 = vmul.f32 -1.442695, %v6741_v29  ;;  %v1152_v56 = vmul.f32 %v6713_v61, %v1151_v14  ;;  %v1161_v14 = vor.u32 1.1754944e-38, %v1160_v40  ;;  %vm1170_vm15 = vweird.f32 %v6725_v6 }
 0x122   : > { %v6748_v25 = vpop.eup %5318  ;;  %v1180_v39 = vmul.f32 %v6743_v42, %v6672_v43  ;;  %v1167_v23 = vmul.f32 %v6725_v6, %v1166_v58  ;;  %5326 = vpow2.f32 %v4751_v49  ;;  %v1175_v58 = vand.u32 2147483648, %v6655_v55  ;;  %vm6810_vm2 = vmor %vm1169_vm11, %vm1170_vm15 }
 0x123   : > { %v6762_v51 = vpop.eup %5320  ;;  %v1195_v19 = vmul.f32 %v6748_v25, %v6686_v48  ;;  %5328 = vpow2.f32 %v4752_v8  ;;  %v1153_v8 = vadd.f32 %v6713_v61, %v1152_v56  ;;  %vm6789_vm0 = vcmp.eq.f32.partialorder %v1173_v7, 8.507059e+37  ;;  %vm6855_vm11 = vmor %vm1124_vm13, %vm1125_vm10 }
 0x124   : > { %v1181_v3 = vsub.f32 1.0, %v1180_v39  ;;  %v5323_v41 = vpop.eup %5322  ;;  %v1188_v39 = vand.u32 2147483647, %v6672_v43  ;;  %v1168_v40 = vadd.f32 %v6725_v6, %v1167_v23  ;;  %v1122_v24 = vmul.f32 %v6694_v37, %v1121_v5 }
 0x125   : > { %v667_v57 = vpop.f32.mrf.mxu0  ;;  %v5325_v17 = vpop.eup %5324  ;;  %v6783_v4 = vadd.f32 1.0, %v5323_v41  ;;  %v1196_v30 = vsub.f32 1.0, %v1195_v19  ;;  %v1205_v19 = vand.u32 2147483648, %v6686_v48  ;;  %v1176_v45 = vor.u32 1.1754944e-38, %v1175_v58 }
 0x126   : > { %v6777_v60 = vadd.f32 %v667_v57, %v6091_v44  ;;  %v716_v49 = vpop.f32.mrf.mxu1  ;;  %v6787_v36 = vadd.f32 1.0, %v5325_v17  ;;  %v1182_v53 = vmul.f32 %v6743_v42, %v1181_v3  ;;  %v1190_v17 = vand.u32 2147483648, %v6672_v43 }
 0x127   : > { %5330 = vrcp.f32 %v6783_v4  ;;  %vm1199_vm5 = vweird.f32 %v6686_v48  ;;  %v1203_v3 = vand.u32 2147483647, %v6686_v48  ;;  %v1157_v41 = vsel %vm6798_vm1, %v6713_v61, %v1153_v8 }
 0x128   : > { %v5327_v27 = vpop.eup %5326  ;;  %5332 = vrcp.f32 %v6787_v36  ;;  %v4753_v23 = vmul.f32 -1.442695, %v6777_v60  ;;  %v1172_v52 = vsel %vm6810_vm2, %v6725_v6, %v1168_v40  ;;  %vm6823_vm6 = vcmp.eq.f32.partialorder %v1188_v39, 8.507059e+37 }
 0x129   : > { %v5329_v7 = vpop.eup %5328  ;;  %v1197_v58 = vmul.f32 %v6748_v25, %v1196_v30  ;;  %v1183_v2 = vadd.f32 %v6743_v42, %v1182_v53  ;;  %vm1185_vm8 = vweird.f32 %v6743_v42  ;;  %v6830_v35 = vadd.f32 1.0, %v5327_v27 }
 0x12a   : > { %v6833_v13 = vadd.f32 %v6694_v37, %v1122_v24  ;;  %v1191_v61 = vor.u32 1.1754944e-38, %v1190_v17  ;;  %v1206_v8 = vor.u32 1.1754944e-38, %v1205_v19  ;;  %v6835_v56 = vadd.f32 1.0, %v5329_v7 }
 0x12b   : > { %5334 = vpow2.f32 %v4753_v23  ;;  %v1162_v39 = vsel %vm6771_vm12, %v1161_v14, %v1157_v41  ;;  %v1177_v30 = vsel %vm6789_vm0, %v1176_v45, %v1172_v52  ;;  %vm6843_vm9 = vcmp.eq.f32.partialorder %v1203_v3, 8.507059e+37  ;;  %vm6865_vm12 = vmor %vm1184_vm4, %vm1185_vm8 }
 0x12c   : > { %5336 = vrcp.f32 %v6830_v35  ;;  %v6849_v27 = vadd.f32 %v716_v49, %v6091_v44  ;;  %v1198_v44 = vadd.f32 %v6748_v25, %v1197_v58  ;;  %vm1200_vm14 = vweird.f32 %v6748_v25 }
 0x12d   : > { %v6837_v6 = vpop.eup %5330  ;;  %5338 = vrcp.f32 %v6835_v56  ;;  %v669_v49 = vpop.f32.mrf.mxu0  ;;  %v1187_v57 = vsel %vm6865_vm12, %v6743_v42, %v1183_v2  ;;  %v6885_v19 = vmul.f32 %v6762_v51, %v6684_v62  ;;  %v6888_v23 = vmul.f32 %v1162_v39, %v6552_v63  ;;  %vm6896_vm10 = vmor %vm1199_vm5, %vm1200_vm14 }
 0x12e   : > { %v6859_v32 = vpop.eup %5332  ;;  %v1210_v14 = vmul.f32 %v6837_v6, %v6783_v4  ;;  %v718_v40 = vpop.f32.mrf.mxu1  ;;  %v6891_v7 = vmul.f32 %v1177_v30, %v6563_v16  ;;  %v1218_v2 = vand.u32 2147483647, %v6783_v4  ;;  %vm1214_vm13 = vweird.f32 %v6783_v4 }
 0x12f   : > { %v1225_v43 = vmul.f32 %v6859_v32, %v6787_v36  ;;  %v4754_v3 = vmul.f32 -1.442695, %v6849_v27  ;;  %v6903_v63 = vadd.f32 %v669_v49, %v6099_v50  ;;  %v6906_v16 = vadd.f32 %v718_v40, %v6099_v50 }
 0x130   : > { %v1211_v5 = vsub.f32 1.0, %v1210_v14  ;;  %v1192_v58 = vsel %vm6823_vm6, %v1191_v61, %v1187_v57  ;;  %v1202_v48 = vsel %vm6896_vm10, %v6748_v25, %v1198_v44  ;;  %v1220_v39 = vand.u32 2147483648, %v6783_v4 }
 0x131   : > { %v1226_v45 = vsub.f32 1.0, %v1225_v43  ;;  %v5335_v41 = vpop.eup %5334  ;;  %vm1229_vm15 = vweird.f32 %v6787_v36  ;;  %v1233_v52 = vand.u32 2147483647, %v6787_v36  ;;  %5340 = vpow2.f32 %v4754_v3 }
 0x132   : > { %v6915_v30 = vpop.eup %5336  ;;  %v6918_v14 = vadd.f32 1.0, %v5335_v41  ;;  %v4755_v50 = vmul.f32 -1.442695, %v6903_v63  ;;  %v1212_v55 = vmul.f32 %v6837_v6, %v1211_v5  ;;  %v4756_v44 = vmul.f32 -1.442695, %v6906_v16 }
 0x133   : > { %v6921_v49 = vpop.eup %5338  ;;  %v1227_v61 = vmul.f32 %v6859_v32, %v1226_v45  ;;  %v1240_v25 = vmul.f32 %v6915_v30, %v6830_v35  ;;  %v6929_v40 = vmul.f32 %v1192_v58, %v6598_v47  ;;  %v1235_v57 = vand.u32 2147483648, %v6787_v36 }
 0x134   : > { %v1255_v43 = vmul.f32 %v6921_v49, %v6835_v56  ;;  %5342 = vrcp.f32 %v6918_v14  ;;  %v1207_v5 = vsel %vm6843_vm9, %v1206_v8, %v1202_v48  ;;  %vm6937_vm0 = vcmp.eq.f32.partialorder %v1218_v2, 8.507059e+37 }
 0x135   : > { %v1241_v45 = vsub.f32 1.0, %v1240_v25  ;;  %5344 = vpow2.f32 %v4755_v50  ;;  %vm1215_vm1 = vweird.f32 %v6837_v6  ;;  %v1221_v47 = vor.u32 1.1754944e-38, %v1220_v39 }
 0x136   : > { %v1256_v3 = vsub.f32 1.0, %v1255_v43  ;;  %5346 = vpow2.f32 %v4756_v44  ;;  %v1213_v41 = vadd.f32 %v6837_v6, %v1212_v55  ;;  %v1228_v58 = vadd.f32 %v6859_v32, %v1227_v61  ;;  %vm6956_vm5 = vmor %vm1214_vm13, %vm1215_vm1 }
 0x137   : > { %vm1230_vm2 = vweird.f32 %v6859_v32  ;;  %v1242_v53 = vmul.f32 %v6915_v30, %v1241_v45  ;;  %v5341_v8 = vpop.eup %5340  ;;  %v6947_v2 = vmul.f32 %v1207_v5, %v6605_v22  ;;  %vm6949_vm4 = vcmp.eq.f32.partialorder %v1233_v52, 8.507059e+37 }
 0x138   : > { %v1236_v50 = vor.u32 1.1754944e-38, %v1235_v57  ;;  %v1257_v39 = vmul.f32 %v6921_v49, %v1256_v3  ;;  %vm1245_vm6 = vweird.f32 %v6915_v30  ;;  %v1250_v22 = vand.u32 2147483648, %v6830_v35  ;;  %vm6975_vm9 = vmor %vm1229_vm15, %vm1230_vm2 }
 0x139   : > { %v1243_v61 = vadd.f32 %v6915_v30, %v1242_v53  ;;  %v6963_v25 = vadd.f32 1.0, %v5341_v8  ;;  %v11044_v52 = vand.u32 2147483647, %v6624_v9  ;;  %vm1244_vm12 = vweird.f32 %v6830_v35 }
 0x13a   : > { %v6971_v57 = vpop.eup %5342  ;;  %v1248_v43 = vand.u32 2147483647, %v6830_v35  ;;  %vm1259_vm14 = vweird.f32 %v6835_v56  ;;  %v1263_v9 = vand.u32 2147483647, %v6835_v56  ;;  %v1217_v45 = vsel %vm6956_vm5, %v6837_v6, %v1213_v41  ;;  %vm6994_vm10 = vmor %vm1244_vm12, %vm1245_vm6 }
 0x13b   : > { %vm6967_vm8 = vcmp.eq.f32.partialorder %v11044_v52, 8.507059e+37  ;;  %v5345_v5 = vpop.eup %5344  ;;  %v1232_v36 = vsel %vm6975_vm9, %v6859_v32, %v1228_v58  ;;  %5348 = vrcp.f32 %v6963_v25  ;;  %v1270_v3 = vmul.f32 %v6971_v57, %v6918_v14 }
 0x13c   : > { %v5347_v53 = vpop.eup %5346  ;;  %v1258_v8 = vadd.f32 %v6921_v49, %v1257_v39  ;;  %vm1260_vm13 = vweird.f32 %v6921_v49  ;;  %v1265_v6 = vand.u32 2147483648, %v6835_v56  ;;  %v7001_v41 = vadd.f32 1.0, %v5345_v5 }
 0x13d   : > { %v1247_v32 = vsel %vm6994_vm10, %v6915_v30, %v1243_v61  ;;  %v1251_v58 = vor.u32 1.1754944e-38, %v1250_v22  ;;  %v7006_v55 = vadd.f32 1.0, %v5347_v53  ;;  %v1271_v52 = vsub.f32 1.0, %v1270_v3  ;;  %vm7016_vm1 = vmor %vm1259_vm14, %vm1260_vm13 }
 0x13e   : > { %v1222_v4 = vsel %vm6937_vm0, %v1221_v47, %v1217_v45  ;;  %v1237_v39 = vsel %vm6949_vm4, %v1236_v50, %v1232_v36  ;;  %5350 = vrcp.f32 %v7001_v41  ;;  %v1278_v17 = vand.u32 2147483647, %v6918_v14 }
 0x13f   : > { %vm1249_vm15 = vcmp.eq.f32.partialorder %v1248_v43, 8.507059e+37  ;;  %vm7020_vm2 = vcmp.eq.f32.partialorder %v1263_v9, 8.507059e+37  ;;  %5352 = vrcp.f32 %v7006_v55  ;;  %v1280_v42 = vand.u32 2147483648, %v6918_v14 }
 0x140   : > { %v1252_v47 = vsel %vm1249_vm15, %v1251_v58, %v1247_v32  ;;  %v1262_v48 = vsel %vm7016_vm1, %v6921_v49, %v1258_v8  ;;  %v1266_v50 = vor.u32 1.1754944e-38, %v1265_v6  ;;  %v1272_v56 = vmul.f32 %v6971_v57, %v1271_v52 }
 0x141   : > { %v5349_v61 = vpop.eup %5348  ;;  %v7031_v22 = vmul.f32 %v1222_v4, %v6689_v1  ;;  %v7034_v43 = vmul.f32 %v1237_v39, %v6692_v10  ;;  %vm1274_vm0 = vweird.f32 %v6918_v14  ;;  %v1388_v9 = vpack.c.bf16 %v6929_v40, %v6888_v23 }
 0x142   : > { %vm1275_vm4 = vweird.f32 %v6971_v57  ;;  %vm7040_vm5 = vcmp.eq.f32.partialorder %v1278_v17, 8.507059e+37  ;;  %v1285_v49 = vmul.f32 %v5349_v61, %v6963_v25  ;;  %v11057_v1 = vsel %vm6855_vm11, %v6694_v37, %v6833_v13 }
 0x143   : > { %v7053_v10 = vsel %vm6967_vm8, %v6746_v59, %v11057_v1  ;;  %v7056_v36 = vmul.f32 %v1252_v47, %v6738_v31  ;;  %v1267_v17 = vsel %vm7020_vm2, %v1266_v50, %v1262_v48  ;;  %v1281_v3 = vor.u32 1.1754944e-38, %v1280_v42  ;;  %vm7074_vm12 = vmor %vm1274_vm0, %vm1275_vm4 }
 0x144   : > { %v1308_v53 = vand.u32 2147483647, %v7001_v41  ;;  %v5351_v35 = vpop.eup %5350  ;;  %v1273_v24 = vadd.f32 %v6971_v57, %v1272_v56  ;;  %vm1304_vm6 = vweird.f32 %v7001_v41  ;;  %v1310_v13 = vand.u32 2147483648, %v7001_v41 }
 0x145   : > { %v1286_v37 = vsub.f32 1.0, %v1285_v49  ;;  %v5353_v44 = vpop.eup %5352  ;;  %v1300_v59 = vmul.f32 %v5351_v35, %v7001_v41  ;;  %vm1289_vm11 = vweird.f32 %v6963_v25  ;;  %v1293_v31 = vand.u32 2147483647, %v6963_v25 }
 0x146   : > { %v1295_v8 = vand.u32 2147483648, %v6963_v25  ;;  %vm1290_vm8 = vweird.f32 %v5349_v61  ;;  %v1315_v32 = vmul.f32 %v5353_v44, %v7006_v55  ;;  %vm1319_vm9 = vweird.f32 %v7006_v55 }
 0x147   : > { %v1287_v6 = vmul.f32 %v5349_v61, %v1286_v37  ;;  %v1301_v52 = vsub.f32 1.0, %v1300_v59  ;;  %vm7078_vm14 = vcmp.eq.f32.partialorder %v1308_v53, 8.507059e+37  ;;  %v1323_v39 = vand.u32 2147483647, %v7006_v55  ;;  %vm7091_vm13 = vmor %vm1289_vm11, %vm1290_vm8 }
 0x148   : > { %v1325_v5 = vand.u32 2147483648, %v7006_v55  ;;  %v1277_v30 = vsel %vm7074_vm12, %v6971_v57, %v1273_v24  ;;  %v1316_v47 = vsub.f32 1.0, %v1315_v32  ;;  %v1136_v14 = vsub.f32 1.0, %v6885_v19 }
 0x149   : > { %v1288_v42 = vadd.f32 %v5349_v61, %v1287_v6  ;;  %v1302_v48 = vmul.f32 %v5351_v35, %v1301_v52  ;;  %vm1305_vm10 = vweird.f32 %v5351_v35  ;;  %v1311_v50 = vor.u32 1.1754944e-38, %v1310_v13 }
 0x14a   : > { %vm1294_vm15 = vcmp.eq.f32.partialorder %v1293_v31, 8.507059e+37  ;;  %v1317_v1 = vmul.f32 %v5353_v44, %v1316_v47  ;;  %vm1320_vm1 = vweird.f32 %v5353_v44  ;;  %v1137_v57 = vmul.f32 %v6762_v51, %v1136_v14  ;;  %vm1306_vm2 = vmor %vm1304_vm6, %vm1305_vm10 }
 0x14b   : > { %v1292_v49 = vsel %vm7091_vm13, %v5349_v61, %v1288_v42  ;;  %v1282_v19 = vsel %vm7040_vm5, %v1281_v3, %v1277_v30  ;;  %v1303_v53 = vadd.f32 %v5351_v35, %v1302_v48  ;;  %v1296_v24 = vor.u32 1.1754944e-38, %v1295_v8  ;;  %vm1321_vm4 = vmor %vm1319_vm9, %vm1320_vm1 }
 0x14c   : > { %v1326_v13 = vor.u32 1.1754944e-38, %v1325_v5  ;;  %v1318_v25 = vadd.f32 %v5353_v44, %v1317_v1  ;;  %v1138_v37 = vadd.f32 %v6762_v51, %v1137_v57  ;;  %vm1140_vm0 = vweird.f32 %v6762_v51 }
 0x14d   : > { %v1060_v61 = vmul.f32 %v6657_v28, %v6585_v54  ;;  %v1307_v59 = vsel %vm1306_vm2, %v5351_v35, %v1303_v53  ;;  %v1297_v31 = vsel %vm1294_vm15, %v1296_v24, %v1292_v49  ;;  %v1143_v45 = vand.u32 2147483647, %v6684_v62 }
 0x14e   : > { %v1145_v3 = vand.u32 2147483648, %v6684_v62  ;;  %v1312_v41 = vsel %vm7078_vm14, %v1311_v50, %v1307_v59  ;;  %v1322_v8 = vsel %vm1321_vm4, %v5353_v44, %v1318_v25  ;;  %vm1324_vm5 = vcmp.eq.f32.partialorder %v1323_v39, 8.507059e+37  ;;  %v11069_v59 = vld [vmem:[#allocation15_spill] sm:$0xff] }
 0x14f   : > { %vm1139_vm6 = vweird.f32 %v6684_v62  ;;  %v1356_v6 = vmul.f32 %v1267_v17, %v6741_v29  ;;  %v1357_v32 = vmul.f32 %v1282_v19, %v6777_v60  ;;  %v1359_v35 = vmul.f32 %v1312_v41, %v6903_v63  ;;  %v11082_v50 = vld [vmem:[#allocation35_spill] sm:$0xff] }
 0x150   : > { %v1327_v58 = vsel %vm1324_vm5, %v1326_v13, %v1322_v8  ;;  %vm7118_vm11 = vmor %vm1139_vm6, %vm1140_vm0  ;;  %v1358_v52 = vmul.f32 %v1297_v31, %v6849_v27  ;;  %v1061_v29 = vsub.f32 1.0, %v1060_v61  ;;  %vm1144_vm8 = vcmp.eq.f32.partialorder %v1143_v45, 8.507059e+37  ;;  %v11074_v8 = vld [vmem:[#allocation37_spill] sm:$0xff] }
 0x151   : > { %v1360_v44 = vmul.f32 %v1327_v58, %v6906_v16  ;;  %v1142_v62 = vsel %vm7118_vm11, %v6762_v51, %v1138_v37  ;;  %v1392_v17 = vpack.c.bf16 %v1359_v35, %v1357_v32  ;;  %v1146_v60 = vor.u32 1.1754944e-38, %v1145_v3  ;;  %v11068_v37 = vld [vmem:[#allocation30_spill] sm:$0xff] }
 0x152   : > { %v1075_v63 = vmul.f32 %v6674_v0, %v6589_v26  ;;  %v1062_v39 = vmul.f32 %v6657_v28, %v1061_v29  ;;  %vm1065_vm9 = vweird.f32 %v6657_v28  ;;  %v1070_v27 = vand.u32 2147483648, %v6585_v54  ;;  %v11076_v29 = vld [vmem:[#allocation27_spill] sm:$0xff] }
 0x153   : > { %v1393_v4 = vpack.c.bf16 %v1360_v44, %v1358_v52  ;;  %1539 = vmatpush.bf16.msra.mxu2 %v1392_v17  ;;  %v1390_v16 = vpack.c.bf16 %v7056_v36, %v7031_v22  ;;  %v1147_v5 = vsel %vm1144_vm8, %v1146_v60, %v1142_v62  ;;  %v1068_v51 = vand.u32 2147483647, %v6585_v54  ;;  %v11075_v44 = vld [vmem:[#allocation19_spill] sm:$0xff]  ;;  %v11077_v17 = vld [vmem:[#allocation33_spill] sm:$0xff] }
 0x154   : > { %v1076_v30 = vsub.f32 1.0, %v1075_v63  ;;  %v1347_v42 = vmul.f32 %v7053_v10, %v6473_v11  ;;  %v1063_v47 = vadd.f32 %v6657_v28, %v1062_v39  ;;  %vm1064_vm12 = vweird.f32 %v6585_v54  ;;  %v11078_v63 = vld [vmem:[#allocation38_spill] sm:$0xff] }
 0x155   : > { %1588 = vmatpush.bf16.msra.mxu3 %v1393_v4  ;;  %v1000_v14 = vmul.f32 %v6549_v38, %v6448_v34  ;;  %v1391_v48 = vpack.c.bf16 %v1356_v6, %v7034_v43  ;;  %vm7142_vm14 = vmor %vm1064_vm12, %vm1065_vm9  ;;  %vm1080_vm10 = vweird.f32 %v6674_v0  ;;  %v1085_v36 = vand.u32 2147483648, %v6589_v26 }
 0x156   : > { %v1077_v22 = vmul.f32 %v6674_v0, %v1076_v30  ;;  %v1348_v11 = vmul.f32 %v1147_v5, %v6560_v20  ;;  %v1067_v54 = vsel %vm7142_vm14, %v6657_v28, %v1063_v47  ;;  %v1071_v10 = vor.u32 1.1754944e-38, %v1070_v27  ;;  %v11080_v47 = vld [vmem:[#allocation17_spill] sm:$0xff] }
 0x157   : > { %v1083_v56 = vand.u32 2147483647, %v6589_v26  ;;  %1540 = vmatpush.bf16.msra.mxu2 %v1390_v16  ;;  %v1389_v43 = vpack.c.bf16 %v6947_v2, %v6891_v7  ;;  %vm1069_vm13 = vcmp.eq.f32.partialorder %v1068_v51, 8.507059e+37  ;;  %vm1079_vm15 = vweird.f32 %v6589_v26  ;;  %v11079_v16 = vld [vmem:[#allocation22_spill] sm:$0xff] }
 0x158   : > { %v1078_v49 = vadd.f32 %v6674_v0, %v1077_v22  ;;  %v1386_v1 = vpack.c.bf16 %v1347_v42, %v6756_v46  ;;  %v1072_v20 = vsel %vm1069_vm13, %v1071_v10, %v1067_v54  ;;  %vm1081_vm1 = vmor %vm1079_vm15, %vm1080_vm10  ;;  %v1001_v57 = vsub.f32 1.0, %v1000_v14  ;;  %v11081_v14 = vld [vmem:[#allocation25_spill] sm:$0xff]  ;;  %v11084_v10 = vld [vmem:[#allocation20_spill] sm:$0xff] }
 0x159   : > { %1589 = vmatpush.bf16.msra.mxu3 %v1391_v48  ;;  %v1008_v28 = vand.u32 2147483647, %v6448_v34  ;;  %v1086_v53 = vor.u32 1.1754944e-38, %v1085_v36  ;;  %v1010_v24 = vand.u32 2147483648, %v6448_v34  ;;  %v1015_v7 = vmul.f32 %v6572_v12, %v6480_v15  ;;  %v5145_v54 = vld [vmem:[%s6038_s25 + $0x60] sm:$0xff] }
 0x15a   : > { %v1082_v19 = vsel %vm1081_vm1, %v6674_v0, %v1078_v49  ;;  %v1387_v2 = vpack.c.bf16 %v1348_v11, %v6759_v21  ;;  %vm1084_vm2 = vcmp.eq.f32.partialorder %v1083_v56, 8.507059e+37  ;;  %v1002_v26 = vmul.f32 %v6549_v38, %v1001_v57  ;;  %v11085_v56 = vld [vmem:[#allocation32_spill] sm:$0xff] }
 0x15b   : > { %vm1005_vm0 = vweird.f32 %v6549_v38  ;;  %1541 = vmatpush.bf16.msra.mxu2 %v1388_v9  ;;  %v1343_v46 = vmul.f32 %v1072_v20, %v6425_v33  ;;  %v1087_v0 = vsel %vm1084_vm2, %v1086_v53, %v1082_v19  ;;  %vm1004_vm4 = vweird.f32 %v6448_v34  ;;  %v11073_v9 = vld [vmem:[#allocation29_spill] sm:$0xff]  ;;  %v11087_v49 = vld [vmem:[#allocation28_spill] sm:$0xff] }
 0x15c   : > { %v1016_v13 = vsub.f32 1.0, %v1015_v7  ;;  %v1003_v25 = vadd.f32 %v6549_v38, %v1002_v26  ;;  %vm1009_vm5 = vcmp.eq.f32.partialorder %v1008_v28, 8.507059e+37  ;;  %v1025_v21 = vand.u32 2147483648, %v6480_v15  ;;  %vm1006_vm11 = vmor %vm1004_vm4, %vm1005_vm0  ;;  %v11088_v20 = vld [vmem:[#allocation36_spill] sm:$0xff]  ;;  %v11089_v28 = vld [vmem:[#allocation14_spill] sm:$0xff] }
 0x15d   : > { %1590 = vmatpush.bf16.msra.mxu3 %v1389_v43  ;;  %v940_v61 = vmul.f32 %v11068_v37, %v6360_v18  ;;  %v11070_v31 = vand.u32 2147483647, %v11069_v59  ;;  %v1011_v33 = vor.u32 1.1754944e-38, %v1010_v24  ;;  %vm1020_vm8 = vweird.f32 %v6572_v12 }
 0x15e   : > { %v1017_v34 = vmul.f32 %v6572_v12, %v1016_v13  ;;  %v1023_v40 = vand.u32 2147483647, %v6480_v15  ;;  %v1344_v45 = vmul.f32 %v1087_v0, %v11073_v9  ;;  %v1007_v3 = vsel %vm1006_vm11, %v6549_v38, %v1003_v25  ;;  %v11090_v0 = vld [vmem:[#allocation18_spill] sm:$0xff] }
 0x15f   : > { %vm7178_vm6 = vcmp.eq.f32.partialorder %v11070_v31, 8.507059e+37  ;;  %vm1019_vm9 = vweird.f32 %v6480_v15  ;;  %v941_v41 = vsub.f32 1.0, %v940_v61  ;;  %1542 = vmatpush.bf16.msra.mxu2 %v1386_v1  ;;  %v1384_v6 = vpack.c.bf16 %v1343_v46, %v11074_v8  ;;  %v11091_v13 = vld [vmem:[#allocation26_spill] sm:$0xff]  ;;  %v11093_v61 = vld [vmem:[#allocation31_spill] sm:$0xff] }
 0x160   : > { %v1012_v32 = vsel %vm1009_vm5, %v1011_v33, %v1007_v3  ;;  %v1018_v35 = vadd.f32 %v6572_v12, %v1017_v34  ;;  %v948_v58 = vand.u32 2147483647, %v6360_v18  ;;  %vm1021_vm12 = vmor %vm1019_vm9, %vm1020_vm8  ;;  %v1026_v55 = vor.u32 1.1754944e-38, %v1025_v21  ;;  %v11092_v21 = vld [vmem:[#allocation9_spill] sm:$0xff] }
 0x161   : > { %1591 = vmatpush.bf16.msra.mxu3 %v1387_v2  ;;  %v942_v52 = vmul.f32 %v11068_v37, %v941_v41  ;;  %vm945_vm14 = vweird.f32 %v11068_v37  ;;  %v950_v38 = vand.u32 2147483648, %v6360_v18  ;;  %v1339_v15 = vmul.f32 %v1012_v32, %v11075_v44  ;;  %v11095_v32 = vld [vmem:[#allocation10_spill] sm:$0xff]  ;;  %v11098_v44 = vld [vmem:[#allocation7_spill] sm:$0xff] }
 0x162   : > { %v1022_v62 = vsel %vm1021_vm12, %v6572_v12, %v1018_v35  ;;  %vm1024_vm10 = vcmp.eq.f32.partialorder %v1023_v40, 8.507059e+37  ;;  %v955_v60 = vmul.f32 %v11077_v17, %v11076_v29  ;;  %v1385_v4 = vpack.c.bf16 %v1344_v45, %v11078_v63  ;;  %v11094_v40 = vld [vmem:[#allocation16_spill] sm:$0xff] }
 0x163   : > { %v1027_v39 = vsel %vm1024_vm10, %v1026_v55, %v1022_v62  ;;  %v943_v27 = vadd.f32 %v11068_v37, %v942_v52  ;;  %vm944_vm13 = vweird.f32 %v6360_v18  ;;  %1543 = vmatpush.bf16.msra.mxu2 %v1384_v6  ;;  %vm949_vm1 = vcmp.eq.f32.partialorder %v948_v58, 8.507059e+37 }
 0x164   : > { %v1340_v5 = vmul.f32 %v1027_v39, %v11079_v16  ;;  %vm946_vm15 = vmor %vm944_vm13, %vm945_vm14  ;;  %v951_v51 = vor.u32 1.1754944e-38, %v950_v38  ;;  %v956_v30 = vsub.f32 1.0, %v955_v60  ;;  %vm960_vm2 = vweird.f32 %v11077_v17  ;;  %v11103_v39 = vld [vmem:[#allocation21_spill] sm:$0xff] }
 0x165   : > { %1592 = vmatpush.bf16.msra.mxu3 %v1385_v4  ;;  %v947_v12 = vsel %vm946_vm15, %v11068_v37, %v943_v27  ;;  %v965_v42 = vand.u32 2147483648, %v11076_v29  ;;  %v880_v48 = vmul.f32 %v11081_v14, %v11080_v47  ;;  %v1382_v22 = vpack.c.bf16 %v1339_v15, %v11082_v50  ;;  %v11099_v15 = vld [vmem:[#allocation23_spill] sm:$0xff]  ;;  %v11102_v4 = vld [vmem:[#allocation13_spill] sm:$0xff] }
 0x166   : > { %v952_v18 = vsel %vm949_vm1, %v951_v51, %v947_v12  ;;  %v957_v36 = vmul.f32 %v11077_v17, %v956_v30  ;;  %v963_v11 = vand.u32 2147483647, %v11076_v29  ;;  %v11086_v43 = vsel %vm6504_vm3, %v11084_v10, %v11085_v56  ;;  %v5146_v10 = vld [vmem:[%s6038_s25 + $0x68] sm:$0xff]  ;;  %v5147_v56 = vld [vmem:[%s6038_s25 + $0x70] sm:$0xff] }
 0x167   : > { %v937_v1 = vsel %vm7178_vm6, %v11087_v49, %v11086_v43  ;;  %v1383_v57 = vpack.c.bf16 %v1340_v5, %v11088_v20  ;;  %v1335_v19 = vmul.f32 %v952_v18, %v11089_v28  ;;  %v881_v53 = vsub.f32 1.0, %v880_v48  ;;  %1544 = vmatpush.bf16.msra.mxu2 %v1382_v22  ;;  %v11106_v48 = vld [vmem:[#allocation12_spill] sm:$0xff]  ;;  %v5142_v18 = vld [vmem:[%s6038_s25 + $0x48] sm:$0xff]  ;;  %v7267_v43 = vpop.permute.xlu0 %1473 }
 0x168   : > { %v958_v24 = vadd.f32 %v11077_v17, %v957_v36  ;;  %vm959_vm0 = vweird.f32 %v11076_v29  ;;  %vm885_vm4 = vweird.f32 %v11081_v14  ;;  %v888_v7 = vand.u32 2147483647, %v11080_v47  ;;  %v11100_v29 = vld [vmem:[#allocation11_spill] sm:$0xff]  ;;  %v5148_v49 = vld [vmem:[%s6038_s25 + $0x78] sm:$0xff] }
 0x169   : > { %1593 = vmatpush.bf16.msra.mxu3 %v1383_v57  ;;  %vm961_vm3 = vmor %vm959_vm0, %vm960_vm2  ;;  %v966_v2 = vor.u32 1.1754944e-38, %v965_v42  ;;  %v882_v26 = vmul.f32 %v11081_v14, %v881_v53  ;;  %v890_v46 = vand.u32 2147483648, %v11080_v47  ;;  %v895_v25 = vmul.f32 %v11091_v13, %v11090_v0  ;;  %v5141_v42 = vld [vmem:[%s6038_s25 + $0x40] sm:$0xff]  ;;  %v5143_v36 = vld [vmem:[%s6038_s25 + $0x50] sm:$0xff] }
 0x16a   : > { %v1334_v37 = vmul.f32 %v937_v1, %v11092_v21  ;;  %v1380_v59 = vpack.c.bf16 %v1335_v19, %v11093_v61  ;;  %v962_v31 = vsel %vm961_vm3, %v11077_v17, %v958_v24  ;;  %vm964_vm5 = vcmp.eq.f32.partialorder %v963_v11, 8.507059e+37  ;;  %v5144_v11 = vld [vmem:[%s6038_s25 + $0x58] sm:$0xff]  ;;  %v7270_v1 = vpop.permute.xlu1 %1483 }
 0x16b   : > { %v967_v23 = vsel %vm964_vm5, %v966_v2, %v962_v31  ;;  %v883_v33 = vadd.f32 %v11081_v14, %v882_v26  ;;  %vm884_vm6 = vweird.f32 %v11080_v47  ;;  %v896_v34 = vsub.f32 1.0, %v895_v25  ;;  %v11105_v47 = vld [vmem:[#allocation8_spill] sm:$0xff]  ;;  %v7282_v26 = vpop.permute.xlu2 %1488 }
 0x16c   : > { %1545 = vmatpush.bf16.msra.mxu2 %v1380_v59  ;;  %v1336_v9 = vmul.f32 %v967_v23, %v11094_v40  ;;  %vm886_vm11 = vmor %vm884_vm6, %vm885_vm4  ;;  %vm889_vm8 = vcmp.eq.f32.partialorder %v888_v7, 8.507059e+37  ;;  %v891_v45 = vor.u32 1.1754944e-38, %v890_v46  ;;  %v905_v3 = vand.u32 2147483648, %v11090_v0 }
 0x16d   : > { %v887_v41 = vsel %vm886_vm11, %v11081_v14, %v883_v33  ;;  %v897_v8 = vmul.f32 %v11091_v13, %v896_v34  ;;  %vm900_vm9 = vweird.f32 %v11091_v13  ;;  %v903_v6 = vand.u32 2147483647, %v11090_v0 }
 0x16e   : > { %v11096_v35 = vand.u32 2147483647, %v11095_v32  ;;  %v11097_v58 = vand.u32 2147483648, %v11095_v32  ;;  %v1381_v52 = vpack.c.bf16 %v1336_v9, %v1334_v37  ;;  %v892_v38 = vsel %vm889_vm8, %v891_v45, %v887_v41 }
 0x16f   : > { %v1329_v62 = vmul.f32 %v11099_v15, %v11098_v44  ;;  %v1331_v17 = vmul.f32 %v892_v38, %v11100_v29  ;;  %v898_v60 = vadd.f32 %v11091_v13, %v897_v8  ;;  %vm899_vm14 = vweird.f32 %v11090_v0  ;;  %v7272_v20 = vpop.permute.xlu0 %1468 }
 0x170   : > { %vm874_vm12 = vcmp.eq.f32.partialorder %v11096_v35, 8.507059e+37  ;;  %v876_v55 = vor.u32 1.1754944e-38, %v11097_v58  ;;  %v11104_v27 = vsel %vm6356_vm7, %v11102_v4, %v11103_v39  ;;  %1594 = vmatpush.bf16.msra.mxu3 %v1381_v52  ;;  %vm901_vm10 = vmor %vm899_vm14, %vm900_vm9  ;;  %v906_v5 = vor.u32 1.1754944e-38, %v905_v3 }
 0x171   : > { %v1378_v51 = vpack.c.bf16 %v1331_v17, %v1329_v62  ;;  %v902_v30 = vsel %vm901_vm10, %v11091_v13, %v898_v60  ;;  %vm904_vm13 = vcmp.eq.f32.partialorder %v903_v6, 8.507059e+37 }
 0x172   : > { %v877_v16 = vsel %vm874_vm12, %v876_v55, %v11104_v27  ;;  %v907_v12 = vsel %vm904_vm13, %v906_v5, %v902_v30  ;;  %v7274_v57 = vpop.permute.xlu1 %1478 }
 0x173   : > { %v1330_v14 = vmul.f32 %v877_v16, %v11105_v47  ;;  %1546 = vmatpush.bf16.msra.mxu2 %v1378_v51  ;;  %v1332_v50 = vmul.f32 %v907_v12, %v11106_v48  ;;  %v7288_v37 = vpop.permute.xlu2 %1463 }
 0x175   : > { %v1379_v22 = vpack.c.bf16 %v1332_v50, %v1330_v14 }
 0x176   : > { %1547 = vmatmul.bf16.vlgmr.msra.gmra.mxu2 %v5141_v42 }
 0x177   : > { %1595 = vmatpush.bf16.msra.mxu3 %v1379_v22  ;;  %v7276_v28 = vpop.permute.xlu0 %1443 }
 0x17a   : > { %1596 = vmatmul.bf16.vlgmr.msra.gmra.mxu3 %v5141_v42  ;;  %v7278_v24 = vpop.permute.xlu1 %1453 }
 0x17b   : > { %v7296_v3 = vpop.permute.xlu2 %1458 }
 0x17f   : > { %v7280_v7 = vpop.permute.xlu0 %1438 }
 0x182   : > { %v7284_v0 = vpop.permute.xlu1 %1448 }
 0x183   : > { %v1434_v38 = vpop.permute.xlu2 %1433 }
 0x186   : > { %1552 = vmatmul.bf16.gmra.mxu2 %v5142_v18 }
 0x187   : > { %v1414_v13 = vpop.permute.xlu0 %1413 }
 0x18a   : > { %1601 = vmatmul.bf16.gmra.mxu3 %v5142_v18  ;;  %v1424_v23 = vpop.permute.xlu1 %1423 }
 0x18b   : > { %v1429_v50 = vpop.permute.xlu2 %1428 }
 0x192   : > { %v1419_v63 = vpop.permute.xlu1 %1418 }
 0x196   : > { %1557 = vmatmul.bf16.gmra.mxu2 %v5143_v36 }
 0x19a   : > { %1606 = vmatmul.bf16.gmra.mxu3 %v5143_v36 }
 0x1a6   : > { %1562 = vmatmul.bf16.gmra.mxu2 %v5144_v11 }
 0x1aa   : > { %1611 = vmatmul.bf16.gmra.mxu3 %v5144_v11 }
 0x1b6   : > { %1567 = vmatmul.bf16.gmra.mxu2 %v5145_v54 }
 0x1ba   : > { %1616 = vmatmul.bf16.gmra.mxu3 %v5145_v54 }
 0x1c6   : > { %1572 = vmatmul.bf16.gmra.mxu2 %v5146_v10 }
 0x1ca   : > { %1621 = vmatmul.bf16.gmra.mxu3 %v5146_v10 }
 0x1d6   : > { %1577 = vmatmul.bf16.gmra.mxu2 %v5147_v56 }
 0x1da   : > { %1626 = vmatmul.bf16.gmra.mxu3 %v5147_v56 }
 0x1e6   : > { %1582 = vmatmul.bf16.gmra.mxu2 %v5148_v49 }
 0x1ea   : > { %1631 = vmatmul.bf16.gmra.mxu3 %v5148_v49 }
 0x1f9   : > { %v1548_v19 = vpop.f32.mrf.mxu2 }
 0x1fa   : > { %v7286_v25 = vadd.f32 %v1548_v19, %v1414_v13 }
 0x1fc   : > { %v4821_v61 = vmul.f32 -1.442695, %v7286_v25 }
 0x1fd   : > { %v1597_v53 = vpop.f32.mrf.mxu3 }
 0x1fe   : > { %5354 = vpow2.f32 %v4821_v61  ;;  %v7291_v33 = vadd.f32 %v1597_v53, %v1414_v13 }
 0x200   : > { %11107 = vst [vmem:[#allocation30_spill] sm:$0xff] %v7291_v33  ;;  %v4822_v9 = vmul.f32 -1.442695, %v7291_v33 }
 0x201   : > { %v1550_v2 = vpop.f32.mrf.mxu2 }
 0x202   : > { %5356 = vpow2.f32 %v4822_v9  ;;  %v7319_v16 = vadd.f32 %v1550_v2, %v1419_v63 }
 0x204   : > { %v5355_v45 = vpop.eup %5354  ;;  %11111 = vst [vmem:[#allocation19_spill] sm:$0xff] %v7319_v16  ;;  %v4823_v47 = vmul.f32 -1.442695, %v7319_v16 }
 0x205   : > { %v1599_v46 = vpop.f32.mrf.mxu3  ;;  %v7299_v6 = vadd.f32 1.0, %v5355_v45 }
 0x206   : > { %v7322_v30 = vadd.f32 %v1599_v46, %v1419_v63 }
 0x207   : > { %vm1770_vm15 = vweird.f32 %v7299_v6 }
 0x208   : > { %v5357_v58 = vpop.eup %5356  ;;  %11112 = vst [vmem:[#allocation27_spill] sm:$0xff] %v7322_v30  ;;  %v4824_v54 = vmul.f32 -1.442695, %v7322_v30 }
 0x209   : > { %v1553_v21 = vpop.f32.mrf.mxu2  ;;  %v7307_v62 = vadd.f32 1.0, %v5357_v58 }
 0x20a   : > { %v7293_v34 = vadd.f32 %v1553_v21, %v1424_v23 }
 0x20b   : > { %11109 = vst [vmem:[#allocation29_spill] sm:$0xff] %v7307_v62  ;;  %vm1785_vm0 = vweird.f32 %v7307_v62 }
 0x20c   : > { %v4825_v41 = vmul.f32 -1.442695, %v7293_v34 }
 0x20d   : > { %v1602_v59 = vpop.f32.mrf.mxu3 }
 0x20e   : > { %5358 = vpow2.f32 %v4825_v41  ;;  %v7301_v32 = vadd.f32 %v1602_v59, %v1424_v23  ;;  %v1774_v59 = vand.u32 2147483647, %v7299_v6 }
 0x20f   : > { %5360 = vrcp.f32 %v7299_v6 }
 0x210   : > { %11108 = vst [vmem:[#allocation15_spill] sm:$0xff] %v7301_v32  ;;  %v4826_v55 = vmul.f32 -1.442695, %v7301_v32  ;;  %vm7379_vm2 = vcmp.eq.f32.partialorder %v1774_v59, 8.507059e+37 }
 0x211   : > { %v1555_v31 = vpop.f32.mrf.mxu2 }
 0x212   : > { %5362 = vpow2.f32 %v4826_v55  ;;  %v7337_v10 = vadd.f32 %v1555_v31, %v1429_v50 }
 0x213   : > { %5364 = vrcp.f32 %v7307_v62 }
 0x214   : > { %v5359_v52 = vpop.eup %5358  ;;  %11115 = vst [vmem:[#allocation22_spill] sm:$0xff] %v7337_v10 }
 0x215   : > { %v1604_v40 = vpop.f32.mrf.mxu3  ;;  %v7309_v29 = vpop.eup %5360  ;;  %v7311_v17 = vadd.f32 1.0, %v5359_v52 }
 0x216   : > { %v1766_v27 = vmul.f32 %v7309_v29, %v7299_v6  ;;  %v7345_v2 = vadd.f32 %v1604_v40, %v1429_v50  ;;  %vm1771_vm7 = vweird.f32 %v7309_v29 }
 0x217   : > { %5366 = vrcp.f32 %v7311_v17  ;;  %vm7375_vm1 = vmor %vm1770_vm15, %vm1771_vm7  ;;  %vm1830_vm6 = vweird.f32 %v7311_v17 }
 0x218   : > { %v5363_v51 = vpop.eup %5362  ;;  %v1767_v42 = vsub.f32 1.0, %v1766_v27  ;;  %11116 = vst [vmem:[#allocation17_spill] sm:$0xff] %v7345_v2  ;;  %v4828_v45 = vmul.f32 -1.442695, %v7345_v2 }
 0x219   : > { %v1558_v8 = vpop.f32.mrf.mxu2  ;;  %v7329_v48 = vpop.eup %5364  ;;  %v7331_v22 = vadd.f32 1.0, %v5363_v51 }
 0x21a   : > { %v7305_v15 = vadd.f32 %v1558_v8, %v1434_v38  ;;  %11113 = vst [vmem:[#allocation33_spill] sm:$0xff] %v7329_v48  ;;  %v1768_v49 = vmul.f32 %v7309_v29, %v1767_v42  ;;  %v1781_v53 = vmul.f32 %v7329_v48, %v7307_v62  ;;  %vm1786_vm4 = vweird.f32 %v7329_v48 }
 0x21b   : > { %11114 = vst [vmem:[#allocation38_spill] sm:$0xff] %v7331_v22  ;;  %vm7432_vm5 = vmor %vm1785_vm0, %vm1786_vm4  ;;  %vm1845_vm9 = vweird.f32 %v7331_v22 }
 0x21c   : > { %v4829_v4 = vmul.f32 -1.442695, %v7305_v15  ;;  %v1769_v40 = vadd.f32 %v7309_v29, %v1768_v49  ;;  %v1782_v9 = vsub.f32 1.0, %v1781_v53 }
 0x21d   : > { %v1607_v35 = vpop.f32.mrf.mxu3  ;;  %v7334_v11 = vpop.eup %5366 }
 0x21e   : > { %v7314_v39 = vadd.f32 %v1607_v35, %v1434_v38  ;;  %5368 = vpow2.f32 %v4829_v4  ;;  %v1826_v13 = vmul.f32 %v7334_v11, %v7311_v17  ;;  %v1776_v35 = vand.u32 2147483648, %v7299_v6 }
 0x21f   : > { %v1773_v4 = vsel %vm7375_vm1, %v7309_v29, %v1769_v40  ;;  %v1783_v27 = vmul.f32 %v7329_v48, %v1782_v9  ;;  %vm1831_vm3 = vweird.f32 %v7334_v11 }
 0x220   : > { %11110 = vst [vmem:[#allocation37_spill] sm:$0xff] %v7314_v39  ;;  %v4830_v12 = vmul.f32 -1.442695, %v7314_v39  ;;  %v1827_v58 = vsub.f32 1.0, %v1826_v13  ;;  %vm7446_vm11 = vmor %vm1830_vm6, %vm1831_vm3 }
 0x221   : > { %v1560_v44 = vpop.f32.mrf.mxu2  ;;  %v7409_v53 = vadd.f32 %v7329_v48, %v1783_v27 }
 0x222   : > { %5370 = vpow2.f32 %v4830_v12  ;;  %v7355_v61 = vadd.f32 %v1560_v44, %v7280_v7  ;;  %v1777_v12 = vor.u32 1.1754944e-38, %v1776_v35  ;;  %v1828_v42 = vmul.f32 %v7334_v11, %v1827_v58 }
 0x223   : > { %5372 = vpow2.f32 %v4823_v47  ;;  %11125 = vst [vmem:[#allocation32_spill] sm:$0xff] %v7409_v53  ;;  %v1851_v35 = vand.u32 2147483648, %v7331_v22 }
 0x224   : > { %v5369_v19 = vpop.eup %5368  ;;  %11117 = vst [vmem:[#allocation25_spill] sm:$0xff] %v7355_v61  ;;  %v4831_v38 = vmul.f32 -1.442695, %v7355_v61  ;;  %v1829_v59 = vadd.f32 %v7334_v11, %v1828_v42 }
 0x225   : > { %v1609_v60 = vpop.f32.mrf.mxu3  ;;  %v7359_v31 = vadd.f32 1.0, %v5369_v19 }
 0x226   : > { %v7364_v41 = vadd.f32 %v1609_v60, %v7280_v7  ;;  %v1833_v27 = vsel %vm7446_vm11, %v7334_v11, %v1829_v59 }
 0x227   : > { %vm1890_vm14 = vweird.f32 %v7359_v31 }
 0x228   : > { %v5371_v23 = vpop.eup %5370  ;;  %11118 = vst [vmem:[#allocation35_spill] sm:$0xff] %v7364_v41 }
 0x229   : > { %v1563_v5 = vpop.f32.mrf.mxu2  ;;  %v5373_v8 = vpop.eup %5372  ;;  %v7384_v60 = vadd.f32 1.0, %v5371_v23  ;;  %v1836_v23 = vand.u32 2147483648, %v7311_v17 }
 0x22a   : > { %v7327_v14 = vadd.f32 %v1563_v5, %v7276_v28  ;;  %v4832_v5 = vmul.f32 -1.442695, %v7364_v41 }
 0x22b   : > { %vm1905_vm1 = vweird.f32 %v7384_v60 }
 0x22c   : > { %v4833_v18 = vmul.f32 -1.442695, %v7327_v14 }
 0x22d   : > { %v1612_v36 = vpop.f32.mrf.mxu3 }
 0x22e   : > { %v7340_v56 = vadd.f32 %v1612_v36, %v7276_v28  ;;  %5374 = vpow2.f32 %v4833_v18  ;;  %v4827_v28 = vmul.f32 -1.442695, %v7337_v10  ;;  %v7398_v36 = vadd.f32 1.0, %v5373_v8 }
 0x22f   : > { %5376 = vrcp.f32 %v7331_v22 }
 0x230   : > { %v4834_v46 = vmul.f32 -1.442695, %v7340_v56  ;;  %5378 = vpow2.f32 %v4824_v54  ;;  %v1778_v54 = vsel %vm7379_vm2, %v1777_v12, %v1773_v4 }
 0x231   : > { %v7351_v21 = vpop.f32.mrf.mxu2  ;;  %v7426_v58 = vmul.f32 %v1778_v54, %v7286_v25 }
 0x232   : > { %5380 = vpow2.f32 %v4834_v46  ;;  %v1834_v46 = vand.u32 2147483647, %v7311_v17  ;;  %v7480_v59 = vadd.f32 %v7351_v21, %v7284_v0 }
 0x233   : > { %5382 = vpow2.f32 %v4827_v28  ;;  %11126 = vst [vmem:[#allocation28_spill] sm:$0xff] %v7426_v58 }
 0x234   : > { %v5375_v52 = vpop.eup %5374  ;;  %5384 = vrcp.f32 %v7359_v31  ;;  %vm7450_vm8 = vcmp.eq.f32.partialorder %v1834_v46, 8.507059e+37 }
 0x235   : > { %v7367_v55 = vpop.f32.mrf.mxu3  ;;  %v7371_v44 = vpop.eup %5376  ;;  %5386 = vpow2.f32 %v4828_v45  ;;  %v7393_v47 = vadd.f32 1.0, %v5375_v52  ;;  %v11127_v52 = vmov 0 }
 0x236   : > { %11119 = vst [vmem:[#allocation34_spill] sm:$0xff] %v7371_v44  ;;  %v5379_v6 = vpop.eup %5378  ;;  %v1841_v29 = vmul.f32 %v7371_v44, %v7331_v22  ;;  %5388 = vpow2.f32 %v4831_v38  ;;  %v11128_v52 = vsel %vm7432_vm5, 4294967295, %v11127_v52  ;;  %vm1846_vm12 = vweird.f32 %v7371_v44 }
 0x237   : > { %v7405_v49 = vadd.f32 1.0, %v5379_v6  ;;  %5390 = vrcp.f32 %v7384_v60  ;;  %11129 = vst [vmem:[#allocation36_spill] sm:$0xff] %v11128_v52  ;;  %v7497_v21 = vadd.f32 %v7367_v55, %v7284_v0  ;;  %v1896_v0 = vand.u32 2147483648, %v7359_v31  ;;  %vm7528_vm10 = vmor %vm1845_vm9, %vm1846_vm12 }
 0x238   : > { %v5381_v51 = vpop.eup %5380  ;;  %5392 = vpow2.f32 %v4832_v5  ;;  %v1842_v8 = vsub.f32 1.0, %v1841_v29  ;;  %v1837_v5 = vor.u32 1.1754944e-38, %v1836_v23  ;;  %v4835_v55 = vmul.f32 -1.442695, %v7480_v59 }
 0x239   : > { %v7395_v50 = vpop.f32.mrf.mxu2  ;;  %11124 = vst [vmem:[#allocation20_spill] sm:$0xff] %v7405_v49  ;;  %v5383_v19 = vpop.eup %5382  ;;  %v7412_v13 = vadd.f32 1.0, %v5381_v51  ;;  %5394 = vrcp.f32 %v7393_v47  ;;  %vm1950_vm6 = vweird.f32 %v7393_v47 }
 0x23a   : > { %v7414_v28 = vpop.eup %5384  ;;  %5396 = vrcp.f32 %v7398_v36  ;;  %v7438_v38 = vadd.f32 1.0, %v5383_v19  ;;  %v1843_v29 = vmul.f32 %v7371_v44, %v1842_v8  ;;  %v7467_v19 = vor.u32 1.1754944e-38, %v1851_v35 }
 0x23b   : > { %v5387_v9 = vpop.eup %5386  ;;  %5398 = vrcp.f32 %v7405_v49  ;;  %v1886_v17 = vmul.f32 %v7414_v28, %v7359_v31  ;;  %v7519_v33 = vadd.f32 %v7395_v50, %v7278_v24  ;;  %v4836_v50 = vmul.f32 -1.442695, %v7497_v21 }
 0x23c   : > { %v5389_v63 = vpop.eup %5388  ;;  %5400 = vrcp.f32 %v7412_v13  ;;  %v7463_v51 = vadd.f32 1.0, %v5387_v9  ;;  %11135 = vst [vmem:[#allocation18_spill] sm:$0xff] %v7467_v19  ;;  %v1838_v9 = vsel %vm7450_vm8, %v1837_v5, %v1833_v27  ;;  %vm1891_vm7 = vweird.f32 %v7414_v28 }
 0x23d   : > { %v7420_v40 = vpop.f32.mrf.mxu3  ;;  %v7457_v4 = vpop.eup %5390  ;;  %5402 = vrcp.f32 %v7438_v38  ;;  %v7476_v11 = vadd.f32 1.0, %v5389_v63  ;;  %v1887_v8 = vsub.f32 1.0, %v1886_v17  ;;  %v1894_v63 = vand.u32 2147483647, %v7359_v31  ;;  %vm7575_vm15 = vmor %vm1890_vm14, %vm1891_vm7 }
 0x23e   : > { %11134 = vst [vmem:[#allocation14_spill] sm:$0xff] %v7463_v51  ;;  %v5393_v42 = vpop.eup %5392  ;;  %v1901_v35 = vmul.f32 %v7457_v4, %v7384_v60  ;;  %5404 = vrcp.f32 %v7463_v51  ;;  %v7502_v17 = vadd.f32 %v7371_v44, %v1843_v29  ;;  %v4837_v32 = vmul.f32 -1.442695, %v7519_v33 }
 0x23f   : > { %v7472_v25 = vpop.eup %5394  ;;  %v7493_v18 = vadd.f32 1.0, %v5393_v42  ;;  %v7511_v42 = vmul.f32 %v1838_v9, %v7293_v34  ;;  %v1888_v29 = vmul.f32 %v7414_v28, %v1887_v8  ;;  %v11141_v34 = vmov 0 }
 0x240   : > { %v7482_v23 = vpop.eup %5396  ;;  %11138 = vst [vmem:[#allocation31_spill] sm:$0xff] %v7502_v17  ;;  %v1946_v5 = vmul.f32 %v7472_v25, %v7393_v47  ;;  %v1902_v54 = vsub.f32 1.0, %v1901_v35  ;;  %v11142_v34 = vsel %vm7528_vm10, 4294967295, %v11141_v34  ;;  %v7538_v8 = vadd.f32 %v7420_v40, %v7278_v24 }
 0x241   : > { %v1570_v12 = vpop.f32.mrf.mxu2  ;;  %11136 = vst [vmem:[#allocation26_spill] sm:$0xff] %v7482_v23  ;;  %vm7544_vm13 = vcmp.eq.f32.partialorder %v1894_v63, 8.507059e+37  ;;  %v1897_v24 = vor.u32 1.1754944e-38, %v1896_v0  ;;  %v1911_v40 = vand.u32 2147483648, %v7384_v60  ;;  %vm1906_vm2 = vweird.f32 %v7457_v4 }
 0x242   : > { %v7470_v46 = vadd.f32 %v1570_v12, %v7296_v3  ;;  %v7489_v12 = vpop.eup %5398  ;;  %11139 = vst [vmem:[#allocation16_spill] sm:$0xff] %v7511_v42  ;;  %v1947_v53 = vsub.f32 1.0, %v1946_v5  ;;  %v1903_v63 = vmul.f32 %v7457_v4, %v1902_v54  ;;  %v4838_v62 = vmul.f32 -1.442695, %v7538_v8  ;;  %vm7608_vm3 = vmor %vm1905_vm1, %vm1906_vm2 }
 0x243   : > { %11137 = vst [vmem:[#allocation9_spill] sm:$0xff] %v7489_v12  ;;  %v7499_v27 = vpop.eup %5400  ;;  %vm1951_vm4 = vweird.f32 %v7472_v25  ;;  %vm1965_vm12 = vweird.f32 %v7412_v13 }
 0x244   : > { %v4839_v7 = vmul.f32 -1.442695, %v7470_v46  ;;  %11143 = vst [vmem:[#allocation7_spill] sm:$0xff] %v11142_v34  ;;  %v1961_v9 = vmul.f32 %v7499_v27, %v7412_v13  ;;  %v1948_v2 = vmul.f32 %v7472_v25, %v1947_v53  ;;  %vm7626_vm11 = vmor %vm1950_vm6, %vm1951_vm4  ;;  %vm1966_vm9 = vweird.f32 %v7499_v27 }
 0x245   : > { %v1619_v6 = vpop.f32.mrf.mxu3  ;;  %vm7649_vm14 = vmor %vm1965_vm12, %vm1966_vm9 }
 0x246   : > { %5406 = vpow2.f32 %v4839_v7  ;;  %v7508_v45 = vadd.f32 %v1619_v6, %v7296_v3  ;;  %v7522_v3 = vpop.eup %5402  ;;  %v1889_v6 = vadd.f32 %v7414_v28, %v1888_v29 }
 0x247   : > { %5408 = vrcp.f32 %v7476_v11  ;;  %11140 = vst [vmem:[#allocation10_spill] sm:$0xff] %v7522_v3  ;;  %v7551_v52 = vpop.eup %5404 }
 0x248   : > { %v4840_v7 = vmul.f32 -1.442695, %v7508_v45  ;;  %5410 = vrcp.f32 %v7493_v18  ;;  %11146 = vst [vmem:[#allocation23_spill] sm:$0xff] %v7551_v52  ;;  %v1893_v53 = vsel %vm7575_vm15, %v7414_v28, %v1889_v6  ;;  %v1949_v28 = vadd.f32 %v7472_v25, %v1948_v2 }
 0x249   : > { %v1573_v35 = vpop.f32.mrf.mxu2  ;;  %v1956_v2 = vand.u32 2147483648, %v7393_v47 }
 0x24a   : > { %5412 = vpow2.f32 %v4840_v7  ;;  %v7549_v48 = vadd.f32 %v1573_v35, %v7288_v37  ;;  %v1962_v35 = vsub.f32 1.0, %v1961_v9 }
 0x24b   : > { %5414 = vpow2.f32 %v4835_v55  ;;  %v1909_v55 = vand.u32 2147483647, %v7384_v60  ;;  %v1957_v34 = vor.u32 1.1754944e-38, %v1956_v2 }
 0x24c   : > { %v5407_v58 = vpop.eup %5406  ;;  %v4841_v5 = vmul.f32 -1.442695, %v7549_v48  ;;  %5416 = vpow2.f32 %v4836_v50  ;;  %v1904_v50 = vadd.f32 %v7457_v4, %v1903_v63  ;;  %v1963_v19 = vmul.f32 %v7499_v27, %v1962_v35 }
 0x24d   : > { %v7559_v7 = vpop.eup %5408  ;;  %v7562_v16 = vadd.f32 1.0, %v5407_v58  ;;  %v1622_v0 = vpop.f32.mrf.mxu3  ;;  %v7581_v58 = vor.u32 1.1754944e-38, %v1911_v40  ;;  %vm7593_vm0 = vcmp.eq.f32.partialorder %v1909_v55, 8.507059e+37  ;;  %v1898_v63 = vsel %vm7544_vm13, %v1897_v24, %v1893_v53 }
 0x24e   : > { %5418 = vpow2.f32 %v4841_v5  ;;  %v7567_v54 = vadd.f32 %v1622_v0, %v7288_v37  ;;  %v7569_v29 = vpop.eup %5410  ;;  %v1954_v0 = vand.u32 2147483647, %v7393_v47  ;;  %v1908_v30 = vsel %vm7608_vm3, %v7457_v4, %v1904_v50 }
 0x24f   : > { %5420 = vrcp.f32 %v7562_v16  ;;  %v1971_v24 = vand.u32 2147483648, %v7412_v13  ;;  %v1964_v4 = vadd.f32 %v7499_v27, %v1963_v19  ;;  %v1969_v19 = vand.u32 2147483647, %v7412_v13 }
 0x250   : > { %v5413_v37 = vpop.eup %5412  ;;  %5422 = vpow2.f32 %v4837_v32  ;;  %v4842_v31 = vmul.f32 -1.442695, %v7567_v54  ;;  %vm7630_vm8 = vcmp.eq.f32.partialorder %v1954_v0, 8.507059e+37  ;;  %v7673_v10 = vmul.f32 %v1898_v63, %v7305_v15 }
 0x251   : > { %v5415_v5 = vpop.eup %5414  ;;  %5424 = vpow2.f32 %v4838_v62  ;;  %v7591_v40 = vadd.f32 1.0, %v5413_v37  ;;  %v1575_v17 = vpop.f32.mrf.mxu2  ;;  %v1968_v13 = vsel %vm7649_vm14, %v7499_v27, %v1964_v4  ;;  %v7678_v39 = vsel %vm7593_vm0, %v7581_v58, %v1908_v30 }
 0x252   : > { %5426 = vpow2.f32 %v4842_v31  ;;  %v7600_v32 = vadd.f32 %v1575_v17, %v7272_v20  ;;  %v5417_v6 = vpop.eup %5416  ;;  %v7619_v35 = vadd.f32 1.0, %v5415_v5  ;;  %v1953_v31 = vsel %vm7626_vm11, %v7472_v25, %v1949_v28  ;;  %11159 = vst [vmem:[#allocation11_spill] sm:$0xff] %v7673_v10 }
 0x253   : > { %5428 = vrcp.f32 %v7591_v40  ;;  %v1972_v25 = vor.u32 1.1754944e-38, %v1971_v24  ;;  %v7654_v28 = vadd.f32 1.0, %v5417_v6  ;;  %v1958_v2 = vsel %vm7630_vm8, %v1957_v34, %v1953_v31  ;;  %11160 = vst [vmem:[#allocation24_spill] sm:$0xff] %v7678_v39 }
 0x254   : > { %v5419_v17 = vpop.eup %5418  ;;  %v4843_v60 = vmul.f32 -1.442695, %v7600_v32  ;;  %vm1970_vm13 = vcmp.eq.f32.partialorder %v1969_v19, 8.507059e+37  ;;  %v2044_v47 = vand.u32 2147483647, %v7562_v16  ;;  %v2046_v4 = vand.u32 2147483648, %v7562_v16 }
 0x255   : > { %v7622_v55 = vpop.eup %5420  ;;  %v7636_v37 = vadd.f32 1.0, %v5419_v17  ;;  %v1624_v53 = vpop.f32.mrf.mxu3  ;;  %v1973_v34 = vsel %vm1970_vm13, %v1972_v25, %v1968_v13  ;;  %v7687_v15 = vmul.f32 %v1958_v2, %v7327_v14  ;;  %vm2040_vm7 = vweird.f32 %v7562_v16 }
 0x256   : > { %v5423_v50 = vpop.eup %5422  ;;  %v2036_v5 = vmul.f32 %v7622_v55, %v7562_v16  ;;  %5430 = vpow2.f32 %v4843_v60  ;;  %v7644_v0 = vadd.f32 %v1624_v53, %v7272_v20  ;;  %v7702_v14 = vmul.f32 %v1973_v34, %v7340_v56 }
 0x257   : > { %v5425_v62 = vpop.eup %5424  ;;  %5432 = vrcp.f32 %v7636_v37  ;;  %v7664_v9 = vadd.f32 1.0, %v5423_v50  ;;  %11161 = vst [vmem:[#allocation13_spill] sm:$0xff] %v7687_v15  ;;  %vm7707_vm15 = vcmp.eq.f32.partialorder %v2044_v47, 8.507059e+37  ;;  %vm2055_vm1 = vweird.f32 %v7591_v40 }
 0x258   : > { %v5427_v17 = vpop.eup %5426  ;;  %5434 = vrcp.f32 %v7619_v35  ;;  %v4844_v20 = vmul.f32 -1.442695, %v7644_v0  ;;  %v7668_v22 = vadd.f32 1.0, %v5425_v62  ;;  %v2037_v6 = vsub.f32 1.0, %v2036_v5  ;;  %11162 = vst [vmem:[#allocation21_spill] sm:$0xff] %v7702_v14 }
 0x259   : > { %v7657_v60 = vpop.eup %5428  ;;  %v7666_v53 = vadd.f32 1.0, %v5427_v17  ;;  %v1578_v24 = vpop.f32.mrf.mxu2  ;;  %v2061_v62 = vand.u32 2147483648, %v7591_v40  ;;  %v2059_v56 = vand.u32 2147483647, %v7591_v40  ;;  %vm2041_vm2 = vweird.f32 %v7622_v55 }
 0x25a   : > { %v2051_v42 = vmul.f32 %v7657_v60, %v7591_v40  ;;  %5436 = vpow2.f32 %v4844_v20  ;;  %v7693_v58 = vadd.f32 %v1578_v24, %v7267_v43  ;;  %v2038_v30 = vmul.f32 %v7622_v55, %v2037_v6  ;;  %vm7744_vm3 = vmor %vm2040_vm7, %vm2041_vm2 }
 0x25b   : > { %5438 = vrcp.f32 %v7666_v53  ;;  %v2047_v20 = vor.u32 1.1754944e-38, %v2046_v4  ;;  %v2074_v41 = vand.u32 2147483647, %v7636_v37  ;;  %vm2056_vm0 = vweird.f32 %v7657_v60 }
 0x25c   : > { %v5431_v27 = vpop.eup %5430  ;;  %5440 = vrcp.f32 %v7654_v28  ;;  %v2052_v31 = vsub.f32 1.0, %v2051_v42  ;;  %v4845_v24 = vmul.f32 -1.442695, %v7693_v58  ;;  %v2039_v34 = vadd.f32 %v7622_v55, %v2038_v30  ;;  %vm7781_vm12 = vmor %vm2055_vm1, %vm2056_vm0 }
 0x25d   : > { %v7684_v50 = vpop.eup %5432  ;;  %5442 = vrcp.f32 %v7664_v9  ;;  %v7690_v44 = vadd.f32 1.0, %v5431_v27  ;;  %v1627_v19 = vpop.f32.mrf.mxu3  ;;  %vm2070_vm4 = vweird.f32 %v7636_v37  ;;  %v2091_v49 = vand.u32 2147483648, %v7666_v53 }
 0x25e   : > { %v7695_v63 = vpop.eup %5434  ;;  %5444 = vrcp.f32 %v7668_v22  ;;  %v2066_v5 = vmul.f32 %v7684_v50, %v7636_v37  ;;  %v7719_v6 = vadd.f32 %v1627_v19, %v7267_v43  ;;  %v2053_v47 = vmul.f32 %v7657_v60, %v2052_v31 }
 0x25f   : > { %5446 = vrcp.f32 %v7690_v44  ;;  %v2076_v43 = vand.u32 2147483648, %v7636_v37  ;;  %vm7757_vm6 = vcmp.eq.f32.partialorder %v2059_v56, 8.507059e+37  ;;  %v2089_v52 = vand.u32 2147483647, %v7666_v53 }
 0x260   : > { %v5437_v17 = vpop.eup %5436  ;;  %v2067_v42 = vsub.f32 1.0, %v2066_v5  ;;  %v4846_v23 = vmul.f32 -1.442695, %v7719_v6  ;;  %v2054_v10 = vadd.f32 %v7657_v60, %v2053_v47  ;;  %vm2071_vm11 = vweird.f32 %v7684_v50 }
 0x261   : > { %v7712_v2 = vpop.eup %5438  ;;  %v7715_v13 = vadd.f32 1.0, %v5437_v17  ;;  %v1580_v5 = vpop.f32.mrf.mxu2  ;;  %v2062_v17 = vor.u32 1.1754944e-38, %v2061_v62  ;;  %vm7765_vm8 = vcmp.eq.f32.partialorder %v2074_v41, 8.507059e+37  ;;  %v2077_v51 = vor.u32 1.1754944e-38, %v2076_v43  ;;  %vm7804_vm7 = vmor %vm2070_vm4, %vm2071_vm11 }
 0x262   : > { %v7721_v27 = vpop.eup %5440  ;;  %v2081_v4 = vmul.f32 %v7712_v2, %v7666_v53  ;;  %v2068_v30 = vmul.f32 %v7684_v50, %v2067_v42  ;;  %v7751_v42 = vadd.f32 %v1580_v5, %v7274_v57  ;;  %vm2085_vm9 = vweird.f32 %v7666_v53 }
 0x263   : > { %v7728_v39 = vpop.eup %5442  ;;  %5448 = vrcp.f32 %v7715_v13  ;;  %vm2100_vm14 = vweird.f32 %v7690_v44  ;;  %vm7792_vm13 = vcmp.eq.f32.partialorder %v2089_v52, 8.507059e+37  ;;  %v2106_v15 = vand.u32 2147483648, %v7690_v44 }
 0x264   : > { %v7733_v19 = vpop.eup %5444  ;;  %v2082_v31 = vsub.f32 1.0, %v2081_v4  ;;  %5450 = vpow2.f32 %v4845_v24  ;;  %v2043_v4 = vsel %vm7744_vm3, %v7622_v55, %v2039_v34  ;;  %v2069_v56 = vadd.f32 %v7684_v50, %v2068_v30 }
 0x265   : > { %v7738_v12 = vpop.eup %5446  ;;  %5452 = vpow2.f32 %v4846_v23  ;;  %v1629_v55 = vpop.f32.mrf.mxu3  ;;  %v4847_v62 = vmul.f32 -1.442695, %v7751_v42  ;;  %v2048_v41 = vsel %vm7707_vm15, %v2047_v20, %v2043_v4  ;;  %v2092_v23 = vor.u32 1.1754944e-38, %v2091_v49 }
 0x266   : > { %v2096_v24 = vmul.f32 %v7738_v12, %v7690_v44  ;;  %v2083_v34 = vmul.f32 %v7712_v2, %v2082_v31  ;;  %v7787_v30 = vadd.f32 %v1629_v55, %v7274_v57  ;;  %v2058_v31 = vsel %vm7781_vm12, %v7657_v60, %v2054_v10 }
 0x267   : > { %v2104_v20 = vand.u32 2147483647, %v7690_v44  ;;  %vm2086_vm15 = vweird.f32 %v7712_v2  ;;  %5454 = vpow2.f32 %v4847_v62  ;;  %v2073_v60 = vsel %vm7804_vm7, %v7684_v50, %v2069_v56 }
 0x268   : > { %v2097_v47 = vsub.f32 1.0, %v2096_v24  ;;  %v4848_v10 = vmul.f32 -1.442695, %v7787_v30  ;;  %v2084_v55 = vadd.f32 %v7712_v2, %v2083_v34  ;;  %vm2101_vm1 = vweird.f32 %v7738_v12  ;;  %vm7834_vm2 = vmor %vm2085_vm9, %vm2086_vm15 }
 0x269   : > { %v7773_v14 = vpop.eup %5448  ;;  %v1583_v4 = vpop.f32.mrf.mxu2  ;;  %v2063_v56 = vsel %vm7757_vm6, %v2062_v17, %v2058_v31  ;;  %vm7851_vm0 = vmor %vm2100_vm14, %vm2101_vm1  ;;  %vm2105_vm3 = vcmp.eq.f32.partialorder %v2104_v20, 8.507059e+37  ;;  %v2107_v44 = vor.u32 1.1754944e-38, %v2106_v15  ;;  %vm2115_vm6 = vweird.f32 %v7715_v13 }
 0x26a   : > { %v2098_v40 = vmul.f32 %v7738_v12, %v2097_v47  ;;  %v2111_v49 = vmul.f32 %v7773_v14, %v7715_v13  ;;  %v5451_v24 = vpop.eup %5450  ;;  %v7811_v52 = vadd.f32 %v1583_v4, %v7270_v1  ;;  %5456 = vpow2.f32 %v4848_v10 }
 0x26b   : > { %v7817_v37 = vadd.f32 1.0, %v5451_v24  ;;  %v5453_v43 = vpop.eup %5452  ;;  %v7823_v4 = vmul.f32 %v2048_v41, %v7470_v46  ;;  %v2119_v46 = vand.u32 2147483647, %v7715_v13  ;;  %v2121_v41 = vand.u32 2147483648, %v7715_v13 }
 0x26c   : > { %v2112_v47 = vsub.f32 1.0, %v2111_v49  ;;  %v2099_v61 = vadd.f32 %v7738_v12, %v2098_v40  ;;  %v4849_v62 = vmul.f32 -1.442695, %v7811_v52  ;;  %v7840_v40 = vadd.f32 1.0, %v5453_v43 }
 0x26d   : > { %5458 = vrcp.f32 %v7817_v37  ;;  %v1632_v49 = vpop.f32.mrf.mxu3  ;;  %v2078_v24 = vsel %vm7765_vm8, %v2077_v51, %v2073_v60  ;;  %v2088_v17 = vsel %vm7834_vm2, %v7712_v2, %v2084_v55  ;;  %v5455_v31 = vpop.eup %5454  ;;  %vm2116_vm4 = vweird.f32 %v7773_v14 }
 0x26e   : > { %v2113_v50 = vmul.f32 %v7773_v14, %v2112_v47  ;;  %5460 = vpow2.f32 %v4849_v62  ;;  %v7856_v16 = vadd.f32 %v1632_v49, %v7270_v1  ;;  %v2103_v51 = vsel %vm7851_vm0, %v7738_v12, %v2099_v61  ;;  %vm7884_vm8 = vmor %vm2115_vm6, %vm2116_vm4 }
 0x26f   : > { %5462 = vrcp.f32 %v7840_v40  ;;  %v7865_v2 = vadd.f32 1.0, %v5455_v31  ;;  %v7868_v10 = vmul.f32 %v2063_v56, %v7508_v45  ;;  %v2093_v61 = vsel %vm7792_vm13, %v2092_v23, %v2088_v17 }
 0x270   : > { %v2114_v5 = vadd.f32 %v7773_v14, %v2113_v50  ;;  %v5457_v1 = vpop.eup %5456  ;;  %vm7872_vm11 = vcmp.eq.f32.partialorder %v2119_v46, 8.507059e+37  ;;  %v4850_v60 = vmul.f32 -1.442695, %v7856_v16  ;;  %v7880_v15 = vmul.f32 %v2078_v24, %v7549_v48 }
 0x271   : > { %v1585_v57 = vpop.f32.mrf.mxu2  ;;  %v2108_v13 = vsel %vm2105_vm3, %v2107_v44, %v2103_v51  ;;  %v2122_v25 = vor.u32 1.1754944e-38, %v2121_v41  ;;  %5464 = vrcp.f32 %v7865_v2  ;;  %v2136_v48 = vand.u32 2147483648, %v7817_v37 }
 0x272   : > { %v2118_v23 = vsel %vm7884_vm8, %v7773_v14, %v2114_v5  ;;  %v7896_v47 = vadd.f32 %v1585_v57, %v7282_v26  ;;  %v7899_v62 = vmul.f32 %v2093_v61, %v7567_v54  ;;  %v2134_v50 = vand.u32 2147483647, %v7817_v37 }
 0x273   : > { %v7877_v20 = vpop.eup %5458  ;;  %v7902_v56 = vadd.f32 1.0, %v5457_v1  ;;  %5466 = vpow2.f32 %v4850_v60  ;;  %v7907_v14 = vmul.f32 %v2108_v13, %v7600_v32  ;;  %vm2130_vm9 = vweird.f32 %v7817_v37 }
 0x274   : > { %v2126_v55 = vmul.f32 %v7877_v20, %v7817_v37  ;;  %v5461_v43 = vpop.eup %5460  ;;  %v2151_v41 = vand.u32 2147483648, %v7840_v40  ;;  %v2123_v54 = vsel %vm7872_vm11, %v2122_v25, %v2118_v23  ;;  %v2164_v17 = vand.u32 2147483647, %v7865_v2 }
 0x275   : > { %v7904_v34 = vpop.eup %5462  ;;  %v7911_v49 = vadd.f32 1.0, %v5461_v43  ;;  %5468 = vrcp.f32 %v7902_v56  ;;  %v2137_v53 = vor.u32 1.1754944e-38, %v2136_v48  ;;  %v2149_v31 = vand.u32 2147483647, %v7840_v40 }
 0x276   : > { %v2127_v46 = vsub.f32 1.0, %v2126_v55  ;;  %v2141_v24 = vmul.f32 %v7904_v34, %v7840_v40  ;;  %v4851_v51 = vmul.f32 -1.442695, %v7896_v47  ;;  %vm2145_vm12 = vweird.f32 %v7840_v40 }
 0x277   : > { %v5465_v5 = vpop.eup %5464  ;;  %v2166_v57 = vand.u32 2147483648, %v7865_v2  ;;  %5470 = vrcp.f32 %v7911_v49  ;;  %v7926_v1 = vmul.f32 %v2123_v54, %v7644_v0  ;;  %vm2131_vm14 = vweird.f32 %v7877_v20  ;;  %v1634_v0 = vpop.f32.mrf.mxu3 }
 0x278   : > { %v2128_v32 = vmul.f32 %v7877_v20, %v2127_v46  ;;  %v2142_v44 = vsub.f32 1.0, %v2141_v24  ;;  %vm7929_vm13 = vcmp.eq.f32.partialorder %v2134_v50, 8.507059e+37  ;;  %v2152_v12 = vor.u32 1.1754944e-38, %v2151_v41  ;;  %vm7961_vm4 = vmor %vm2130_vm9, %vm2131_vm14 }
 0x279   : > { %v2156_v60 = vmul.f32 %v5465_v5, %v7865_v2  ;;  %v5467_v13 = vpop.eup %5466  ;;  %vm2146_vm7 = vweird.f32 %v7904_v34  ;;  %vm2160_vm15 = vweird.f32 %v7865_v2  ;;  %vm7937_vm1 = vcmp.eq.f32.partialorder %v2164_v17, 8.507059e+37 }
 0x27a   : > { %v2143_v45 = vmul.f32 %v7904_v34, %v2142_v44  ;;  %v2129_v23 = vadd.f32 %v7877_v20, %v2128_v32  ;;  %vm7942_vm2 = vcmp.eq.f32.partialorder %v2149_v31, 8.507059e+37  ;;  %v7946_v43 = vadd.f32 1.0, %v5467_v13  ;;  %vm7976_vm11 = vmor %vm2145_vm12, %vm2146_vm7 }
 0x27b   : > { %v2157_v48 = vsub.f32 1.0, %v2156_v60  ;;  %5472 = vpow2.f32 %v4851_v51  ;;  %v5469_v50 = vpop.eup %5468  ;;  %v2167_v41 = vor.u32 1.1754944e-38, %v2166_v57  ;;  %v2179_v54 = vand.u32 2147483647, %v7902_v56 }
 0x27c   : > { %v2144_v46 = vadd.f32 %v7904_v34, %v2143_v45  ;;  %v2181_v24 = vand.u32 2147483648, %v7902_v56  ;;  %vm2161_vm0 = vweird.f32 %v5465_v5  ;;  %v2171_v32 = vmul.f32 %v5469_v50, %v7902_v56 }
 0x27d   : > { %v2158_v17 = vmul.f32 %v5465_v5, %v2157_v48  ;;  %v7953_v31 = vadd.f32 %v1634_v0, %v7282_v26  ;;  %v7955_v44 = vpop.eup %5470  ;;  %vm2175_vm3 = vweird.f32 %v7902_v56  ;;  %vm2190_vm6 = vweird.f32 %v7911_v49  ;;  %vm2162_vm8 = vmor %vm2160_vm15, %vm2161_vm0 }
 0x27e   : > { %v2194_v57 = vand.u32 2147483647, %v7911_v49  ;;  %5474 = vrcp.f32 %v7946_v43  ;;  %v2133_v26 = vsel %vm7961_vm4, %v7877_v20, %v2129_v23  ;;  %v2172_v13 = vsub.f32 1.0, %v2171_v32 }
 0x27f   : > { %v2159_v60 = vadd.f32 %v5465_v5, %v2158_v17  ;;  %v2186_v45 = vmul.f32 %v7955_v44, %v7911_v49  ;;  %v2148_v0 = vsel %vm7976_vm11, %v7904_v34, %v2144_v46  ;;  %vm2176_vm9 = vweird.f32 %v5469_v50 }
 0x280   : > { %vm7988_vm14 = vcmp.eq.f32.partialorder %v2179_v54, 8.507059e+37  ;;  %v2182_v20 = vor.u32 1.1754944e-38, %v2181_v24  ;;  %v2173_v17 = vmul.f32 %v5469_v50, %v2172_v13  ;;  %v4852_v51 = vmul.f32 -1.442695, %v7953_v31  ;;  %vm2177_vm12 = vmor %vm2175_vm3, %vm2176_vm9 }
 0x281   : > { %v5473_v23 = vpop.eup %5472  ;;  %v2163_v48 = vsel %vm2162_vm8, %v5465_v5, %v2159_v60  ;;  %v2187_v32 = vsub.f32 1.0, %v2186_v45  ;;  %v2138_v37 = vsel %vm7929_vm13, %v2137_v53, %v2133_v26  ;;  %v2196_v34 = vand.u32 2147483648, %v7911_v49 }
 0x282   : > { %v2209_v2 = vand.u32 2147483647, %v7946_v43  ;;  %v7997_v46 = vadd.f32 1.0, %v5473_v23  ;;  %v2168_v54 = vsel %vm7937_vm1, %v2167_v41, %v2163_v48  ;;  %v2174_v3 = vadd.f32 %v5469_v50, %v2173_v17 }
 0x283   : > { %v2188_v24 = vmul.f32 %v7955_v44, %v2187_v32  ;;  %5476 = vpow2.f32 %v4852_v51  ;;  %v2153_v60 = vsel %vm7942_vm2, %v2152_v12, %v2148_v0  ;;  %vm2191_vm13 = vweird.f32 %v7955_v44 }
 0x284   : > { %v5475_v5 = vpop.eup %5474  ;;  %v2211_v53 = vand.u32 2147483648, %v7946_v43  ;;  %5478 = vrcp.f32 %v7997_v46  ;;  %v2178_v61 = vsel %vm2177_vm12, %v5469_v50, %v2174_v3  ;;  %v2226_v26 = vand.u32 2147483648, %v7997_v46  ;;  %vm8027_vm15 = vmor %vm2190_vm6, %vm2191_vm13 }
 0x285   : > { %v2189_v25 = vadd.f32 %v7955_v44, %v2188_v24  ;;  %v2201_v41 = vmul.f32 %v5475_v5, %v7946_v43  ;;  %v8014_v55 = vmul.f32 %v2138_v37, %v7693_v58  ;;  %v8017_v12 = vmul.f32 %v2168_v54, %v7751_v42 }
 0x286   : > { %vm8019_vm7 = vcmp.eq.f32.partialorder %v2194_v57, 8.507059e+37  ;;  %v2197_v13 = vor.u32 1.1754944e-38, %v2196_v34  ;;  %v2183_v3 = vsel %vm7988_vm14, %v2182_v20, %v2178_v61  ;;  %vm2205_vm1 = vweird.f32 %v7946_v43 }
 0x287   : > { %v2202_v45 = vsub.f32 1.0, %v2201_v41  ;;  %v2224_v58 = vand.u32 2147483647, %v7997_v46  ;;  %v8034_v42 = vmul.f32 %v2153_v60, %v7719_v6  ;;  %v2193_v57 = vsel %vm8027_vm15, %v7955_v44, %v2189_v25 }
 0x288   : > { %vm8039_vm2 = vcmp.eq.f32.partialorder %v2209_v2, 8.507059e+37  ;;  %v2212_v49 = vor.u32 1.1754944e-38, %v2211_v53  ;;  %vm2206_vm0 = vweird.f32 %v5475_v5  ;;  %vm2220_vm4 = vweird.f32 %v7997_v46 }
 0x289   : > { %v5477_v40 = vpop.eup %5476  ;;  %v2203_v20 = vmul.f32 %v5475_v5, %v2202_v45  ;;  %v2227_v23 = vor.u32 1.1754944e-38, %v2226_v26  ;;  %v2006_v48 = vmul.f32 %v7728_v39, %v7664_v9  ;;  %v8047_v17 = vmul.f32 %v2183_v3, %v7787_v30  ;;  %vm2207_vm6 = vmor %vm2205_vm1, %vm2206_vm0 }
 0x28a   : > { %v5479_v6 = vpop.eup %5478  ;;  %v8049_v32 = vadd.f32 1.0, %v5477_v40  ;;  %v2306_v44 = vpack.c.bf16 %v8017_v12, %v8014_v55  ;;  %v2304_v51 = vpack.c.bf16 %v7907_v14, %v7880_v15  ;;  %v2198_v37 = vsel %vm8019_vm7, %v2197_v13, %v2193_v57  ;;  %v11213_v15 = vld [vmem:[#allocation10_spill] sm:$0xff] }
 0x28b   : > { %v2204_v34 = vadd.f32 %v5475_v5, %v2203_v20  ;;  %v2216_v2 = vmul.f32 %v5479_v6, %v7997_v46  ;;  %vm8058_vm3 = vcmp.eq.f32.partialorder %v2224_v58, 8.507059e+37  ;;  %v2007_v30 = vsub.f32 1.0, %v2006_v48 }
 0x28c   : > { %5480 = vrcp.f32 %v8049_v32  ;;  %v2241_v24 = vand.u32 2147483648, %v8049_v32  ;;  %v2305_v60 = vpack.c.bf16 %v7926_v1, %v7899_v62  ;;  %v2014_v53 = vand.u32 2147483647, %v7664_v9 }
 0x28d   : > { %v2208_v61 = vsel %vm2207_vm6, %v5475_v5, %v2204_v34  ;;  %v2217_v25 = vsub.f32 1.0, %v2216_v2  ;;  %v2008_v41 = vmul.f32 %v7728_v39, %v2007_v30  ;;  %vm2011_vm11 = vweird.f32 %v7728_v39 }
 0x28e   : > { %vm2221_vm8 = vweird.f32 %v5479_v6  ;;  %v2239_v26 = vand.u32 2147483647, %v8049_v32  ;;  %vm2010_vm9 = vweird.f32 %v7664_v9  ;;  %v2016_v43 = vand.u32 2147483648, %v7664_v9 }
 0x28f   : > { %v2213_v56 = vsel %vm8039_vm2, %v2212_v49, %v2208_v61  ;;  %v2218_v13 = vmul.f32 %v5479_v6, %v2217_v25  ;;  %v2009_v3 = vadd.f32 %v7728_v39, %v2008_v41  ;;  %v2021_v5 = vmul.f32 %v7733_v19, %v7668_v22  ;;  %vm8080_vm14 = vmor %vm2010_vm9, %vm2011_vm11 }
 0x290   : > { %v2273_v50 = vmul.f32 %v2198_v37, %v7811_v52  ;;  %v2242_v45 = vor.u32 1.1754944e-38, %v2241_v24  ;;  %vm8084_vm12 = vcmp.eq.f32.partialorder %v2014_v53, 8.507059e+37  ;;  %v2029_v9 = vand.u32 2147483647, %v7668_v22  ;;  %vm2222_vm7 = vmor %vm2220_vm4, %vm2221_vm8 }
 0x291   : > { %v2219_v0 = vadd.f32 %v5479_v6, %v2218_v13  ;;  %vm2235_vm13 = vweird.f32 %v8049_v32  ;;  %v2013_v49 = vsel %vm8080_vm14, %v7728_v39, %v2009_v3  ;;  %v2017_v40 = vor.u32 1.1754944e-38, %v2016_v43 }
 0x292   : > { %v2022_v52 = vsub.f32 1.0, %v2021_v5  ;;  %v5481_v20 = vpop.eup %5480  ;;  %v8094_v48 = vmul.f32 %v2213_v56, %v7856_v16  ;;  %vm2025_vm15 = vweird.f32 %v7668_v22  ;;  %vm2026_vm1 = vweird.f32 %v7733_v19 }
 0x293   : > { %v1976_v37 = vmul.f32 %v7695_v63, %v7619_v35  ;;  %v2223_v34 = vsel %vm2222_vm7, %v5479_v6, %v2219_v0  ;;  %v2231_v39 = vmul.f32 %v5481_v20, %v8049_v32  ;;  %vm8104_vm2 = vcmp.eq.f32.partialorder %v2239_v26, 8.507059e+37 }
 0x294   : > { %v2018_v16 = vsel %vm8084_vm12, %v2017_v40, %v2013_v49  ;;  %v2031_v46 = vand.u32 2147483648, %v7668_v22  ;;  %v2228_v30 = vsel %vm8058_vm3, %v2227_v23, %v2223_v34  ;;  %v2023_v24 = vmul.f32 %v7733_v19, %v2022_v52  ;;  %vm2027_vm3 = vmor %vm2025_vm15, %vm2026_vm1 }
 0x295   : > { %vm8114_vm0 = vcmp.eq.f32.partialorder %v2029_v9, 8.507059e+37  ;;  %v1977_v6 = vsub.f32 1.0, %v1976_v37  ;;  %v2275_v61 = vmul.f32 %v2228_v30, %v7896_v47  ;;  %v2232_v25 = vsub.f32 1.0, %v2231_v39 }
 0x296   : > { %vm2236_vm4 = vweird.f32 %v5481_v20  ;;  %vm1981_vm6 = vweird.f32 %v7695_v63  ;;  %v2024_v41 = vadd.f32 %v7733_v19, %v2023_v24  ;;  %v1984_v54 = vand.u32 2147483647, %v7619_v35 }
 0x297   : > { %v1978_v26 = vmul.f32 %v7695_v63, %v1977_v6  ;;  %v1986_v23 = vand.u32 2147483648, %v7619_v35  ;;  %v2233_v43 = vmul.f32 %v5481_v20, %v2232_v25  ;;  %v2308_v56 = vpack.c.bf16 %v2275_v61, %v2273_v50  ;;  %vm2237_vm14 = vmor %vm2235_vm13, %vm2236_vm4  ;;  %v11215_v6 = vld [vmem:[#allocation25_spill] sm:$0xff] }
 0x298   : > { %v2032_v47 = vor.u32 1.1754944e-38, %v2031_v46  ;;  %v1991_v13 = vmul.f32 %v7721_v27, %v7654_v28  ;;  %v2028_v3 = vsel %vm2027_vm3, %v7733_v19, %v2024_v41  ;;  %vm1980_vm11 = vweird.f32 %v7619_v35 }
 0x299   : > { %v1979_v5 = vadd.f32 %v7695_v63, %v1978_v26  ;;  %vm1985_vm8 = vcmp.eq.f32.partialorder %v1984_v54, 8.507059e+37  ;;  %v2234_v58 = vadd.f32 %v5481_v20, %v2233_v43  ;;  %2455 = vmatpush.bf16.msrb.mxu0 %v2308_v56  ;;  %vm1982_vm9 = vmor %vm1980_vm11, %vm1981_vm6  ;;  %v1987_v22 = vor.u32 1.1754944e-38, %v1986_v23  ;;  %v11217_v23 = vld [vmem:[#allocation14_spill] sm:$0xff]  ;;  %v11218_v43 = vld [vmem:[#allocation23_spill] sm:$0xff] }
 0x29a   : > { %v2033_v50 = vsel %vm8114_vm0, %v2032_v47, %v2028_v3  ;;  %v1992_v57 = vsub.f32 1.0, %v1991_v13  ;;  %vm1996_vm12 = vweird.f32 %v7721_v27  ;;  %v1999_v35 = vand.u32 2147483647, %v7654_v28 }
 0x29b   : > { %v1983_v19 = vsel %vm1982_vm9, %v7695_v63, %v1979_v5  ;;  %v2001_v9 = vand.u32 2147483648, %v7654_v28  ;;  %v2238_v0 = vsel %vm2237_vm14, %v5481_v20, %v2234_v58  ;;  %v1916_v52 = vmul.f32 %v7559_v7, %v7476_v11 }
 0x29c   : > { %v1988_v49 = vsel %vm1985_vm8, %v1987_v22, %v1983_v19  ;;  %v1993_v40 = vmul.f32 %v7721_v27, %v1992_v57  ;;  %v2243_v37 = vsel %vm8104_vm2, %v2242_v45, %v2238_v0  ;;  %v2261_v32 = vmul.f32 %v2018_v16, %v7519_v33 }
 0x29d   : > { %v8151_v63 = vmul.f32 %v2033_v50, %v7538_v8  ;;  %vm1995_vm13 = vweird.f32 %v7654_v28  ;;  %v2276_v34 = vmul.f32 %v2243_v37, %v7953_v31  ;;  %2456 = vmatpush.bf16.msrb.mxu0 %v2306_v44  ;;  %v2259_v20 = vmul.f32 %v1988_v49, %v7480_v59  ;;  %v11221_v50 = vld [vmem:[#allocation11_spill] sm:$0xff] }
 0x29e   : > { %v1994_v39 = vadd.f32 %v7721_v27, %v1993_v40  ;;  %v1917_v46 = vsub.f32 1.0, %v1916_v52  ;;  %vm1997_vm7 = vmor %vm1995_vm13, %vm1996_vm12  ;;  %vm2000_vm15 = vcmp.eq.f32.partialorder %v1999_v35, 8.507059e+37  ;;  %v2002_v33 = vor.u32 1.1754944e-38, %v2001_v9  ;;  %v11222_v35 = vld [vmem:[#allocation26_spill] sm:$0xff] }
 0x29f   : > { %vm1921_vm1 = vweird.f32 %v7559_v7  ;;  %v1924_v8 = vand.u32 2147483647, %v7476_v11  ;;  %v2309_v28 = vpack.c.bf16 %v2276_v34, %v8094_v48  ;;  %v1926_v59 = vand.u32 2147483648, %v7476_v11  ;;  %v11225_v34 = vld [vmem:[#allocation35_spill] sm:$0xff] }
 0x2a0   : > { %v1998_v31 = vsel %vm1997_vm7, %v7721_v27, %v1994_v39  ;;  %v1918_v55 = vmul.f32 %v7559_v7, %v1917_v46  ;;  %v2307_v12 = vpack.c.bf16 %v8047_v17, %v8034_v42  ;;  %v1931_v45 = vmul.f32 %v7569_v29, %v7493_v18  ;;  %v11226_v39 = vld [vmem:[#allocation22_spill] sm:$0xff] }
 0x2a1   : > { %v2003_v44 = vsel %vm2000_vm15, %v2002_v33, %v1998_v31  ;;  %v1804_v2 = vand.u32 2147483647, %v7398_v36  ;;  %2504 = vmatpush.bf16.msrb.mxu1 %v2309_v28  ;;  %2457 = vmatpush.bf16.msrb.mxu0 %v2304_v51  ;;  %v2302_v27 = vpack.c.bf16 %v7823_v4, %v2261_v32  ;;  %v2303_v48 = vpack.c.bf16 %v7868_v10, %v8151_v63  ;;  %v11214_v51 = vld [vmem:[#allocation13_spill] sm:$0xff]  ;;  %v11223_v32 = vld [vmem:[#allocation20_spill] sm:$0xff] }
 0x2a2   : > { %v1919_v16 = vadd.f32 %v7559_v7, %v1918_v55  ;;  %vm1920_vm2 = vweird.f32 %v7476_v11  ;;  %v8182_v42 = vmul.f32 %v2003_v44, %v7497_v21  ;;  %v1927_v17 = vor.u32 1.1754944e-38, %v1926_v59  ;;  %v11227_v55 = vld [vmem:[#allocation16_spill] sm:$0xff] }
 0x2a3   : > { %vm1922_vm0 = vmor %vm1920_vm2, %vm1921_vm1  ;;  %v1932_v30 = vsub.f32 1.0, %v1931_v45  ;;  %v1856_v14 = vmul.f32 %v11213_v15, %v7438_v38  ;;  %v2300_v4 = vpack.c.bf16 %v2259_v20, %v11214_v51  ;;  %vm1925_vm4 = vcmp.eq.f32.partialorder %v1924_v8, 8.507059e+37 }
 0x2a4   : > { %v1923_v24 = vsel %vm1922_vm0, %v7559_v7, %v1919_v16  ;;  %v1939_v10 = vand.u32 2147483647, %v7493_v18  ;;  %vm1936_vm6 = vweird.f32 %v7569_v29  ;;  %v1941_v21 = vand.u32 2147483648, %v7493_v18  ;;  %v11216_v7 = vld [vmem:[#allocation21_spill] sm:$0xff] }
 0x2a5   : > { %v1928_v53 = vsel %vm1925_vm4, %v1927_v17, %v1923_v24  ;;  %v1933_v11 = vmul.f32 %v7569_v29, %v1932_v30  ;;  %2505 = vmatpush.bf16.msrb.mxu1 %v2307_v12  ;;  %2458 = vmatpush.bf16.msrb.mxu0 %v2302_v27  ;;  %vm1935_vm3 = vweird.f32 %v7493_v18  ;;  %v1857_v25 = vsub.f32 1.0, %v1856_v14  ;;  %v11230_v30 = vld [vmem:[#allocation37_spill] sm:$0xff]  ;;  %v11233_v24 = vld [vmem:[#allocation34_spill] sm:$0xff] }
 0x2a6   : > { %v2255_v61 = vmul.f32 %v1928_v53, %v11215_v6  ;;  %v1866_v41 = vand.u32 2147483648, %v7438_v38  ;;  %v2301_v26 = vpack.c.bf16 %v8182_v42, %v11216_v7  ;;  %vm1860_vm11 = vweird.f32 %v7438_v38  ;;  %vm8203_vm8 = vmor %vm1935_vm3, %vm1936_vm6  ;;  %v11228_v42 = vld [vmem:[#allocation38_spill] sm:$0xff] }
 0x2a7   : > { %v1934_v54 = vadd.f32 %v7569_v29, %v1933_v11  ;;  %v1871_v56 = vmul.f32 %v11218_v43, %v11217_v23  ;;  %vm1940_vm9 = vcmp.eq.f32.partialorder %v1939_v10, 8.507059e+37  ;;  %v1858_v18 = vmul.f32 %v11213_v15, %v1857_v25  ;;  %v11234_v10 = vld [vmem:[#allocation31_spill] sm:$0xff]  ;;  %v11236_v11 = vld [vmem:[#allocation18_spill] sm:$0xff] }
 0x2a8   : > { %vm1861_vm14 = vweird.f32 %v11213_v15  ;;  %v1864_v13 = vand.u32 2147483647, %v7438_v38  ;;  %vm1800_vm12 = vweird.f32 %v7398_v36  ;;  %v1942_v5 = vor.u32 1.1754944e-38, %v1941_v21  ;;  %v11224_v38 = vld [vmem:[#allocation9_spill] sm:$0xff] }
 0x2a9   : > { %v1938_v3 = vsel %vm8203_vm8, %v7569_v29, %v1934_v54  ;;  %v1872_v58 = vsub.f32 1.0, %v1871_v56  ;;  %vm1876_vm13 = vweird.f32 %v11218_v43  ;;  %2506 = vmatpush.bf16.msrb.mxu1 %v2305_v60  ;;  %2459 = vmatpush.bf16.msrb.mxu0 %v2300_v4  ;;  %v2298_v22 = vpack.c.bf16 %v2255_v61, %v11221_v50  ;;  %vm1862_vm7 = vmor %vm1860_vm11, %vm1861_vm14 }
 0x2aa   : > { %v1859_v57 = vadd.f32 %v11213_v15, %v1858_v18  ;;  %v1867_v19 = vor.u32 1.1754944e-38, %v1866_v41  ;;  %v1796_v9 = vmul.f32 %v11222_v35, %v7398_v36  ;;  %v1943_v0 = vsel %vm1940_vm9, %v1942_v5, %v1938_v3  ;;  %v11237_v41 = vld [vmem:[#allocation17_spill] sm:$0xff]  ;;  %v11242_v18 = vld [vmem:[#allocation15_spill] sm:$0xff]  ;;  %v11243_v3 = vld [vmem:[#allocation28_spill] sm:$0xff] }
 0x2ab   : > { %v1873_v29 = vmul.f32 %v11218_v43, %v1872_v58  ;;  %v1879_v49 = vand.u32 2147483647, %v11217_v23  ;;  %v1881_v62 = vand.u32 2147483648, %v11217_v23  ;;  %vm1865_vm15 = vcmp.eq.f32.partialorder %v1864_v13, 8.507059e+37 }
 0x2ac   : > { %v1863_v1 = vsel %vm1862_vm7, %v11213_v15, %v1859_v57  ;;  %v1797_v60 = vsub.f32 1.0, %v1796_v9  ;;  %v1806_v40 = vand.u32 2147483648, %v7398_v36  ;;  %vm1875_vm1 = vweird.f32 %v11217_v23  ;;  %v11231_v15 = vld [vmem:[#allocation24_spill] sm:$0xff]  ;;  %v5149_v9 = vld [vmem:[%s6038_s25 + $0x80] sm:$0xff] }
 0x2ad   : > { %v1868_v52 = vsel %vm1865_vm15, %v1867_v19, %v1863_v1  ;;  %v1874_v37 = vadd.f32 %v11218_v43, %v1873_v29  ;;  %v1811_v63 = vmul.f32 %v11224_v38, %v11223_v32  ;;  %2507 = vmatpush.bf16.msrb.mxu1 %v2303_v48  ;;  %2460 = vmatpush.bf16.msrb.mxu0 %v2298_v22  ;;  %vm1877_vm2 = vmor %vm1875_vm1, %vm1876_vm13  ;;  %vm1801_vm0 = vweird.f32 %v11222_v35  ;;  %v11245_v22 = vld [vmem:[#allocation33_spill] sm:$0xff]  ;;  %v11246_v57 = vld [vmem:[#allocation32_spill] sm:$0xff] }
 0x2ae   : > { %v2256_v20 = vmul.f32 %v1943_v0, %v11225_v34  ;;  %v2251_v46 = vmul.f32 %v1868_v52, %v11226_v39  ;;  %v1798_v33 = vmul.f32 %v11222_v35, %v1797_v60  ;;  %vm1880_vm4 = vcmp.eq.f32.partialorder %v1879_v49, 8.507059e+37  ;;  %vm1802_vm6 = vmor %vm1800_vm12, %vm1801_vm0  ;;  %v11248_v29 = vld [vmem:[#allocation27_spill] sm:$0xff]  ;;  %v8292_v39 = vpop.permute.xlu1 %2389 }
 0x2af   : > { %v1878_v8 = vsel %vm1877_vm2, %v11218_v43, %v1874_v37  ;;  %v1882_v28 = vor.u32 1.1754944e-38, %v1881_v62  ;;  %v1812_v31 = vsub.f32 1.0, %v1811_v63  ;;  %v1807_v44 = vor.u32 1.1754944e-38, %v1806_v40  ;;  %v11249_v62 = vld [vmem:[#allocation30_spill] sm:$0xff]  ;;  %v5151_v52 = vld [vmem:[%s6038_s25 + $0x90] sm:$0xff]  ;;  %v5152_v37 = vld [vmem:[%s6038_s25 + $0x98] sm:$0xff]  ;;  %v8287_v63 = vpop.permute.xlu2 %2399 }
 0x2b0   : > { %v2296_v59 = vpack.c.bf16 %v2251_v46, %v11227_v55  ;;  %v1799_v12 = vadd.f32 %v11222_v35, %v1798_v33  ;;  %v1821_v45 = vand.u32 2147483648, %v11223_v32  ;;  %vm1816_vm3 = vweird.f32 %v11224_v38  ;;  %v5150_v40 = vld [vmem:[%s6038_s25 + $0x88] sm:$0xff]  ;;  %v5155_v34 = vld [vmem:[%s6038_s25 + $0xb0] sm:$0xff]  ;;  %v5156_v33 = vld [vmem:[%s6038_s25 + $0xb8] sm:$0xff] }
 0x2b1   : > { %v1883_v27 = vsel %vm1880_vm4, %v1882_v28, %v1878_v8  ;;  %v1813_v48 = vmul.f32 %v11224_v38, %v1812_v31  ;;  %v1819_v16 = vand.u32 2147483647, %v11223_v32  ;;  %v11229_v17 = vand.u32 2147483647, %v11228_v42  ;;  %2508 = vmatpush.bf16.msrb.mxu1 %v2301_v26  ;;  %v11238_v26 = vld [vmem:[#allocation19_spill] sm:$0xff]  ;;  %v8299_v28 = vpop.permute.xlu0 %2404 }
 0x2b2   : > { %v2254_v14 = vmul.f32 %v11231_v15, %v11230_v30  ;;  %2461 = vmatpush.bf16.msrb.mxu0 %v2296_v59  ;;  %v1803_v51 = vsel %vm1802_vm6, %v11222_v35, %v1799_v12  ;;  %vm1805_vm8 = vcmp.eq.f32.partialorder %v1804_v2, 8.507059e+37  ;;  %v11235_v53 = vsel %vm7528_vm10, %v11233_v24, %v11234_v10  ;;  %v11239_v2 = vld [vmem:[#allocation29_spill] sm:$0xff] }
 0x2b3   : > { %vm1850_vm11 = vcmp.eq.f32.partialorder %v11229_v17, 8.507059e+37  ;;  %v1808_v6 = vsel %vm1805_vm8, %v1807_v44, %v1803_v51  ;;  %v1814_v61 = vadd.f32 %v11224_v38, %v1813_v48  ;;  %vm1815_vm9 = vweird.f32 %v11223_v32  ;;  %v5153_v32 = vld [vmem:[%s6038_s25 + $0xa0] sm:$0xff] }
 0x2b4   : > { %v1853_v21 = vsel %vm1850_vm11, %v11236_v11, %v11235_v53  ;;  %v2299_v25 = vpack.c.bf16 %v2256_v20, %v2254_v14  ;;  %v2252_v7 = vmul.f32 %v1883_v27, %v11237_v41  ;;  %v2247_v54 = vmul.f32 %v1808_v6, %v11238_v26  ;;  %vm1817_vm14 = vmor %vm1815_vm9, %vm1816_vm3 }
 0x2b5   : > { %v1822_v36 = vor.u32 1.1754944e-38, %v1821_v45  ;;  %v11240_v23 = vand.u32 2147483648, %v11239_v2  ;;  %v1818_v56 = vsel %vm1817_vm14, %v11224_v38, %v1814_v61  ;;  %vm1820_vm10 = vcmp.eq.f32.partialorder %v1819_v16, 8.507059e+37  ;;  %v5154_v38 = vld [vmem:[%s6038_s25 + $0xa8] sm:$0xff] }
 0x2b6   : > { %v11241_v47 = vand.u32 2147483647, %v11239_v2  ;;  %v2250_v13 = vmul.f32 %v1853_v21, %v11242_v18  ;;  %2509 = vmatpush.bf16.msrb.mxu1 %v2299_v25  ;;  %v2294_v5 = vpack.c.bf16 %v2247_v54, %v11243_v3  ;;  %v11247_v19 = vsel %vm7432_vm5, %v11245_v22, %v11246_v57  ;;  %v8297_v8 = vpop.permute.xlu1 %2384 }
 0x2b7   : > { %v1792_v43 = vor.u32 1.1754944e-38, %v11240_v23  ;;  %v1823_v58 = vsel %vm1820_vm10, %v1822_v36, %v1818_v56  ;;  %v8290_v20 = vpop.permute.xlu2 %2394 }
 0x2b8   : > { %vm1790_vm12 = vcmp.eq.f32.partialorder %v11241_v47, 8.507059e+37  ;;  %v2297_v0 = vpack.c.bf16 %v2252_v7, %v2250_v13  ;;  %2462 = vmatpush.bf16.msrb.mxu0 %v2294_v5  ;;  %v2248_v49 = vmul.f32 %v1823_v58, %v11248_v29 }
 0x2b9   : > { %v1793_v35 = vsel %vm1790_vm12, %v1792_v43, %v11247_v19  ;;  %v8305_v12 = vpop.permute.xlu0 %2379 }
 0x2ba   : > { %v2246_v1 = vmul.f32 %v1793_v35, %v11249_v62  ;;  %2510 = vmatpush.bf16.msrb.mxu1 %v2297_v0 }
 0x2bb   : > { %2463 = vmatmul.bf16.vlgmr.msrb.gmra.mxu0 %v5149_v9 }
 0x2bc   : > { %v2295_v60 = vpack.c.bf16 %v2248_v49, %v2246_v1 }
 0x2be   : > { %2511 = vmatpush.bf16.msrb.mxu1 %v2295_v60  ;;  %v8303_v55 = vpop.permute.xlu1 %2359 }
 0x2bf   : > { %v8294_v46 = vpop.permute.xlu2 %2369 }
 0x2c1   : > { %2512 = vmatmul.bf16.vlgmr.msrb.gmra.mxu1 %v5149_v9  ;;  %v8309_v16 = vpop.permute.xlu0 %2374 }
 0x2c6   : > { %v8307_v45 = vpop.permute.xlu1 %2354 }
 0x2c7   : > { %v8301_v31 = vpop.permute.xlu2 %2364 }
 0x2c9   : > { %v2350_v10 = vpop.permute.xlu0 %2349 }
 0x2cb   : > { %2468 = vmatmul.bf16.gmra.mxu0 %v5150_v40 }
 0x2ce   : > { %v2330_v17 = vpop.permute.xlu1 %2329 }
 0x2cf   : > { %v2340_v44 = vpop.permute.xlu2 %2339 }
 0x2d1   : > { %2517 = vmatmul.bf16.gmra.mxu1 %v5150_v40  ;;  %v2345_v54 = vpop.permute.xlu0 %2344 }
 0x2d7   : > { %v2335_v42 = vpop.permute.xlu2 %2334 }
 0x2db   : > { %2473 = vmatmul.bf16.gmra.mxu0 %v5151_v52 }
 0x2e1   : > { %2522 = vmatmul.bf16.gmra.mxu1 %v5151_v52 }
 0x2eb   : > { %2478 = vmatmul.bf16.gmra.mxu0 %v5152_v37 }
 0x2f1   : > { %2527 = vmatmul.bf16.gmra.mxu1 %v5152_v37 }
 0x2fb   : > { %2483 = vmatmul.bf16.gmra.mxu0 %v5153_v32 }
 0x301   : > { %2532 = vmatmul.bf16.gmra.mxu1 %v5153_v32 }
 0x30b   : > { %2488 = vmatmul.bf16.gmra.mxu0 %v5154_v38 }
 0x311   : > { %2537 = vmatmul.bf16.gmra.mxu1 %v5154_v38 }
 0x31b   : > { %2493 = vmatmul.bf16.gmra.mxu0 %v5155_v34 }
 0x321   : > { %2542 = vmatmul.bf16.gmra.mxu1 %v5155_v34 }
 0x32b   : > { %2498 = vmatmul.bf16.gmra.mxu0 %v5156_v33 }
 0x331   : > { %2547 = vmatmul.bf16.gmra.mxu1 %v5156_v33 }
 0x338   : > { %v2464_v59 = vpop.f32.mrf.mxu0 }
 0x339   : > { %v8311_v15 = vadd.f32 %v2464_v59, %v2330_v17 }
 0x33b   : > { %v4917_v4 = vmul.f32 -1.442695, %v8311_v15 }
 0x33d   : > { %5482 = vpow2.f32 %v4917_v4 }
 0x33e   : > { %v2513_v27 = vpop.f32.mrf.mxu1 }
 0x33f   : > { %v8316_v24 = vadd.f32 %v2513_v27, %v2330_v17 }
 0x340   : > { %v2466_v48 = vpop.f32.mrf.mxu0 }
 0x341   : > { %v8318_v53 = vadd.f32 %v2466_v48, %v2335_v42  ;;  %v4918_v21 = vmul.f32 -1.442695, %v8316_v24 }
 0x343   : > { %v4919_v61 = vmul.f32 -1.442695, %v8318_v53  ;;  %5484 = vpow2.f32 %v4918_v21  ;;  %v5483_v41 = vpop.eup %5482 }
 0x344   : > { %v8325_v36 = vadd.f32 1.0, %v5483_v41 }
 0x345   : > { %5486 = vpow2.f32 %v4919_v61 }
 0x346   : > { %v2515_v30 = vpop.f32.mrf.mxu1  ;;  %v2690_v48 = vand.u32 2147483647, %v8325_v36  ;;  %vm2686_vm5 = vweird.f32 %v8325_v36 }
 0x347   : > { %v8313_v14 = vadd.f32 %v2515_v30, %v2335_v42  ;;  %v2692_v42 = vand.u32 2147483648, %v8325_v36 }
 0x348   : > { %v2469_v51 = vpop.f32.mrf.mxu0  ;;  %vm8384_vm13 = vcmp.eq.f32.partialorder %v2690_v48, 8.507059e+37 }
 0x349   : > { %v4920_v25 = vmul.f32 -1.442695, %v8313_v14  ;;  %v8323_v7 = vadd.f32 %v2469_v51, %v2340_v44  ;;  %v5485_v56 = vpop.eup %5484  ;;  %v2693_v41 = vor.u32 1.1754944e-38, %v2692_v42 }
 0x34a   : > { %v8331_v13 = vadd.f32 1.0, %v5485_v56 }
 0x34b   : > { %5488 = vpow2.f32 %v4920_v25  ;;  %v4921_v2 = vmul.f32 -1.442695, %v8323_v7  ;;  %v5487_v47 = vpop.eup %5486 }
 0x34c   : > { %5490 = vrcp.f32 %v8325_v36  ;;  %v8337_v50 = vadd.f32 1.0, %v5487_v47  ;;  %vm2701_vm7 = vweird.f32 %v8331_v13  ;;  %v2707_v56 = vand.u32 2147483648, %v8331_v13 }
 0x34d   : > { %5492 = vpow2.f32 %v4921_v2 }
 0x34e   : > { %v2518_v11 = vpop.f32.mrf.mxu1  ;;  %5494 = vrcp.f32 %v8331_v13  ;;  %v2708_v48 = vor.u32 1.1754944e-38, %v2707_v56  ;;  %vm2716_vm4 = vweird.f32 %v8337_v50 }
 0x34f   : > { %v8333_v3 = vadd.f32 %v2518_v11, %v2340_v44  ;;  %5496 = vrcp.f32 %v8337_v50 }
 0x350   : > { %v2471_v6 = vpop.f32.mrf.mxu0 }
 0x351   : > { %v5489_v18 = vpop.eup %5488  ;;  %v8335_v5 = vadd.f32 %v2471_v6, %v2345_v54  ;;  %v4922_v57 = vmul.f32 -1.442695, %v8333_v3 }
 0x352   : > { %v8339_v22 = vadd.f32 1.0, %v5489_v18  ;;  %v8345_v35 = vpop.eup %5490 }
 0x353   : > { %v4923_v9 = vmul.f32 -1.442695, %v8335_v5  ;;  %v5493_v0 = vpop.eup %5492  ;;  %v2682_v49 = vmul.f32 %v8345_v35, %v8325_v36  ;;  %vm2687_vm15 = vweird.f32 %v8345_v35 }
 0x354   : > { %5498 = vrcp.f32 %v8339_v22  ;;  %v8352_v62 = vadd.f32 1.0, %v5493_v0  ;;  %v8356_v60 = vpop.eup %5494  ;;  %vm8416_vm1 = vmor %vm2686_vm5, %vm2687_vm15  ;;  %vm2731_vm14 = vweird.f32 %v8339_v22 }
 0x355   : > { %5500 = vpow2.f32 %v4922_v57  ;;  %v8359_v37 = vpop.eup %5496  ;;  %v2683_v32 = vsub.f32 1.0, %v2682_v49  ;;  %v2697_v34 = vmul.f32 %v8356_v60, %v8331_v13  ;;  %v2720_v49 = vand.u32 2147483647, %v8337_v50 }
 0x356   : > { %v2520_v26 = vpop.f32.mrf.mxu1  ;;  %5502 = vpow2.f32 %v4923_v9  ;;  %v2712_v51 = vmul.f32 %v8359_v37, %v8337_v50  ;;  %vm2702_vm2 = vweird.f32 %v8356_v60  ;;  %vm2717_vm11 = vweird.f32 %v8359_v37 }
 0x357   : > { %v8328_v23 = vadd.f32 %v2520_v26, %v2345_v54  ;;  %5504 = vrcp.f32 %v8352_v62  ;;  %v2684_v17 = vmul.f32 %v8345_v35, %v2683_v32  ;;  %v2698_v30 = vsub.f32 1.0, %v2697_v34  ;;  %vm8455_vm3 = vmor %vm2701_vm7, %vm2702_vm2 }
 0x358   : > { %v2474_v43 = vpop.f32.mrf.mxu0  ;;  %v2713_v18 = vsub.f32 1.0, %v2712_v51  ;;  %vm8436_vm6 = vcmp.eq.f32.partialorder %v2720_v49, 8.507059e+37  ;;  %vm8484_vm9 = vmor %vm2716_vm4, %vm2717_vm11  ;;  %vm2746_vm5 = vweird.f32 %v8352_v62 }
 0x359   : > { %v8354_v1 = vadd.f32 %v2474_v43, %v2350_v10  ;;  %v4924_v40 = vmul.f32 -1.442695, %v8328_v23  ;;  %v2685_v2 = vadd.f32 %v8345_v35, %v2684_v17  ;;  %v2705_v43 = vand.u32 2147483647, %v8331_v13 }
 0x35a   : > { %v8361_v38 = vpop.eup %5498  ;;  %v2699_v47 = vmul.f32 %v8356_v60, %v2698_v30  ;;  %v2714_v36 = vmul.f32 %v8359_v37, %v2713_v18  ;;  %v2752_v13 = vand.u32 2147483648, %v8352_v62 }
 0x35b   : > { %v4925_v33 = vmul.f32 -1.442695, %v8354_v1  ;;  %v5501_v59 = vpop.eup %5500  ;;  %5506 = vpow2.f32 %v4924_v40  ;;  %v2722_v40 = vand.u32 2147483648, %v8337_v50  ;;  %vm8421_vm0 = vcmp.eq.f32.partialorder %v2705_v43, 8.507059e+37 }
 0x35c   : > { %v5503_v27 = vpop.eup %5502  ;;  %v8372_v4 = vadd.f32 1.0, %v5501_v59  ;;  %v2715_v25 = vadd.f32 %v8359_v37, %v2714_v36  ;;  %vm2732_vm8 = vweird.f32 %v8361_v38 }
 0x35d   : > { %5508 = vpow2.f32 %v4925_v33  ;;  %v8377_v11 = vadd.f32 1.0, %v5503_v27  ;;  %v8382_v61 = vpop.eup %5504  ;;  %vm8502_vm12 = vmor %vm2731_vm14, %vm2732_vm8 }
 0x35e   : > { %v2523_v58 = vpop.f32.mrf.mxu1  ;;  %5510 = vrcp.f32 %v8372_v4  ;;  %v2742_v9 = vmul.f32 %v8382_v61, %v8352_v62  ;;  %v2719_v50 = vsel %vm8484_vm9, %v8359_v37, %v2715_v25  ;;  %vm2761_vm15 = vweird.f32 %v8372_v4 }
 0x35f   : > { %v8343_v19 = vadd.f32 %v2523_v58, %v2350_v10  ;;  %v2727_v10 = vmul.f32 %v8361_v38, %v8339_v22  ;;  %5512 = vrcp.f32 %v8377_v11  ;;  %vm2776_vm4 = vweird.f32 %v8377_v11 }
 0x360   : > { %v2476_v29 = vpop.f32.mrf.mxu0  ;;  %v2743_v17 = vsub.f32 1.0, %v2742_v9 }
 0x361   : > { %v8380_v21 = vadd.f32 %v2476_v29, %v8307_v45  ;;  %v5507_v54 = vpop.eup %5506  ;;  %v4926_v58 = vmul.f32 -1.442695, %v8343_v19  ;;  %v2728_v57 = vsub.f32 1.0, %v2727_v10 }
 0x362   : > { %v8405_v32 = vadd.f32 1.0, %v5507_v54 }
 0x363   : > { %v4927_v0 = vmul.f32 -1.442695, %v8380_v21  ;;  %v5509_v29 = vpop.eup %5508  ;;  %5514 = vpow2.f32 %v4926_v58  ;;  %v2729_v42 = vmul.f32 %v8361_v38, %v2728_v57  ;;  %v2744_v57 = vmul.f32 %v8382_v61, %v2743_v17 }
 0x364   : > { %v8432_v30 = vadd.f32 1.0, %v5509_v29  ;;  %v8434_v51 = vpop.eup %5510  ;;  %vm2791_vm11 = vweird.f32 %v8405_v32 }
 0x365   : > { %5516 = vpow2.f32 %v4927_v0  ;;  %v8447_v43 = vpop.eup %5512  ;;  %v2730_v58 = vadd.f32 %v8361_v38, %v2729_v42  ;;  %v2757_v0 = vmul.f32 %v8434_v51, %v8372_v4  ;;  %vm2762_vm2 = vweird.f32 %v8434_v51 }
 0x366   : > { %v2525_v52 = vpop.f32.mrf.mxu1  ;;  %5518 = vrcp.f32 %v8405_v32  ;;  %vm8612_vm8 = vmor %vm2761_vm15, %vm2762_vm2 }
 0x367   : > { %v8408_v34 = vadd.f32 %v2525_v52, %v8307_v45  ;;  %v2689_v45 = vsel %vm8416_vm1, %v8345_v35, %v2685_v2  ;;  %v2700_v52 = vadd.f32 %v8356_v60, %v2699_v47  ;;  %5520 = vrcp.f32 %v8432_v30 }
 0x368   : > { %v2479_v44 = vpop.f32.mrf.mxu0  ;;  %v2694_v56 = vsel %vm8384_vm13, %v2693_v41, %v2689_v45  ;;  %v2750_v41 = vand.u32 2147483647, %v8352_v62  ;;  %v2734_v27 = vsel %vm8502_vm12, %v8361_v38, %v2730_v58  ;;  %vm2747_vm13 = vweird.f32 %v8382_v61 }
 0x369   : > { %v4928_v35 = vmul.f32 -1.442695, %v8408_v34  ;;  %v8443_v54 = vadd.f32 %v2479_v44, %v8303_v55  ;;  %v2737_v44 = vand.u32 2147483648, %v8339_v22  ;;  %v2704_v18 = vsel %vm8455_vm3, %v8356_v60, %v2700_v52  ;;  %v5515_v9 = vpop.eup %5514  ;;  %vm8545_vm1 = vmor %vm2746_vm5, %vm2747_vm13 }
 0x36a   : > { %v2772_v60 = vmul.f32 %v8447_v43, %v8377_v11  ;;  %vm8514_vm7 = vcmp.eq.f32.partialorder %v2750_v41, 8.507059e+37  ;;  %v2765_v58 = vand.u32 2147483647, %v8372_v4  ;;  %vm2806_vm12 = vweird.f32 %v8432_v30 }
 0x36b   : > { %5522 = vpow2.f32 %v4928_v35  ;;  %v4929_v29 = vmul.f32 -1.442695, %v8443_v54  ;;  %v5517_v49 = vpop.eup %5516  ;;  %v2738_v52 = vor.u32 1.1754944e-38, %v2737_v44  ;;  %v8518_v35 = vadd.f32 1.0, %v5515_v9 }
 0x36c   : > { %v8493_v36 = vpop.eup %5518  ;;  %v2773_v47 = vsub.f32 1.0, %v2772_v60  ;;  %v2782_v60 = vand.u32 2147483648, %v8377_v11 }
 0x36d   : > { %5524 = vpow2.f32 %v4929_v29  ;;  %v8522_v44 = vpop.eup %5520  ;;  %v2787_v25 = vmul.f32 %v8493_v36, %v8405_v32  ;;  %vm2792_vm14 = vweird.f32 %v8493_v36  ;;  %vm2821_vm15 = vweird.f32 %v8518_v35 }
 0x36e   : > { %v2528_v6 = vpop.f32.mrf.mxu1  ;;  %5526 = vrcp.f32 %v8518_v35  ;;  %v2802_v59 = vmul.f32 %v8522_v44, %v8432_v30  ;;  %vm8664_vm5 = vmor %vm2791_vm11, %vm2792_vm14 }
 0x36f   : > { %v8390_v26 = vadd.f32 %v2528_v6, %v8303_v55  ;;  %v2723_v6 = vor.u32 1.1754944e-38, %v2722_v40  ;;  %v2735_v55 = vand.u32 2147483647, %v8339_v22  ;;  %v8478_v40 = vmul.f32 %v2694_v56, %v8311_v15 }
 0x370   : > { %v8410_v33 = vpop.f32.mrf.mxu0  ;;  %v2709_v15 = vsel %vm8421_vm0, %v2708_v48, %v2704_v18  ;;  %v2753_v22 = vor.u32 1.1754944e-38, %v2752_v13  ;;  %v2745_v48 = vadd.f32 %v8382_v61, %v2744_v57  ;;  %v2758_v56 = vsub.f32 1.0, %v2757_v0 }
 0x371   : > { %vm8489_vm10 = vcmp.eq.f32.partialorder %v2735_v55, 8.507059e+37  ;;  %v8520_v55 = vadd.f32 1.0, %v5517_v49  ;;  %v8525_v18 = vmul.f32 %v2709_v15, %v8316_v24  ;;  %v2724_v38 = vsel %vm8436_vm6, %v2723_v6, %v2719_v50  ;;  %v5523_v13 = vpop.eup %5522 }
 0x372   : > { %v4930_v41 = vmul.f32 -1.442695, %v8390_v26  ;;  %v2767_v57 = vand.u32 2147483648, %v8372_v4  ;;  %v8537_v9 = vadd.f32 %v8410_v33, %v8301_v31  ;;  %v2739_v10 = vsel %vm8489_vm10, %v2738_v52, %v2734_v27  ;;  %v8570_v27 = vpop.permute.xlu0 %3315 }
 0x373   : > { %v2780_v0 = vand.u32 2147483647, %v8377_v11  ;;  %v2749_v33 = vsel %vm8545_vm1, %v8382_v61, %v2745_v48  ;;  %v2759_v29 = vmul.f32 %v8434_v51, %v2758_v56  ;;  %v2774_v49 = vmul.f32 %v8447_v43, %v2773_v47  ;;  %v5525_v52 = vpop.eup %5524  ;;  %11270 = vst [vmem:[#allocation8_spill] sm:$0xff] %v8570_v27 }
 0x374   : > { %5528 = vrcp.f32 %v8520_v55  ;;  %v2788_v62 = vsub.f32 1.0, %v2787_v25  ;;  %v8560_v45 = vadd.f32 1.0, %v5523_v13  ;;  %v8563_v15 = vmul.f32 %v2724_v38, %v8318_v53  ;;  %v8592_v25 = vpop.eup %5526 }
 0x375   : > { %5530 = vpow2.f32 %v4930_v41  ;;  %v2768_v50 = vor.u32 1.1754944e-38, %v2767_v57  ;;  %v4931_v61 = vmul.f32 -1.442695, %v8537_v9  ;;  %v8573_v48 = vmul.f32 %v2739_v10, %v8313_v14  ;;  %v8594_v41 = vpop.permute.xlu2 %3305 }
 0x376   : > { %v8445_v2 = vpop.f32.mrf.mxu1  ;;  %vm8576_vm0 = vcmp.eq.f32.partialorder %v2765_v58, 8.507059e+37  ;;  %v2783_v53 = vor.u32 1.1754944e-38, %v2782_v60  ;;  %v2754_v47 = vsel %vm8514_vm7, %v2753_v22, %v2749_v33  ;;  %vm2777_vm6 = vweird.f32 %v8447_v43  ;;  %11275 = vst [vmem:[#allocation12_spill] sm:$0xff] %v8594_v41 }
 0x377   : > { %v8568_v42 = vadd.f32 %v8445_v2, %v8301_v31  ;;  %v2760_v31 = vadd.f32 %v8434_v51, %v2759_v29  ;;  %v2775_v2 = vadd.f32 %v8447_v43, %v2774_v49  ;;  %vm8586_vm3 = vcmp.eq.f32.partialorder %v2780_v0, 8.507059e+37  ;;  %vm8628_vm9 = vmor %vm2776_vm4, %vm2777_vm6 }
 0x378   : > { %v8507_v17 = vpop.f32.mrf.mxu0  ;;  %v2789_v13 = vmul.f32 %v8493_v36, %v2788_v62  ;;  %v2803_v37 = vsub.f32 1.0, %v2802_v59  ;;  %5532 = vrcp.f32 %v8560_v45  ;;  %v8598_v22 = vadd.f32 1.0, %v5525_v52 }
 0x379   : > { %v2795_v57 = vand.u32 2147483647, %v8405_v32  ;;  %5534 = vpow2.f32 %v4931_v61  ;;  %v4932_v10 = vmul.f32 -1.442695, %v8568_v42  ;;  %v8606_v0 = vmul.f32 %v2754_v47, %v8323_v7 }
 0x37a   : > { %v8600_v58 = vpop.eup %5528  ;;  %v2797_v33 = vand.u32 2147483648, %v8405_v32  ;;  %v2810_v29 = vand.u32 2147483647, %v8432_v30  ;;  %v2764_v7 = vsel %vm8612_vm8, %v8434_v51, %v2760_v31  ;;  %v2812_v62 = vand.u32 2147483648, %v8432_v30  ;;  %v8674_v4 = vpop.permute.xlu0 %3310 }
 0x37b   : > { %v5531_v6 = vpop.eup %5530  ;;  %v2779_v51 = vsel %vm8628_vm9, %v8447_v43, %v2775_v2  ;;  %v2790_v52 = vadd.f32 %v8493_v36, %v2789_v13  ;;  %v2804_v11 = vmul.f32 %v8522_v44, %v2803_v37  ;;  %5536 = vrcp.f32 %v8598_v22  ;;  %11287 = vst [vmem:[#allocation13_spill] sm:$0xff] %v8674_v4 }
 0x37c   : > { %v2817_v61 = vmul.f32 %v8592_v25, %v8518_v35  ;;  %v2832_v47 = vmul.f32 %v8600_v58, %v8520_v55  ;;  %v8648_v31 = vadd.f32 1.0, %v5531_v6  ;;  %5538 = vpow2.f32 %v4932_v10 }
 0x37d   : > { %vm8652_vm10 = vcmp.eq.f32.partialorder %v2795_v57, 8.507059e+37  ;;  %v2798_v43 = vor.u32 1.1754944e-38, %v2797_v33  ;;  %v2769_v37 = vsel %vm8576_vm0, %v2768_v50, %v2764_v7  ;;  %vm8668_vm13 = vcmp.eq.f32.partialorder %v2810_v29, 8.507059e+37 }
 0x37e   : > { %v2533_v24 = vpop.f32.mrf.mxu1  ;;  %v2813_v6 = vor.u32 1.1754944e-38, %v2812_v62  ;;  %v2827_v60 = vand.u32 2147483648, %v8518_v35  ;;  %v2784_v50 = vsel %vm8586_vm3, %v2783_v53, %v2779_v51  ;;  %v2794_v32 = vsel %vm8664_vm5, %v8493_v36, %v2790_v52  ;;  %v8690_v53 = vpop.permute.xlu2 %3300 }
 0x37f   : > { %v8619_v49 = vadd.f32 %v2533_v24, %v8294_v46  ;;  %v8636_v24 = vadd.f32 %v8507_v17, %v8294_v46  ;;  %v8650_v46 = vpop.eup %5532  ;;  %v2805_v56 = vadd.f32 %v8522_v44, %v2804_v11  ;;  %vm2807_vm7 = vweird.f32 %v8522_v44  ;;  %11288 = vst [vmem:[#allocation25_spill] sm:$0xff] %v8690_v53 }
 0x380   : > { %v8590_v38 = vpop.f32.mrf.mxu0  ;;  %v5535_v13 = vpop.eup %5534  ;;  %v2818_v29 = vsub.f32 1.0, %v2817_v61  ;;  %v2833_v7 = vsub.f32 1.0, %v2832_v47  ;;  %v2847_v62 = vmul.f32 %v8650_v46, %v8560_v45  ;;  %5540 = vrcp.f32 %v8648_v31  ;;  %vm8710_vm1 = vmor %vm2806_vm12, %vm2807_vm7 }
 0x381   : > { %11280 = vst [vmem:[#allocation10_spill] sm:$0xff] %v8636_v24  ;;  %v4934_v2 = vmul.f32 -1.442695, %v8619_v49  ;;  %v4933_v33 = vmul.f32 -1.442695, %v8636_v24  ;;  %v8688_v4 = vpop.eup %5536  ;;  %v8693_v14 = vmul.f32 %v2769_v37, %v8333_v3  ;;  %v8696_v36 = vadd.f32 1.0, %v5535_v13 }
 0x382   : > { %v5539_v51 = vpop.eup %5538  ;;  %v8699_v52 = vmul.f32 %v2784_v50, %v8335_v5  ;;  %v2825_v11 = vand.u32 2147483647, %v8518_v35  ;;  %v8702_v61 = vor.u32 1.1754944e-38, %v2827_v60  ;;  %v2799_v47 = vsel %vm8652_vm10, %v2798_v43, %v2794_v32  ;;  %v8727_v60 = vpop.permute.xlu1 %3320 }
 0x383   : > { %5542 = vpow2.f32 %v4934_v2  ;;  %v2840_v2 = vand.u32 2147483647, %v8520_v55  ;;  %v2842_v5 = vand.u32 2147483648, %v8520_v55  ;;  %v8718_v13 = vadd.f32 %v8590_v38, %v8309_v16  ;;  %11292 = vst [vmem:[#allocation14_spill] sm:$0xff] %v8727_v60 }
 0x384   : > { %5544 = vpow2.f32 %v4933_v33  ;;  %v2809_v17 = vsel %vm8710_vm1, %v8522_v44, %v2805_v56  ;;  %v2819_v43 = vmul.f32 %v8592_v25, %v2818_v29  ;;  %v2834_v30 = vmul.f32 %v8600_v58, %v2833_v7 }
 0x385   : > { %11291 = vst [vmem:[#allocation21_spill] sm:$0xff] %v8718_v13  ;;  %v2848_v37 = vsub.f32 1.0, %v2847_v62  ;;  %v2862_v33 = vmul.f32 %v8688_v4, %v8598_v22  ;;  %5546 = vrcp.f32 %v8696_v36  ;;  %v8732_v38 = vadd.f32 1.0, %v5539_v51 }
 0x386   : > { %v2535_v59 = vpop.f32.mrf.mxu1  ;;  %v8737_v44 = vpop.eup %5540  ;;  %v8740_v32 = vmul.f32 %v2799_v47, %v8328_v23  ;;  %vm2822_vm2 = vweird.f32 %v8592_v25  ;;  %vm8743_vm0 = vcmp.eq.f32.partialorder %v2825_v11, 8.507059e+37  ;;  %vm2836_vm4 = vweird.f32 %v8520_v55 }
 0x387   : > { %v8735_v50 = vadd.f32 %v2535_v59, %v8309_v16  ;;  %v2857_v29 = vand.u32 2147483648, %v8560_v45  ;;  %v2814_v16 = vsel %vm8668_vm13, %v2813_v6, %v2809_v17  ;;  %vm8751_vm6 = vcmp.eq.f32.partialorder %v2840_v2, 8.507059e+37  ;;  %v8761_v6 = vpop.permute.xlu0 %3285  ;;  %vm8774_vm11 = vmor %vm2821_vm15, %vm2822_vm2  ;;  %v8783_v53 = vpop.permute.xlu2 %3275 }
 0x388   : > { %v8686_v27 = vpop.f32.mrf.mxu0  ;;  %v2843_v23 = vor.u32 1.1754944e-38, %v2842_v5  ;;  %v2855_v62 = vand.u32 2147483647, %v8560_v45  ;;  %v4935_v51 = vmul.f32 -1.442695, %v8718_v13  ;;  %v2820_v47 = vadd.f32 %v8592_v25, %v2819_v43  ;;  %11297 = vst [vmem:[#allocation23_spill] sm:$0xff] %v8761_v6 }
 0x389   : > { %v5543_v7 = vpop.eup %5542  ;;  %v2835_v3 = vadd.f32 %v8600_v58, %v2834_v30  ;;  %vm2837_vm3 = vweird.f32 %v8600_v58  ;;  %v2849_v60 = vmul.f32 %v8650_v46, %v2848_v37  ;;  %v2863_v2 = vsub.f32 1.0, %v2862_v33  ;;  %11300 = vst [vmem:[#allocation11_spill] sm:$0xff] %v8783_v53 }
 0x38a   : > { %v5545_v11 = vpop.eup %5544  ;;  %v2877_v5 = vmul.f32 %v8737_v44, %v8648_v31  ;;  %5548 = vrcp.f32 %v8732_v38  ;;  %v4936_v17 = vmul.f32 -1.442695, %v8735_v50  ;;  %v8768_v41 = vmul.f32 %v2814_v16, %v8354_v1  ;;  %vm8789_vm9 = vmor %vm2836_vm4, %vm2837_vm3 }
 0x38b   : > { %vm2851_vm8 = vweird.f32 %v8560_v45  ;;  %v2858_v30 = vor.u32 1.1754944e-38, %v2857_v29  ;;  %v8779_v37 = vadd.f32 1.0, %v5543_v7  ;;  %v8781_v33 = vpop.eup %5546  ;;  %vm8793_vm14 = vcmp.eq.f32.partialorder %v2855_v62, 8.507059e+37 }
 0x38c   : > { %v2870_v29 = vand.u32 2147483647, %v8598_v22  ;;  %v2872_v7 = vand.u32 2147483648, %v8598_v22  ;;  %v8799_v16 = vadd.f32 1.0, %v5545_v11  ;;  %5550 = vpow2.f32 %v4935_v51 }
 0x38d   : > { %v2824_v6 = vsel %vm8774_vm11, %v8592_v25, %v2820_v47  ;;  %v2839_v55 = vsel %vm8789_vm9, %v8600_v58, %v2835_v3  ;;  %v2850_v62 = vadd.f32 %v8650_v46, %v2849_v60  ;;  %vm2852_vm10 = vweird.f32 %v8650_v46  ;;  %v8823_v47 = vpop.permute.xlu1 %3295 }
 0x38e   : > { %v8725_v10 = vpop.f32.mrf.mxu1  ;;  %v2864_v53 = vmul.f32 %v8688_v4, %v2863_v2  ;;  %v2878_v24 = vsub.f32 1.0, %v2877_v5  ;;  %5552 = vpow2.f32 %v4936_v17  ;;  %v8812_v11 = vadd.f32 %v8686_v27, %v8305_v12  ;;  %11305 = vst [vmem:[#allocation26_spill] sm:$0xff] %v8823_v47  ;;  %vm8836_vm5 = vmor %vm2851_vm8, %vm2852_vm10 }
 0x38f   : > { %vm2866_vm12 = vweird.f32 %v8598_v22  ;;  %v2892_v25 = vmul.f32 %v8781_v33, %v8696_v36  ;;  %5554 = vrcp.f32 %v8779_v37  ;;  %v2829_v27 = vsel %vm8743_vm0, %v8702_v61, %v2824_v6  ;;  %v8859_v13 = vpop.permute.xlu0 %3280 }
 0x390   : > { %v2491_v57 = vpop.f32.mrf.mxu0  ;;  %v8821_v51 = vpop.eup %5548  ;;  %v2873_v3 = vor.u32 1.1754944e-38, %v2872_v7  ;;  %v2887_v2 = vand.u32 2147483648, %v8648_v31  ;;  %5556 = vrcp.f32 %v8799_v16  ;;  %v2844_v5 = vsel %vm8751_vm6, %v2843_v23, %v2839_v55  ;;  %11310 = vst [vmem:[#allocation20_spill] sm:$0xff] %v8859_v13 }
 0x391   : > { %v8819_v58 = vadd.f32 %v2491_v57, %v8297_v8  ;;  %vm2867_vm13 = vweird.f32 %v8688_v4  ;;  %vm8841_vm7 = vcmp.eq.f32.partialorder %v2870_v29, 8.507059e+37  ;;  %vm2881_vm15 = vweird.f32 %v8648_v31 }
 0x392   : > { %v2885_v56 = vand.u32 2147483647, %v8648_v31  ;;  %v5551_v23 = vpop.eup %5550  ;;  %v2854_v45 = vsel %vm8836_vm5, %v8650_v46, %v2850_v62  ;;  %v2865_v6 = vadd.f32 %v8688_v4, %v2864_v53  ;;  %v2879_v17 = vmul.f32 %v8737_v44, %v2878_v24  ;;  %vm8876_vm1 = vmor %vm2866_vm12, %vm2867_vm13 }
 0x393   : > { %v4937_v43 = vmul.f32 -1.442695, %v8812_v11  ;;  %v8854_v1 = vmul.f32 %v2829_v27, %v8343_v19  ;;  %v2893_v29 = vsub.f32 1.0, %v2892_v25  ;;  %v2907_v7 = vmul.f32 %v8821_v51, %v8732_v38 }
 0x394   : > { %v4939_v55 = vmul.f32 -1.442695, %v8819_v58  ;;  %v5553_v47 = vpop.eup %5552  ;;  %v8862_v46 = vmul.f32 %v2844_v5, %v8380_v21  ;;  %v2888_v53 = vor.u32 1.1754944e-38, %v2887_v2  ;;  %v2902_v24 = vand.u32 2147483648, %v8696_v36  ;;  %v8891_v5 = vpop.permute.xlu2 %3270 }
 0x395   : > { %v8868_v19 = vpop.eup %5554  ;;  %v2859_v25 = vsel %vm8793_vm14, %v2858_v30, %v2854_v45  ;;  %vm2882_vm2 = vweird.f32 %v8737_v44  ;;  %vm8881_vm0 = vcmp.eq.f32.partialorder %v2885_v56, 8.507059e+37  ;;  %vm2896_vm4 = vweird.f32 %v8696_v36  ;;  %11315 = vst [vmem:[#allocation9_spill] sm:$0xff] %v8891_v5 }
 0x396   : > { %v2540_v60 = vpop.f32.mrf.mxu1  ;;  %v2900_v2 = vand.u32 2147483647, %v8696_v36  ;;  %v8887_v35 = vadd.f32 1.0, %v5551_v23  ;;  %v8889_v30 = vpop.eup %5556  ;;  %v2869_v22 = vsel %vm8876_vm1, %v8688_v4, %v2865_v6  ;;  %v2880_v57 = vadd.f32 %v8737_v44, %v2879_v17  ;;  %vm8929_vm3 = vmor %vm2881_vm15, %vm2882_vm2 }
 0x397   : > { %5558 = vpow2.f32 %v4937_v43  ;;  %v8899_v56 = vadd.f32 %v8725_v10, %v8305_v12  ;;  %v2908_v45 = vsub.f32 1.0, %v2907_v7  ;;  %v8902_v23 = vadd.f32 1.0, %v5553_v47  ;;  %v8921_v43 = vpop.permute.xlu1 %3290 }
 0x398   : > { %v2494_v59 = vpop.f32.mrf.mxu0  ;;  %5560 = vpow2.f32 %v4939_v55  ;;  %v2903_v13 = vor.u32 1.1754944e-38, %v2902_v24  ;;  %v2937_v5 = vmul.f32 %v8868_v19, %v8779_v37  ;;  %v8907_v27 = vadd.f32 %v2540_v60, %v8297_v8  ;;  %11320 = vst [vmem:[#allocation16_spill] sm:$0xff] %v8921_v43 }
 0x399   : > { %v8866_v62 = vadd.f32 %v2494_v59, %v8292_v39  ;;  %11316 = vst [vmem:[#allocation35_spill] sm:$0xff] %v8899_v56  ;;  %v2894_v59 = vmul.f32 %v8781_v33, %v2893_v29  ;;  %v8911_v6 = vmul.f32 %v2859_v25, %v8408_v34  ;;  %vm8913_vm6 = vcmp.eq.f32.partialorder %v2900_v2, 8.507059e+37 }
 0x39a   : > { %11317 = vst [vmem:[#allocation22_spill] sm:$0xff] %v8907_v27  ;;  %v2917_v10 = vand.u32 2147483648, %v8732_v38  ;;  %v2922_v47 = vmul.f32 %v8889_v30, %v8799_v16  ;;  %5562 = vrcp.f32 %v8887_v35  ;;  %v2874_v8 = vsel %vm8841_vm7, %v2873_v3, %v2869_v22 }
 0x39b   : > { %v4941_v4 = vmul.f32 -1.442695, %v8866_v62  ;;  %vm2897_vm11 = vweird.f32 %v8781_v33  ;;  %v2915_v60 = vand.u32 2147483647, %v8732_v38  ;;  %v4938_v29 = vmul.f32 -1.442695, %v8899_v56 }
 0x39c   : > { %v2884_v7 = vsel %vm8929_vm3, %v8737_v44, %v2880_v57  ;;  %v2895_v3 = vadd.f32 %v8781_v33, %v2894_v59  ;;  %v2909_v61 = vmul.f32 %v8821_v51, %v2908_v45  ;;  %5564 = vrcp.f32 %v8902_v23  ;;  %v8948_v57 = vpop.permute.xlu0 %3255  ;;  %vm8956_vm9 = vmor %vm2896_vm4, %vm2897_vm11 }
 0x39d   : > { %v5559_v31 = vpop.eup %5558  ;;  %vm2911_vm8 = vweird.f32 %v8732_v38  ;;  %v2938_v55 = vsub.f32 1.0, %v2937_v5  ;;  %v4940_v24 = vmul.f32 -1.442695, %v8907_v27  ;;  %5566 = vpow2.f32 %v4941_v4  ;;  %11323 = vst [vmem:[#allocation38_spill] sm:$0xff] %v8948_v57 }
 0x39e   : > { %v2543_v17 = vpop.f32.mrf.mxu1  ;;  %v5561_v25 = vpop.eup %5560  ;;  %v8945_v2 = vmul.f32 %v2874_v8, %v8443_v54  ;;  %v2918_v22 = vor.u32 1.1754944e-38, %v2917_v10  ;;  %v2923_v34 = vsub.f32 1.0, %v2922_v47  ;;  %v2932_v44 = vand.u32 2147483648, %v8799_v16 }
 0x39f   : > { %v2889_v59 = vsel %vm8881_vm0, %v2888_v53, %v2884_v7  ;;  %vm2912_vm14 = vweird.f32 %v8821_v51  ;;  %vm8961_vm10 = vcmp.eq.f32.partialorder %v2915_v60, 8.507059e+37  ;;  %v2930_v45 = vand.u32 2147483647, %v8799_v16  ;;  %v8977_v8 = vpop.permute.xlu2 %3245 }
 0x3a0   : > { %5568 = vpow2.f32 %v4938_v29  ;;  %v2496_v4 = vpop.f32.mrf.mxu0  ;;  %v8966_v21 = vpop.eup %5562  ;;  %v2899_v36 = vsel %vm8956_vm9, %v8781_v33, %v2895_v3  ;;  %v2910_v53 = vadd.f32 %v8821_v51, %v2909_v61  ;;  %v8972_v10 = vadd.f32 1.0, %v5559_v31  ;;  %11329 = vst [vmem:[#allocation24_spill] sm:$0xff] %v8977_v8  ;;  %vm8996_vm5 = vmor %vm2911_vm8, %vm2912_vm14 }
 0x3a1   : > { %v8975_v47 = vadd.f32 %v2543_v17, %v8292_v39  ;;  %vm2926_vm12 = vweird.f32 %v8799_v16  ;;  %v2939_v60 = vmul.f32 %v8868_v19, %v2938_v55  ;;  %v8981_v29 = vadd.f32 1.0, %v5561_v25 }
 0x3a2   : > { %5570 = vpow2.f32 %v4940_v24  ;;  %v8983_v7 = vpop.eup %5564  ;;  %v8986_v33 = vmul.f32 %v2889_v59, %v8390_v26  ;;  %v2924_v3 = vmul.f32 %v8889_v30, %v2923_v34  ;;  %v2933_v61 = vor.u32 1.1754944e-38, %v2932_v44  ;;  %v9016_v59 = vpop.permute.xlu1 %3265 }
 0x3a3   : > { %11328 = vst [vmem:[#allocation37_spill] sm:$0xff] %v8975_v47  ;;  %v2945_v39 = vand.u32 2147483647, %v8779_v37  ;;  %v5567_v17 = vpop.eup %5566  ;;  %v2904_v31 = vsel %vm8913_vm6, %v2903_v13, %v2899_v36  ;;  %vm2941_vm13 = vweird.f32 %v8779_v37  ;;  %v2947_v26 = vand.u32 2147483648, %v8779_v37 }
 0x3a4   : > { %v2952_v24 = vmul.f32 %v8966_v21, %v8887_v35  ;;  %v2914_v12 = vsel %vm8996_vm5, %v8821_v51, %v2910_v53  ;;  %vm9007_vm7 = vcmp.eq.f32.partialorder %v2930_v45, 8.507059e+37  ;;  %5572 = vrcp.f32 %v8972_v10  ;;  %11334 = vst [vmem:[#allocation7_spill] sm:$0xff] %v9016_v59 }
 0x3a5   : > { %v4942_v38 = vmul.f32 -1.442695, %v8975_v47  ;;  %v9014_v25 = vadd.f32 %v2496_v4, %v8290_v20  ;;  %v2940_v5 = vadd.f32 %v8868_v19, %v2939_v60  ;;  %vm2942_vm15 = vweird.f32 %v8868_v19 }
 0x3a6   : > { %v2545_v34 = vpop.f32.mrf.mxu1  ;;  %v5569_v44 = vpop.eup %5568  ;;  %5574 = vrcp.f32 %v8981_v29  ;;  %v9021_v51 = vadd.f32 1.0, %v5567_v17  ;;  %v2925_v45 = vadd.f32 %v8889_v30, %v2924_v3  ;;  %vm2927_vm1 = vweird.f32 %v8889_v30  ;;  %vm9039_vm0 = vmor %vm2941_vm13, %vm2942_vm15 }
 0x3a7   : > { %vm9025_vm2 = vcmp.eq.f32.partialorder %v2945_v39, 8.507059e+37  ;;  %v2967_v4 = vmul.f32 %v8983_v7, %v8902_v23  ;;  %v9032_v60 = vmul.f32 %v2904_v31, %v8537_v9  ;;  %v2948_v55 = vor.u32 1.1754944e-38, %v2947_v26  ;;  %v9046_v31 = vpop.permute.xlu0 %3250  ;;  %vm9052_vm4 = vmor %vm2926_vm12, %vm2927_vm1 }
 0x3a8   : > { %v5571_v53 = vpop.eup %5570  ;;  %v2953_v43 = vsub.f32 1.0, %v2952_v24  ;;  %v2962_v17 = vand.u32 2147483648, %v8887_v35  ;;  %v2499_v59 = vpop.f32.mrf.mxu0  ;;  %v2919_v3 = vsel %vm8961_vm10, %v2918_v22, %v2914_v12  ;;  %v9043_v57 = vadd.f32 1.0, %v5569_v44  ;;  %11339 = vst [vmem:[#allocation34_spill] sm:$0xff] %v9046_v31 }
 0x3a9   : > { %5576 = vpow2.f32 %v4942_v38  ;;  %v4943_v9 = vmul.f32 -1.442695, %v9014_v25  ;;  %v2944_v37 = vsel %vm9039_vm0, %v8868_v19, %v2940_v5  ;;  %vm2956_vm6 = vweird.f32 %v8887_v35  ;;  %v9074_v44 = vpop.permute.xlu2 %4321 }
 0x3aa   : > { %v2960_v22 = vand.u32 2147483647, %v8887_v35  ;;  %5578 = vrcp.f32 %v9021_v51  ;;  %v9063_v26 = vadd.f32 %v2545_v34, %v8290_v20  ;;  %v9065_v24 = vpop.eup %5572  ;;  %v2929_v16 = vsel %vm9052_vm4, %v8889_v30, %v2925_v45  ;;  %11343 = vst [vmem:[#allocation18_spill] sm:$0xff] %v9074_v44 }
 0x3ab   : > { %v2968_v12 = vsub.f32 1.0, %v2967_v4  ;;  %v9070_v38 = vadd.f32 1.0, %v5571_v53  ;;  %5580 = vpow2.f32 %v4943_v9  ;;  %v9077_v5 = vmul.f32 %v2919_v3, %v8568_v42  ;;  %v9107_v9 = vpop.permute.xlu1 %3260 }
 0x3ac   : > { %11342 = vst [vmem:[#allocation31_spill] sm:$0xff] %v9063_v26  ;;  %v9072_v19 = vpop.eup %5574  ;;  %v2954_v20 = vmul.f32 %v8966_v21, %v2953_v43  ;;  %v2963_v34 = vor.u32 1.1754944e-38, %v2962_v17  ;;  %v9081_v39 = vadd.f32 %v2499_v59, %v8287_v63  ;;  %v2949_v30 = vsel %vm9025_vm2, %v2948_v55, %v2944_v37 }
 0x3ad   : > { %v2975_v45 = vand.u32 2147483647, %v8902_v23  ;;  %5582 = vrcp.f32 %v9043_v57  ;;  %v4944_v4 = vmul.f32 -1.442695, %v9063_v26  ;;  %v9090_v42 = vsel %vm9007_vm7, %v2933_v61, %v2929_v16  ;;  %11347 = vst [vmem:[#allocation19_spill] sm:$0xff] %v9107_v9 }
 0x3ae   : > { %v2548_v53 = vpop.f32.mrf.mxu1  ;;  %11344 = vst [vmem:[#allocation17_spill] sm:$0xff] %v9090_v42  ;;  %vm2957_vm3 = vweird.f32 %v8966_v21  ;;  %vm9093_vm11 = vcmp.eq.f32.partialorder %v2960_v22, 8.507059e+37  ;;  %v2977_v59 = vand.u32 2147483648, %v8902_v23  ;;  %v4945_v36 = vmul.f32 -1.442695, %v9081_v39 }
 0x3af   : > { %v5577_v55 = vpop.eup %5576  ;;  %v2969_v17 = vmul.f32 %v8983_v7, %v2968_v12  ;;  %v2982_v3 = vmul.f32 %v9065_v24, %v8972_v10  ;;  %v3012_v61 = vmul.f32 %v9072_v19, %v8981_v29  ;;  %5584 = vrcp.f32 %v9070_v38  ;;  %vm9134_vm10 = vmor %vm2956_vm6, %vm2957_vm3 }
 0x3b0   : > { %v9105_v13 = vpop.eup %5578  ;;  %v9110_v54 = vmul.f32 %v2949_v30, %v8619_v49  ;;  %v2955_v37 = vadd.f32 %v8966_v21, %v2954_v20  ;;  %vm2971_vm8 = vweird.f32 %v8902_v23  ;;  %5586 = vpow2.f32 %v4945_v36  ;;  %v2501_v22 = vpop.f32.mrf.mxu0 }
 0x3b1   : > { %v5581_v16 = vpop.eup %5580  ;;  %vm9114_vm9 = vcmp.eq.f32.partialorder %v2975_v45, 8.507059e+37  ;;  %5588 = vpow2.f32 %v4944_v4  ;;  %v9119_v31 = vadd.f32 %v2548_v53, %v8287_v63  ;;  %v9122_v9 = vadd.f32 %v2501_v22, %v8299_v28  ;;  %v9140_v22 = vpop.permute.xlu0 %4270 }
 0x3b2   : > { %vm2972_vm14 = vweird.f32 %v8983_v7  ;;  %v2978_v49 = vor.u32 1.1754944e-38, %v2977_v59  ;;  %v2992_v20 = vand.u32 2147483648, %v8972_v10  ;;  %v9126_v30 = vadd.f32 1.0, %v5581_v16  ;;  %11352 = vst [vmem:[#allocation29_spill] sm:$0xff] %v9140_v22  ;;  %v9155_v22 = vpop.permute.xlu2 %4267 }
 0x3b3   : > { %v9128_v36 = vpop.eup %5582  ;;  %v2970_v63 = vadd.f32 %v8983_v7, %v2969_v17  ;;  %v2983_v4 = vsub.f32 1.0, %v2982_v3  ;;  %v3013_v53 = vsub.f32 1.0, %v3012_v61  ;;  %v4946_v59 = vmul.f32 -1.442695, %v9119_v31  ;;  %11353 = vst [vmem:[#allocation15_spill] sm:$0xff] %v9155_v22  ;;  %vm9161_vm5 = vmor %vm2971_vm8, %vm2972_vm14 }
 0x3b4   : > { %v2959_v16 = vsel %vm9134_vm10, %v8966_v21, %v2955_v37  ;;  %v3042_v8 = vmul.f32 %v9105_v13, %v9021_v51  ;;  %v9147_v35 = vadd.f32 1.0, %v5577_v55  ;;  %5590 = vrcp.f32 %v9126_v30 }
 0x3b5   : > { %v9150_v44 = vpop.eup %5584  ;;  %vm2986_vm12 = vweird.f32 %v8972_v10  ;;  %v2990_v17 = vand.u32 2147483647, %v8972_v10  ;;  %5592 = vpow2.f32 %v4946_v59  ;;  %v4947_v3 = vmul.f32 -1.442695, %v9122_v9 }
 0x3b6   : > { %v5587_v61 = vpop.eup %5586  ;;  %v9165_v55 = vor.u32 1.1754944e-38, %v2992_v20  ;;  %v2997_v37 = vmul.f32 %v9128_v36, %v9043_v57  ;;  %v2550_v56 = vpop.f32.mrf.mxu1  ;;  %v9173_v22 = vsel %vm9093_vm11, %v2963_v34, %v2959_v16  ;;  %v2974_v23 = vsel %vm9161_vm5, %v8983_v7, %v2970_v63 }
 0x3b7   : > { %v5589_v27 = vpop.eup %5588  ;;  %v2984_v20 = vmul.f32 %v9065_v24, %v2983_v4  ;;  %v3014_v47 = vmul.f32 %v9072_v19, %v3013_v53  ;;  %v3020_v42 = vand.u32 2147483647, %v8981_v29  ;;  %v3022_v45 = vand.u32 2147483648, %v8981_v29  ;;  %v9192_v63 = vpop.permute.xlu1 %4273 }
 0x3b8   : > { %v3043_v26 = vsub.f32 1.0, %v3042_v8  ;;  %5594 = vrcp.f32 %v9147_v35  ;;  %v3027_v43 = vmul.f32 %v9150_v44, %v9070_v38  ;;  %v9185_v34 = vadd.f32 1.0, %v5587_v61  ;;  %11356 = vst [vmem:[#allocation28_spill] sm:$0xff] %v9192_v63 }
 0x3b9   : > { %5596 = vpow2.f32 %v4947_v3  ;;  %v9188_v16 = vadd.f32 %v2550_v56, %v8299_v28  ;;  %v2979_v4 = vsel %vm9114_vm9, %v2978_v49, %v2974_v23  ;;  %vm2987_vm13 = vweird.f32 %v9065_v24  ;;  %v9226_v23 = vpop.permute.xlu0 %4315 }
 0x3ba   : > { %v9190_v7 = vpop.eup %5590  ;;  %vm9197_vm7 = vcmp.eq.f32.partialorder %v2990_v17, 8.507059e+37  ;;  %v2998_v53 = vsub.f32 1.0, %v2997_v37  ;;  %v9201_v61 = vadd.f32 1.0, %v5589_v27  ;;  %v2985_v28 = vadd.f32 %v9065_v24, %v2984_v20  ;;  %vm9215_vm2 = vmor %vm2986_vm12, %vm2987_vm13  ;;  %11363 = vst [vmem:[#allocation36_spill] sm:$0xff] %v9226_v23 }
 0x3bb   : > { %v5593_v3 = vpop.eup %5592  ;;  %v3015_v56 = vadd.f32 %v9072_v19, %v3014_v47  ;;  %vm3017_vm15 = vweird.f32 %v9072_v19  ;;  %5598 = vrcp.f32 %v9185_v34  ;;  %vm3016_vm1 = vweird.f32 %v8981_v29 }
 0x3bc   : > { %v3044_v12 = vmul.f32 %v9105_v13, %v3043_v26  ;;  %v3072_v49 = vmul.f32 %v9190_v7, %v9126_v30  ;;  %v9211_v17 = vadd.f32 1.0, %v5593_v3  ;;  %vm9219_vm0 = vcmp.eq.f32.partialorder %v3020_v42, 8.507059e+37  ;;  %vm9231_vm4 = vmor %vm3016_vm1, %vm3017_vm15 }
 0x3bd   : > { %v3023_v21 = vor.u32 1.1754944e-38, %v3022_v45  ;;  %v3028_v37 = vsub.f32 1.0, %v3027_v43  ;;  %v4948_v29 = vmul.f32 -1.442695, %v9188_v16  ;;  %v9229_v20 = vmul.f32 %v2979_v4, %v8735_v50  ;;  %v9246_v4 = vpop.permute.xlu2 %4312 }
 0x3be   : > { %v9224_v26 = vpop.eup %5594  ;;  %5600 = vrcp.f32 %v9201_v61  ;;  %v2989_v43 = vsel %vm9215_vm2, %v9065_v24, %v2985_v28  ;;  %v2999_v59 = vmul.f32 %v9128_v36, %v2998_v53  ;;  %v3019_v50 = vsel %vm9231_vm4, %v9072_v19, %v3015_v56  ;;  %11366 = vst [vmem:[#allocation33_spill] sm:$0xff] %v9246_v4 }
 0x3bf   : > { %v5597_v45 = vpop.eup %5596  ;;  %5602 = vrcp.f32 %v9211_v17  ;;  %v3045_v42 = vadd.f32 %v9105_v13, %v3044_v12  ;;  %vm3047_vm6 = vweird.f32 %v9105_v13  ;;  %v3050_v3 = vand.u32 2147483647, %v9021_v51 }
 0x3c0   : > { %v3073_v23 = vsub.f32 1.0, %v3072_v49  ;;  %v3029_v24 = vmul.f32 %v9150_v44, %v3028_v37  ;;  %v3052_v53 = vand.u32 2147483648, %v9021_v51  ;;  %v9255_v28 = vadd.f32 1.0, %v5597_v45 }
 0x3c1   : > { %v9251_v63 = vpop.eup %5598  ;;  %5604 = vpow2.f32 %v4948_v29  ;;  %v3024_v19 = vsel %vm9219_vm0, %v3023_v21, %v3019_v50  ;;  %vm3046_vm3 = vweird.f32 %v9021_v51  ;;  %v3057_v56 = vmul.f32 %v9224_v26, %v9147_v35  ;;  %v9280_v21 = vpop.permute.xlu1 %4318 }
 0x3c2   : > { %v3102_v12 = vmul.f32 %v9251_v63, %v9185_v34  ;;  %v9267_v49 = vsel %vm9197_vm7, %v9165_v55, %v2989_v43  ;;  %v9270_v27 = vadd.f32 %v9128_v36, %v2999_v59  ;;  %vm9272_vm11 = vmor %vm3046_vm3, %vm3047_vm6  ;;  %v3082_v51 = vand.u32 2147483648, %v9126_v30  ;;  %11369 = vst [vmem:[#allocation32_spill] sm:$0xff] %v9280_v21 }
 0x3c3   : > { %5606 = vrcp.f32 %v9255_v28  ;;  %v3049_v55 = vsel %vm9272_vm11, %v9105_v13, %v3045_v42  ;;  %v3074_v8 = vmul.f32 %v9190_v7, %v3073_v23  ;;  %v3080_v59 = vand.u32 2147483647, %v9126_v30 }
 0x3c4   : > { %v9278_v47 = vpop.eup %5600  ;;  %v3103_v29 = vsub.f32 1.0, %v3102_v12  ;;  %v9290_v45 = vmul.f32 %v3024_v19, %v8819_v58  ;;  %v9293_v43 = vadd.f32 %v9150_v44, %v3029_v24  ;;  %vm3051_vm8 = vcmp.eq.f32.partialorder %v3050_v3, 8.507059e+37  ;;  %v9304_v19 = vpop.permute.xlu0 %4261 }
 0x3c5   : > { %v9287_v10 = vpop.eup %5602  ;;  %v3053_v50 = vor.u32 1.1754944e-38, %v3052_v53  ;;  %v3058_v4 = vsub.f32 1.0, %v3057_v56  ;;  %vm3076_vm9 = vweird.f32 %v9126_v30  ;;  %v3083_v37 = vor.u32 1.1754944e-38, %v3082_v51  ;;  %11371 = vst [vmem:[#allocation30_spill] sm:$0xff] %v9304_v19  ;;  %v9320_v21 = vpop.permute.xlu2 %4258 }
 0x3c6   : > { %11370 = vst [vmem:[#allocation27_spill] sm:$0xff] %v9290_v45  ;;  %v3104_v13 = vmul.f32 %v9251_v63, %v3103_v29  ;;  %v3117_v23 = vmul.f32 %v9287_v10, %v9211_v17  ;;  %v3087_v58 = vmul.f32 %v9278_v47, %v9201_v61  ;;  %v3110_v24 = vand.u32 2147483647, %v9185_v34 }
 0x3c7   : > { %v5605_v42 = vpop.eup %5604  ;;  %v9299_v12 = vsel %vm3051_vm8, %v3053_v50, %v3049_v55  ;;  %v3075_v3 = vadd.f32 %v9190_v7, %v3074_v8  ;;  %vm3077_vm14 = vweird.f32 %v9190_v7  ;;  %vm9308_vm10 = vcmp.eq.f32.partialorder %v3080_v59, 8.507059e+37 }
 0x3c8   : > { %v3112_v56 = vand.u32 2147483648, %v9185_v34  ;;  %v9313_v55 = vadd.f32 1.0, %v5605_v42  ;;  %v3105_v50 = vadd.f32 %v9251_v63, %v3104_v13  ;;  %vm3107_vm12 = vweird.f32 %v9251_v63  ;;  %vm9327_vm5 = vmor %vm3076_vm9, %vm3077_vm14 }
 0x3c9   : > { %v5607_v51 = vpop.eup %5606  ;;  %v3059_v59 = vmul.f32 %v9224_v26, %v3058_v4  ;;  %v3118_v45 = vsub.f32 1.0, %v3117_v23  ;;  %v3088_v13 = vsub.f32 1.0, %v3087_v58  ;;  %vm3106_vm13 = vweird.f32 %v9185_v34  ;;  %v9355_v29 = vpop.permute.xlu1 %4264 }
 0x3ca   : > { %v3132_v42 = vmul.f32 %v5607_v51, %v9255_v28  ;;  %vm9332_vm7 = vcmp.eq.f32.partialorder %v3110_v24, 8.507059e+37  ;;  %5608 = vrcp.f32 %v9313_v55  ;;  %v3079_v4 = vsel %vm9327_vm5, %v9190_v7, %v3075_v3  ;;  %vm9341_vm1 = vmor %vm3106_vm13, %vm3107_vm12 }
 0x3cb   : > { %vm3092_vm15 = vweird.f32 %v9278_v47  ;;  %v3113_v23 = vor.u32 1.1754944e-38, %v3112_v56  ;;  %v3140_v34 = vand.u32 2147483647, %v9255_v28  ;;  %vm3062_vm2 = vweird.f32 %v9224_v26 }
 0x3cc   : > { %v3133_v58 = vsub.f32 1.0, %v3132_v42  ;;  %v3109_v24 = vsel %vm9341_vm1, %v9251_v63, %v3105_v50  ;;  %v3142_v19 = vand.u32 2147483648, %v9255_v28  ;;  %vm3091_vm0 = vweird.f32 %v9201_v61  ;;  %v9379_v8 = vpop.permute.xlu0 %4306 }
 0x3cd   : > { %v3119_v56 = vmul.f32 %v9287_v10, %v3118_v45  ;;  %vm3137_vm4 = vweird.f32 %v5607_v51  ;;  %vm3061_vm6 = vweird.f32 %v9147_v35  ;;  %v3089_v63 = vmul.f32 %v9278_v47, %v3088_v13  ;;  %11380 = vst [vmem:[#allocation39_spill] sm:$0xff] %v9379_v8 }
 0x3ce   : > { %v3134_v42 = vmul.f32 %v5607_v51, %v3133_v58  ;;  %vm3121_vm3 = vweird.f32 %v9211_v17  ;;  %vm3136_vm11 = vweird.f32 %v9255_v28  ;;  %vm3032_vm8 = vweird.f32 %v9150_v44 }
 0x3cf   : > { %v3114_v45 = vsel %vm9332_vm7, %v3113_v23, %v3109_v24  ;;  %v3084_v7 = vsel %vm9308_vm10, %v3083_v37, %v3079_v4  ;;  %vm3122_vm9 = vweird.f32 %v9287_v10  ;;  %v3125_v28 = vand.u32 2147483647, %v9211_v17  ;;  %vm3138_vm14 = vmor %vm3136_vm11, %vm3137_vm4 }
 0x3d0   : > { %v3135_v58 = vadd.f32 %v5607_v51, %v3134_v42  ;;  %v5609_v13 = vpop.eup %5608  ;;  %v3143_v50 = vor.u32 1.1754944e-38, %v3142_v19  ;;  %vm3002_vm12 = vweird.f32 %v9128_v36  ;;  %vm3031_vm5 = vweird.f32 %v9070_v38  ;;  %v9388_v19 = vpop.permute.xlu2 %4303  ;;  %vm9402_vm7 = vmor %vm3121_vm3, %vm3122_vm9 }
 0x3d1   : > { %v3120_v23 = vadd.f32 %v9287_v10, %v3119_v56  ;;  %vm3141_vm13 = vcmp.eq.f32.partialorder %v3140_v34, 8.507059e+37  ;;  %v3147_v53 = vmul.f32 %v5609_v13, %v9313_v55  ;;  %v3090_v37 = vadd.f32 %v9278_v47, %v3089_v63  ;;  %vm9419_vm4 = vmor %vm3091_vm0, %vm3092_vm15 }
 0x3d2   : > { %v3139_v24 = vsel %vm3138_vm14, %v5607_v51, %v3135_v58  ;;  %v3189_v4 = vmul.f32 %v3114_v45, %v9081_v39  ;;  %v3127_v42 = vand.u32 2147483648, %v9211_v17  ;;  %vm3001_vm10 = vweird.f32 %v9043_v57  ;;  %vm9429_vm3 = vmor %vm3061_vm6, %vm3062_vm2 }
 0x3d3   : > { %v3144_v3 = vsel %vm3141_vm13, %v3143_v50, %v3139_v24  ;;  %v3148_v8 = vsub.f32 1.0, %v3147_v53  ;;  %v3212_v51 = vpack.c.bf16 %v8699_v52, %v8606_v0  ;;  %v3213_v34 = vpack.c.bf16 %v8740_v32, %v8693_v14  ;;  %vm9451_vm9 = vmor %vm3031_vm5, %vm3032_vm8  ;;  %v11412_v52 = vld [vmem:[#allocation29_spill] sm:$0xff]  ;;  %v11416_v32 = vld [vmem:[#allocation30_spill] sm:$0xff] }
 0x3d4   : > { %v3191_v30 = vmul.f32 %v3144_v3, %v9122_v9  ;;  %v3060_v56 = vadd.f32 %v9224_v26, %v3059_v59  ;;  %v3187_v39 = vmul.f32 %v3084_v7, %v9014_v25  ;;  %v3155_v9 = vand.u32 2147483647, %v9313_v55  ;;  %vm9469_vm8 = vmor %vm3001_vm10, %vm3002_vm12 }
 0x3d5   : > { %v3157_v3 = vand.u32 2147483648, %v9313_v55  ;;  %v3124_v50 = vsel %vm9402_vm7, %v9287_v10, %v3120_v23  ;;  %v3149_v45 = vmul.f32 %v5609_v13, %v3148_v8  ;;  %vm3152_vm1 = vweird.f32 %v5609_v13  ;;  %v9423_v10 = vpop.permute.xlu1 %4309 }
 0x3d6   : > { %v3224_v59 = vpack.c.bf16 %v3191_v30, %v3189_v4  ;;  %v3185_v25 = vmul.f32 %v9299_v12, %v8866_v62  ;;  %v3065_v17 = vand.u32 2147483647, %v9147_v35  ;;  %v3067_v7 = vand.u32 2147483648, %v9147_v35 }
 0x3d7   : > { %v3128_v24 = vor.u32 1.1754944e-38, %v3127_v42  ;;  %v3094_v12 = vsel %vm9419_vm4, %v9278_v47, %v3090_v37  ;;  %vm3126_vm11 = vcmp.eq.f32.partialorder %v3125_v28, 8.507059e+37  ;;  %v3150_v30 = vadd.f32 %v5609_v13, %v3149_v45  ;;  %v11396_v45 = vld [vmem:[#allocation31_spill] sm:$0xff] }
 0x3d8   : > { %vm3151_vm15 = vweird.f32 %v9313_v55  ;;  %3371 = vmatpush.bf16.msrb.mxu2 %v3224_v59  ;;  %v11387_v8 = vand.u32 2147483647, %v9201_v61  ;;  %v11388_v23 = vand.u32 2147483648, %v9201_v61  ;;  %v3158_v4 = vor.u32 1.1754944e-38, %v3157_v3 }
 0x3d9   : > { %v3129_v35 = vsel %vm3126_vm11, %v3128_v24, %v3124_v50  ;;  %vm3153_vm2 = vmor %vm3151_vm15, %vm3152_vm1  ;;  %v3064_v42 = vsel %vm9429_vm3, %v9224_v26, %v3060_v56  ;;  %vm3156_vm6 = vcmp.eq.f32.partialorder %v3155_v9, 8.507059e+37  ;;  %v3222_v28 = vpack.c.bf16 %v3187_v39, %v3185_v25  ;;  %v9455_v50 = vpop.permute.xlu0 %4252  ;;  %v5157_v39 = vld [vmem:[%s6038_s25 + $0xc0] sm:$0xff] }
 0x3da   : > { %vm3096_vm0 = vcmp.eq.f32.partialorder %v11387_v8, 8.507059e+37  ;;  %v3098_v53 = vor.u32 1.1754944e-38, %v11388_v23  ;;  %v3154_v47 = vsel %vm3153_vm2, %v5609_v13, %v3150_v30  ;;  %v3181_v55 = vmul.f32 %v9267_v49, %v8812_v11  ;;  %v11391_v13 = vld [vmem:[#allocation21_spill] sm:$0xff] }
 0x3db   : > { %v3068_v37 = vor.u32 1.1754944e-38, %v3067_v7  ;;  %v3159_v3 = vsel %vm3156_vm6, %v3158_v4, %v3154_v47  ;;  %v3034_v26 = vsel %vm9451_vm9, %v9150_v44, %v9293_v43  ;;  %vm3066_vm14 = vcmp.eq.f32.partialorder %v3065_v17, 8.507059e+37  ;;  %v11397_v17 = vld [vmem:[#allocation27_spill] sm:$0xff]  ;;  %v11402_v23 = vld [vmem:[#allocation37_spill] sm:$0xff] }
 0x3dc   : > { %v3099_v63 = vsel %vm3096_vm0, %v3098_v53, %v3094_v12  ;;  %v3190_v11 = vmul.f32 %v3129_v35, %v9119_v31  ;;  %v3192_v49 = vmul.f32 %v3159_v3, %v9188_v16  ;;  %3372 = vmatpush.bf16.msrb.mxu2 %v3222_v28  ;;  %v3179_v56 = vmul.f32 %v9173_v22, %v11391_v13  ;;  %v9477_v16 = vpop.permute.xlu2 %4249  ;;  %v11399_v12 = vld [vmem:[#allocation10_spill] sm:$0xff]  ;;  %v11404_v28 = vld [vmem:[#allocation35_spill] sm:$0xff] }
 0x3dd   : > { %v11394_v9 = vand.u32 2147483647, %v9070_v38  ;;  %v11395_v44 = vand.u32 2147483648, %v9070_v38  ;;  %v3069_v43 = vsel %vm3066_vm14, %v3068_v37, %v3064_v42  ;;  %v3004_v22 = vsel %vm9469_vm8, %v9128_v36, %v9270_v27  ;;  %v11400_v38 = vld [vmem:[#allocation17_spill] sm:$0xff]  ;;  %v4256_v27 = vpop.permute.xlu1 %4255  ;;  %v11403_v35 = vld [vmem:[#allocation22_spill] sm:$0xff] }
 0x3de   : > { %v3188_v59 = vmul.f32 %v3099_v63, %v11396_v45  ;;  %v3225_v25 = vpack.c.bf16 %v3192_v49, %v3190_v11  ;;  %v3220_v7 = vpack.c.bf16 %v11397_v17, %v3181_v55  ;;  %v11398_v58 = vand.u32 2147483648, %v9043_v57  ;;  %v5163_v45 = vld [vmem:[%s6038_s25 + $0xf0] sm:$0xff] }
 0x3df   : > { %vm3036_vm5 = vcmp.eq.f32.partialorder %v11394_v9, 8.507059e+37  ;;  %v3038_v31 = vor.u32 1.1754944e-38, %v11395_v44  ;;  %v3177_v30 = vmul.f32 %v11400_v38, %v11399_v12  ;;  %v11401_v8 = vand.u32 2147483647, %v9043_v57  ;;  %v5159_v9 = vld [vmem:[%s6038_s25 + $0xd0] sm:$0xff] }
 0x3e0   : > { %v3008_v24 = vor.u32 1.1754944e-38, %v11398_v58  ;;  %v3186_v53 = vmul.f32 %v3069_v43, %v11402_v23  ;;  %3420 = vmatpush.bf16.msrb.mxu3 %v3225_v25  ;;  %3373 = vmatpush.bf16.msrb.mxu2 %v3220_v7  ;;  %v11405_v63 = vpack.c.bf16 %v9032_v60, %v8945_v2  ;;  %v11407_v11 = vpack.c.bf16 %v8862_v46, %v8768_v41  ;;  %v5160_v43 = vld [vmem:[%s6038_s25 + $0xd8] sm:$0xff] }
 0x3e1   : > { %v3039_v62 = vsel %vm3036_vm5, %v3038_v31, %v3034_v26  ;;  %vm3006_vm12 = vcmp.eq.f32.partialorder %v11401_v8, 8.507059e+37  ;;  %v3218_v47 = vpack.c.bf16 %v3179_v56, %v3177_v30  ;;  %v9494_v61 = vpop.permute.xlu0 %4297  ;;  %v11406_v26 = vpack.c.bf16 %v9229_v20, %v9110_v54  ;;  %v11409_v54 = vld [vmem:[#allocation28_spill] sm:$0xff] }
 0x3e2   : > { %v3009_v36 = vsel %vm3006_vm12, %v3008_v24, %v3004_v22  ;;  %v3184_v4 = vmul.f32 %v3039_v62, %v11403_v35  ;;  %v3223_v42 = vpack.c.bf16 %v3188_v59, %v3186_v53  ;;  %v4225_v49 = vlaneseq  ;;  %v5162_v22 = vld [vmem:[%s6038_s25 + $0xe8] sm:$0xff]  ;;  %v5164_v59 = vld [vmem:[%s6038_s25 + $0xf8] sm:$0xff] }
 0x3e3   : > { %v3182_v55 = vmul.f32 %v3009_v36, %v11404_v28  ;;  %v11408_v56 = vpack.c.bf16 %v9077_v5, %v8986_v33  ;;  %v11410_v41 = vpack.c.bf16 %v8911_v6, %v8854_v1  ;;  %v11411_v46 = vpack.c.bf16 %v8563_v15, %v8478_v40  ;;  %v11413_v1 = vld [vmem:[#allocation15_spill] sm:$0xff]  ;;  %v11414_v40 = vld [vmem:[#allocation18_spill] sm:$0xff]  ;;  %v11417_v5 = vld [vmem:[#allocation32_spill] sm:$0xff] }
 0x3e4   : > { %3421 = vmatpush.bf16.msrb.mxu3 %v3223_v42  ;;  %3374 = vmatpush.bf16.msrb.mxu2 %v3218_v47  ;;  %v9496_v57 = vpop.permute.xlu2 %4294  ;;  %v9515_v2 = vand.u32 127, %v4225_v49  ;;  %v5819_v33 = vmov 1.0   ;;  %v11415_v14 = vpack.c.bf16 %v8573_v48, %v8525_v18  ;;  %v11418_v18 = vld [vmem:[#allocation36_spill] sm:$0xff]  ;;  %v11419_v48 = vld [vmem:[#allocation33_spill] sm:$0xff]  ;;  %v11422_v36 = vld [vmem:[#allocation34_spill] sm:$0xff] }
 0x3e5   : > { %v3221_v37 = vpack.c.bf16 %v3184_v4, %v3182_v55  ;;  %v9501_v3 = vpop.permute.xlu1 %4300  ;;  %v11421_v62 = vld [vmem:[#allocation24_spill] sm:$0xff] }
 0x3e6   : > { %vm4338_vm13 = vcmp.eq.s32.totalorder %v9515_v2, %v11409_v54  ;;  %vm4337_vm10 = vcmp.eq.s32.totalorder %v9515_v2, %v11412_v52  ;;  %vm4336_vm7 = vcmp.eq.s32.totalorder %v9515_v2, %v11413_v1  ;;  %vm4335_vm1 = vcmp.eq.s32.totalorder %v9515_v2, %v9355_v29  ;;  %v11425_v52 = vld [vmem:[#allocation7_spill] sm:$0xff] }
 0x3e7   : > { %vm4354_vm4 = vcmp.eq.s32.totalorder %v9515_v2, %v11414_v40  ;;  %vm4334_vm3 = vcmp.eq.s32.totalorder %v9515_v2, %v11416_v32  ;;  %vm4333_vm11 = vcmp.eq.s32.totalorder %v9515_v2, %v9320_v21  ;;  %vm4353_vm15 = vcmp.eq.s32.totalorder %v9515_v2, %v11417_v5  ;;  %v5158_v21 = vld [vmem:[%s6038_s25 + $0xc8] sm:$0xff] }
 0x3e8   : > { %3422 = vmatpush.bf16.msrb.mxu3 %v3221_v37  ;;  %3375 = vmatpush.bf16.msrb.mxu2 %v11405_v63  ;;  %vm4352_vm0 = vcmp.eq.s32.totalorder %v9515_v2, %v11418_v18  ;;  %vm4332_vm2 = vcmp.eq.s32.totalorder %v9515_v2, %v4256_v27  ;;  %vm4351_vm6 = vcmp.eq.s32.totalorder %v9515_v2, %v11419_v48  ;;  %v11423_v63 = vld [vmem:[#allocation38_spill] sm:$0xff] }
 0x3e9   : > { %v4244_v13 = vpop.permute.xlu0 %4243  ;;  %vm4331_vm9 = vcmp.eq.s32.totalorder %v9515_v2, %v9455_v50  ;;  %vm4330_vm14 = vcmp.eq.s32.totalorder %v9515_v2, %v9477_v16  ;;  %vm4350_vm8 = vcmp.eq.s32.totalorder %v9515_v2, %v9423_v10  ;;  %v5161_v16 = vld [vmem:[%s6038_s25 + $0xe0] sm:$0xff]  ;;  %s4627_s25 = sshll.u32 %s5945_s18, 2  ;;  %s329_s18 = sand.u32 1, %s5800_s27  }
 0x3ea   : > { %s357_s20 = scalar_lea.vmem %s10855_s5, %s4627_s25  ;;  %s4622_s21 = sshll.u32 %s329_s18, 3 }
 0x3eb   : > { %s331_s22 = scalar_lea.vmem [#allocation4], %s4622_s21  ;;  %s4465_s19 = scalar_lea.sflag [#allocation5], %s329_s18 }
 0x3ec   : > { %3423 = vmatpush.bf16.msrb.mxu3 %v11406_v26  ;;  %3376 = vmatpush.bf16.msrb.mxu2 %v11407_v11  ;;  %v4241_v60 = vpop.permute.xlu2 %4240  ;;  %s4460_s24 = scalar_lea.vmem %s331_s22, %s5110_s16 [#allocation4]  ;;  %s4477_s25 = sshll.u32 %s331_s22, 4  ;;  %s4478_s25 = int_to_ptr.vmem [resolvable:$true] %s4477_s25 }
 0x3ed   : > { %v4247_v0 = vpop.permute.xlu1 %4246  ;;  %s5758_s16 = scalar_lea.hbm %s10857_s7, 16 }
 0x3ee   : > { %vm4329_vm12 = vcmp.eq.s32.totalorder %v9515_v2, %v4247_v0 }
 0x3f0   : > { %3424 = vmatpush.bf16.msrb.mxu3 %v11408_v56  ;;  %3377 = vmatpush.bf16.msrb.mxu2 %v3212_v51 }
 0x3f1   : > { %v9535_v6 = vpop.permute.xlu0 %4288 }
 0x3f4   : > { %3425 = vmatpush.bf16.msrb.mxu3 %v11410_v41  ;;  %3378 = vmatpush.bf16.msrb.mxu2 %v11411_v46  ;;  %v9542_v15 = vpop.permute.xlu2 %4285 }
 0x3f5   : > { %v4292_v20 = vpop.permute.xlu1 %4291 }
 0x3f7   : > { %3379 = vmatmul.bf16.vlgmr.msrb.gmra.mxu2 %v5157_v39 }
 0x3f8   : > { %5078 = vmatpush.msk.msra.mxu2 %vm4338_vm13, %v5819_v33  ;;  %3426 = vmatpush.bf16.msrb.mxu3 %v3213_v34  ;;  %v11420_v34 = vld [vmem:[#allocation39_spill] sm:$0xff]  ;;  %vm4348_vm13 = vcmp.eq.s32.totalorder %v9515_v2, %v9388_v19 }
 0x3f9   : > { %v4235_v29 = vpop.permute.xlu0 %4234  ;;  %vm4349_vm5 = vcmp.eq.s32.totalorder %v9515_v2, %v11420_v34 }
 0x3fa   : > { %5079 = vmatpush.msk.msra.mxu2 %vm4337_vm10, %v5819_v33  ;;  %vm4328_vm10 = vcmp.eq.s32.totalorder %v9515_v2, %v4244_v13 }
 0x3fc   : > { %5080 = vmatpush.msk.msra.mxu2 %vm4336_vm7, %v5819_v33  ;;  %3427 = vmatpush.bf16.msrb.mxu3 %v11415_v14  ;;  %v4232_v51 = vpop.permute.xlu2 %4231  ;;  %vm4327_vm7 = vcmp.eq.s32.totalorder %v9515_v2, %v4241_v60 }
 0x3fd   : > { %v4238_v10 = vpop.permute.xlu1 %4237 }
 0x3fe   : > { %5081 = vmatpush.msk.msra.mxu2 %vm4335_vm1, %v5819_v33  ;;  %vm4347_vm1 = vcmp.eq.s32.totalorder %v9515_v2, %v9501_v3 }
 0x3ff   : > { %3428 = vmatmul.bf16.vlgmr.msrb.gmra.mxu3 %v5157_v39 }
 0x400   : > { %5094 = vmatpush.msk.msra.mxu3 %vm4354_vm4, %v5819_v33  ;;  %5082 = vmatpush.msk.msra.mxu2 %vm4334_vm3, %v5819_v33  ;;  %vm4346_vm4 = vcmp.eq.s32.totalorder %v9515_v2, %v9494_v61  ;;  %vm4326_vm3 = vcmp.eq.s32.totalorder %v9515_v2, %v4238_v10 }
 0x401   : > { %v4280_v19 = vpop.permute.xlu0 %4279 }
 0x402   : > { %5095 = vmatpush.msk.msra.mxu3 %vm4353_vm15, %v5819_v33  ;;  %5083 = vmatpush.msk.msra.mxu2 %vm4333_vm11, %v5819_v33  ;;  %vm4345_vm11 = vcmp.eq.s32.totalorder %v9515_v2, %v9496_v57  ;;  %vm4325_vm15 = vcmp.eq.s32.totalorder %v9515_v2, %v4235_v29 }
 0x404   : > { %5096 = vmatpush.msk.msra.mxu3 %vm4352_vm0, %v5819_v33  ;;  %5084 = vmatpush.msk.msra.mxu2 %vm4332_vm2, %v5819_v33  ;;  %v4229_v50 = vpop.permute.xlu2 %4228  ;;  %vm4324_vm0 = vcmp.eq.s32.totalorder %v9515_v2, %v4232_v51  ;;  %vm4344_vm2 = vcmp.eq.s32.totalorder %v9515_v2, %v4292_v20 }
 0x405   : > { %v4283_v44 = vpop.permute.xlu1 %4282 }
 0x406   : > { %5097 = vmatpush.msk.msra.mxu3 %vm4351_vm6, %v5819_v33  ;;  %5085 = vmatpush.msk.msra.mxu2 %vm4331_vm9, %v5819_v33  ;;  %vm4323_vm6 = vcmp.eq.s32.totalorder %v9515_v2, %v4229_v50  ;;  %vm4343_vm9 = vcmp.eq.s32.totalorder %v9515_v2, %v9535_v6 }
 0x407   : > { %3384 = vmatmul.bf16.gmra.mxu2 %v5158_v21 }
 0x408   : > { %5098 = vmatpush.msk.msra.mxu3 %vm4350_vm8, %v5819_v33  ;;  %5086 = vmatpush.msk.msra.mxu2 %vm4330_vm14, %v5819_v33  ;;  %vm4342_vm14 = vcmp.eq.s32.totalorder %v9515_v2, %v9542_v15  ;;  %vm4341_vm8 = vcmp.eq.s32.totalorder %v9515_v2, %v4283_v44 }
 0x409   : > { %v4277_v31 = vpop.permute.xlu0 %4276 }
 0x40a   : > { %5099 = vmatpush.msk.msra.mxu3 %vm4349_vm5, %v5819_v33  ;;  %5087 = vmatpush.msk.msra.mxu2 %vm4329_vm12, %v5819_v33  ;;  %vm4340_vm5 = vcmp.eq.s32.totalorder %v9515_v2, %v4280_v19  ;;  %vm4339_vm12 = vcmp.eq.s32.totalorder %v9515_v2, %v4277_v31  ;;  %v11424_v2 = vld [vmem:[#allocation19_spill] sm:$0xff] }
 0x40c   : > { %5100 = vmatpush.msk.msra.mxu3 %vm4348_vm13, %v5819_v33  ;;  %5088 = vmatpush.msk.msra.mxu2 %vm4328_vm10, %v5819_v33 }
 0x40e   : > { %5101 = vmatpush.msk.msra.mxu3 %vm4347_vm1, %v5819_v33  ;;  %5089 = vmatpush.msk.msra.mxu2 %vm4327_vm7, %v5819_v33 }
 0x40f   : > { %3433 = vmatmul.bf16.gmra.mxu3 %v5158_v21 }
 0x410   : > { %5102 = vmatpush.msk.msra.mxu3 %vm4346_vm4, %v5819_v33  ;;  %5090 = vmatpush.msk.msra.mxu2 %vm4326_vm3, %v5819_v33 }
 0x412   : > { %5103 = vmatpush.msk.msra.mxu3 %vm4345_vm11, %v5819_v33  ;;  %5091 = vmatpush.msk.msra.mxu2 %vm4325_vm15, %v5819_v33 }
 0x414   : > { %5104 = vmatpush.msk.msra.mxu3 %vm4344_vm2, %v5819_v33  ;;  %5092 = vmatpush.msk.msra.mxu2 %vm4324_vm0, %v5819_v33 }
 0x416   : > { %5105 = vmatpush.msk.msra.mxu3 %vm4343_vm9, %v5819_v33  ;;  %5093 = vmatpush.msk.msra.mxu2 %vm4323_vm6, %v5819_v33 }
 0x417   : > { %3389 = vmatmul.bf16.gmra.mxu2 %v5159_v9 }
 0x418   : > { %5106 = vmatpush.msk.msra.mxu3 %vm4342_vm14, %v5819_v33 }
 0x41a   : > { %5107 = vmatpush.msk.msra.mxu3 %vm4341_vm8, %v5819_v33 }
 0x41c   : > { %5108 = vmatpush.msk.msra.mxu3 %vm4340_vm5, %v5819_v33 }
 0x41e   : > { %5109 = vmatpush.msk.msra.mxu3 %vm4339_vm12, %v5819_v33 }
 0x41f   : > { %3438 = vmatmul.bf16.gmra.mxu3 %v5159_v9 }
 0x427   : > { %3394 = vmatmul.bf16.gmra.mxu2 %v5160_v43 }
 0x42f   : > { %3443 = vmatmul.bf16.gmra.mxu3 %v5160_v43 }
 0x437   : > { %3399 = vmatmul.bf16.gmra.mxu2 %v5161_v16 }
 0x43f   : > { %3448 = vmatmul.bf16.gmra.mxu3 %v5161_v16 }
 0x447   : > { %3404 = vmatmul.bf16.gmra.mxu2 %v5162_v22 }
 0x44f   : > { %3453 = vmatmul.bf16.gmra.mxu3 %v5162_v22 }
 0x457   : > { %3409 = vmatmul.bf16.gmra.mxu2 %v5163_v45 }
 0x45f   : > { %3458 = vmatmul.bf16.gmra.mxu3 %v5163_v45 }
 0x467   : > { %3414 = vmatmul.bf16.gmra.mxu2 %v5164_v59 }
 0x46f   : > { %3463 = vmatmul.bf16.gmra.mxu3 %v5164_v59 }
 0x47a   : > { %v3380_v25 = vpop.f32.mrf.mxu2 }
 0x47b   : > { %v9626_v12 = vadd.f32 %v3380_v25, %v11421_v62 }
 0x47d   : > { %v5013_v30 = vmul.f32 -1.442695, %v9626_v12 }
 0x47f   : > { %5610 = vpow2.f32 %v5013_v30 }
 0x482   : > { %v3429_v17 = vpop.f32.mrf.mxu3  ;;  %v3382_v7 = vpop.f32.mrf.mxu2 }
 0x483   : > { %v9630_v8 = vadd.f32 %v3429_v17, %v11421_v62  ;;  %v9634_v27 = vadd.f32 %v3382_v7, %v11422_v36 }
 0x485   : > { %v5014_v53 = vmul.f32 -1.442695, %v9630_v8  ;;  %v5015_v42 = vmul.f32 -1.442695, %v9634_v27  ;;  %v5611_v47 = vpop.eup %5610 }
 0x486   : > { %v9641_v61 = vadd.f32 1.0, %v5611_v47 }
 0x487   : > { %5612 = vpow2.f32 %v5014_v53 }
 0x488   : > { %5614 = vpow2.f32 %v5015_v42  ;;  %v3606_v16 = vand.u32 2147483647, %v9641_v61  ;;  %v3608_v45 = vand.u32 2147483648, %v9641_v61  ;;  %vm3602_vm10 = vweird.f32 %v9641_v61 }
 0x48a   : > { %v3431_v58 = vpop.f32.mrf.mxu3  ;;  %v3385_v24 = vpop.f32.mrf.mxu2  ;;  %vm9717_vm7 = vcmp.eq.f32.partialorder %v3606_v16, 8.507059e+37  ;;  %v3609_v47 = vor.u32 1.1754944e-38, %v3608_v45 }
 0x48b   : > { %v9637_v35 = vadd.f32 %v3431_v58, %v11422_v36  ;;  %v9644_v3 = vadd.f32 %v3385_v24, %v11423_v63  ;;  %v11426_v58 = vld [vmem:[#allocation9_spill] sm:$0xff] }
 0x48d   : > { %v5016_v28 = vmul.f32 -1.442695, %v9637_v35  ;;  %v5613_v37 = vpop.eup %5612  ;;  %v5017_v13 = vmul.f32 -1.442695, %v9644_v3 }
 0x48e   : > { %v9647_v26 = vadd.f32 1.0, %v5613_v37  ;;  %v5615_v11 = vpop.eup %5614 }
 0x48f   : > { %5616 = vpow2.f32 %v5016_v28  ;;  %v9657_v54 = vadd.f32 1.0, %v5615_v11 }
 0x490   : > { %5618 = vrcp.f32 %v9641_v61  ;;  %vm3617_vm4 = vweird.f32 %v9647_v26 }
 0x491   : > { %5620 = vrcp.f32 %v9647_v26  ;;  %vm3632_vm2 = vweird.f32 %v9657_v54 }
 0x492   : > { %v3434_v38 = vpop.f32.mrf.mxu3  ;;  %v3387_v23 = vpop.f32.mrf.mxu2  ;;  %5622 = vpow2.f32 %v5017_v13  ;;  %v3623_v13 = vand.u32 2147483648, %v9647_v26 }
 0x493   : > { %v9651_v56 = vadd.f32 %v3434_v38, %v11423_v63  ;;  %v9654_v60 = vadd.f32 %v3387_v23, %v11424_v2  ;;  %5624 = vrcp.f32 %v9657_v54 }
 0x495   : > { %v5617_v49 = vpop.eup %5616  ;;  %v5018_v0 = vmul.f32 -1.442695, %v9651_v56  ;;  %v5019_v6 = vmul.f32 -1.442695, %v9654_v60 }
 0x496   : > { %v9662_v46 = vpop.eup %5618  ;;  %v9664_v33 = vadd.f32 1.0, %v5617_v49  ;;  %v3621_v49 = vand.u32 2147483647, %v9647_v26 }
 0x497   : > { %v3598_v15 = vmul.f32 %v9662_v46, %v9641_v61  ;;  %v9678_v32 = vpop.eup %5620  ;;  %vm3603_vm13 = vweird.f32 %v9662_v46 }
 0x498   : > { %5626 = vrcp.f32 %v9664_v33  ;;  %v5623_v20 = vpop.eup %5622  ;;  %v3613_v21 = vmul.f32 %v9678_v32, %v9647_v26  ;;  %vm9724_vm1 = vmor %vm3602_vm10, %vm3603_vm13  ;;  %vm3618_vm3 = vweird.f32 %v9678_v32  ;;  %vm3622_vm0 = vcmp.eq.f32.partialorder %v3621_v49, 8.507059e+37 }
 0x499   : > { %5628 = vpow2.f32 %v5018_v0  ;;  %v3599_v18 = vsub.f32 1.0, %v3598_v15  ;;  %v9685_v29 = vpop.eup %5624  ;;  %v9689_v34 = vadd.f32 1.0, %v5623_v20  ;;  %v3651_v0 = vand.u32 2147483647, %v9664_v33  ;;  %vm9757_vm11 = vmor %vm3617_vm4, %vm3618_vm3 }
 0x49a   : > { %v3436_v4 = vpop.f32.mrf.mxu3  ;;  %v3390_v55 = vpop.f32.mrf.mxu2  ;;  %5630 = vpow2.f32 %v5019_v6  ;;  %v3614_v9 = vsub.f32 1.0, %v3613_v21  ;;  %v3628_v44 = vmul.f32 %v9685_v29, %v9657_v54  ;;  %vm3633_vm15 = vweird.f32 %v9685_v29 }
 0x49b   : > { %v9660_v41 = vadd.f32 %v3436_v4, %v11424_v2  ;;  %v9668_v1 = vadd.f32 %v3390_v55, %v11425_v52  ;;  %v3600_v19 = vmul.f32 %v9662_v46, %v3599_v18  ;;  %v3636_v2 = vand.u32 2147483647, %v9657_v54  ;;  %vm9792_vm14 = vmor %vm3632_vm2, %vm3633_vm15 }
 0x49c   : > { %v3615_v62 = vmul.f32 %v9678_v32, %v3614_v9  ;;  %v3629_v38 = vsub.f32 1.0, %v3628_v44  ;;  %v3653_v15 = vand.u32 2147483648, %v9664_v33  ;;  %vm3647_vm9 = vweird.f32 %v9664_v33 }
 0x49d   : > { %v5020_v14 = vmul.f32 -1.442695, %v9660_v41  ;;  %v5021_v5 = vmul.f32 -1.442695, %v9668_v1  ;;  %v3601_v17 = vadd.f32 %v9662_v46, %v3600_v19  ;;  %v3624_v19 = vor.u32 1.1754944e-38, %v3623_v13 }
 0x49e   : > { %v9687_v51 = vpop.eup %5626  ;;  %v3630_v63 = vmul.f32 %v9685_v29, %v3629_v38  ;;  %vm9779_vm6 = vcmp.eq.f32.partialorder %v3636_v2, 8.507059e+37  ;;  %vm9796_vm8 = vcmp.eq.f32.partialorder %v3651_v0, 8.507059e+37  ;;  %vm3662_vm12 = vweird.f32 %v9689_v34 }
 0x49f   : > { %5632 = vpow2.f32 %v5020_v14  ;;  %v5629_v10 = vpop.eup %5628  ;;  %v3643_v30 = vmul.f32 %v9687_v51, %v9664_v33  ;;  %v3605_v55 = vsel %vm9724_vm1, %v9662_v46, %v3601_v17  ;;  %v3638_v46 = vand.u32 2147483648, %v9657_v54  ;;  %v11440_v17 = vld [vmem:[#allocation11_spill] sm:$0xff] }
 0x4a0   : > { %5634 = vpow2.f32 %v5021_v5  ;;  %v5631_v50 = vpop.eup %5630  ;;  %v9702_v59 = vadd.f32 1.0, %v5629_v10  ;;  %v3631_v26 = vadd.f32 %v9685_v29, %v3630_v63  ;;  %vm3648_vm5 = vweird.f32 %v9687_v51 }
 0x4a1   : > { %5636 = vrcp.f32 %v9689_v34  ;;  %v9706_v7 = vadd.f32 1.0, %v5631_v50  ;;  %v3644_v11 = vsub.f32 1.0, %v3643_v30  ;;  %v3639_v44 = vor.u32 1.1754944e-38, %v3638_v46  ;;  %vm9834_vm10 = vmor %vm3647_vm9, %vm3648_vm5 }
 0x4a2   : > { %v3439_v57 = vpop.f32.mrf.mxu3  ;;  %v3392_v39 = vpop.f32.mrf.mxu2  ;;  %5638 = vrcp.f32 %v9702_v59  ;;  %v3635_v30 = vsel %vm9792_vm14, %v9685_v29, %v3631_v26  ;;  %vm3677_vm1 = vweird.f32 %v9702_v59 }
 0x4a3   : > { %v9698_v22 = vadd.f32 %v3439_v57, %v11425_v52  ;;  %v9709_v24 = vadd.f32 %v3392_v39, %v11426_v58  ;;  %5640 = vrcp.f32 %v9706_v7  ;;  %v3616_v57 = vadd.f32 %v9678_v32, %v3615_v62 }
 0x4a4   : > { %v3610_v39 = vsel %vm9717_vm7, %v3609_v47, %v3605_v55  ;;  %v3645_v18 = vmul.f32 %v9687_v51, %v3644_v11  ;;  %v3640_v11 = vsel %vm9779_vm6, %v3639_v44, %v3635_v30  ;;  %v3696_v44 = vand.u32 2147483647, %v9706_v7 }
 0x4a5   : > { %v5633_v43 = vpop.eup %5632  ;;  %v5022_v36 = vmul.f32 -1.442695, %v9698_v22  ;;  %v5023_v61 = vmul.f32 -1.442695, %v9709_v24  ;;  %v3620_v20 = vsel %vm9757_vm11, %v9678_v32, %v3616_v57  ;;  %v9786_v32 = vmul.f32 %v3610_v39, %v9626_v12 }
 0x4a6   : > { %v5635_v25 = vpop.eup %5634  ;;  %v9714_v23 = vadd.f32 1.0, %v5633_v43  ;;  %v3625_v16 = vsel %vm3622_vm0, %v3624_v19, %v3620_v20  ;;  %v3646_v53 = vadd.f32 %v9687_v51, %v3645_v18  ;;  %v11446_v20 = vld [vmem:[#allocation20_spill] sm:$0xff]  ;;  %v3683_v18 = vand.u32 2147483648, %v9702_v59 }
 0x4a7   : > { %v9730_v28 = vadd.f32 1.0, %v5635_v25  ;;  %v9738_v37 = vpop.eup %5636  ;;  %11435 = vst [vmem:[#allocation21_spill] sm:$0xff] %v9786_v32  ;;  %v3654_v25 = vor.u32 1.1754944e-38, %v3653_v15  ;;  %vm3692_vm3 = vweird.f32 %v9706_v7  ;;  %vm9902_vm15 = vcmp.eq.f32.partialorder %v3696_v44, 8.507059e+37 }
 0x4a8   : > { %5642 = vrcp.f32 %v9714_v23  ;;  %v3658_v14 = vmul.f32 %v9738_v37, %v9689_v34  ;;  %v9765_v5 = vpop.eup %5638  ;;  %vm3663_vm13 = vweird.f32 %v9738_v37  ;;  %v3650_v2 = vsel %vm9834_vm10, %v9687_v51, %v3646_v53 }
 0x4a9   : > { %5644 = vpow2.f32 %v5022_v36  ;;  %v9776_v10 = vpop.eup %5640  ;;  %v3673_v47 = vmul.f32 %v9765_v5, %v9702_v59  ;;  %v3681_v51 = vand.u32 2147483647, %v9702_v59  ;;  %v9880_v53 = vmul.f32 %v3640_v11, %v9634_v27  ;;  %vm9886_vm4 = vmor %vm3662_vm12, %vm3663_vm13 }
 0x4aa   : > { %v9671_v40 = vpop.f32.mrf.mxu3  ;;  %v9681_v48 = vpop.f32.mrf.mxu2  ;;  %5646 = vrcp.f32 %v9730_v28  ;;  %v3659_v12 = vsub.f32 1.0, %v3658_v14  ;;  %v3688_v55 = vmul.f32 %v9776_v10, %v9706_v7  ;;  %vm3678_vm0 = vweird.f32 %v9765_v5 }
 0x4ab   : > { %5648 = vpow2.f32 %v5023_v61  ;;  %v9774_v21 = vadd.f32 %v9671_v40, %v11426_v58  ;;  %v3668_v40 = vand.u32 2147483648, %v9689_v34  ;;  %v9802_v58 = vadd.f32 %v9681_v48, %v11440_v17  ;;  %11447 = vst [vmem:[#allocation27_spill] sm:$0xff] %v9880_v53  ;;  %vm9928_vm6 = vmor %vm3677_vm1, %vm3678_vm0 }
 0x4ac   : > { %v3666_v48 = vand.u32 2147483647, %v9689_v34  ;;  %v9825_v61 = vmul.f32 %v3625_v16, %v9630_v8  ;;  %v3674_v6 = vsub.f32 1.0, %v3673_v47  ;;  %v3689_v15 = vsub.f32 1.0, %v3688_v55 }
 0x4ad   : > { %v5024_v36 = vmul.f32 -1.442695, %v9774_v21  ;;  %v3669_v57 = vor.u32 1.1754944e-38, %v3668_v40  ;;  %v5025_v13 = vmul.f32 -1.442695, %v9802_v58  ;;  %vm9898_vm11 = vcmp.eq.f32.partialorder %v3681_v51, 8.507059e+37 }
 0x4ae   : > { %v9783_v9 = vpop.eup %5642  ;;  %11441 = vst [vmem:[#allocation31_spill] sm:$0xff] %v9825_v61  ;;  %vm9851_vm7 = vcmp.eq.f32.partialorder %v3666_v48, 8.507059e+37  ;;  %v3675_v54 = vmul.f32 %v9765_v5, %v3674_v6  ;;  %vm3693_vm2 = vweird.f32 %v9776_v10  ;;  %v3711_v6 = vand.u32 2147483647, %v9714_v23 }
 0x4af   : > { %v5645_v43 = vpop.eup %5644  ;;  %v3703_v8 = vmul.f32 %v9783_v9, %v9714_v23  ;;  %5650 = vpow2.f32 %v5024_v36  ;;  %vm3708_vm9 = vweird.f32 %v9783_v9  ;;  %v3728_v0 = vand.u32 2147483648, %v9730_v28  ;;  %vm9940_vm14 = vmor %vm3692_vm3, %vm3693_vm2 }
 0x4b0   : > { %v9806_v38 = vpop.eup %5646  ;;  %v9828_v63 = vadd.f32 1.0, %v5645_v43  ;;  %v3698_v43 = vand.u32 2147483648, %v9706_v7  ;;  %vm9962_vm13 = vcmp.eq.f32.partialorder %v3711_v6, 8.507059e+37  ;;  %vm3722_vm10 = vweird.f32 %v9730_v28 }
 0x4b1   : > { %v5649_v42 = vpop.eup %5648  ;;  %v3718_v39 = vmul.f32 %v9806_v38, %v9730_v28  ;;  %v3704_v40 = vsub.f32 1.0, %v3703_v8  ;;  %vm3723_vm5 = vweird.f32 %v9806_v38 }
 0x4b2   : > { %v9694_v31 = vpop.f32.mrf.mxu3  ;;  %v9722_v4 = vpop.f32.mrf.mxu2  ;;  %v9847_v46 = vadd.f32 1.0, %v5649_v42  ;;  %5652 = vrcp.f32 %v9828_v63 }
 0x4b3   : > { %v9822_v29 = vadd.f32 %v9694_v31, %v11440_v17  ;;  %v3660_v31 = vmul.f32 %v9738_v37, %v3659_v12  ;;  %v9858_v26 = vadd.f32 %v9722_v4, %v11446_v20  ;;  %5654 = vpow2.f32 %v5025_v13 }
 0x4b4   : > { %v3655_v4 = vsel %vm9796_vm8, %v3654_v25, %v3650_v2  ;;  %v3719_v16 = vsub.f32 1.0, %v3718_v39  ;;  %5656 = vrcp.f32 %v9847_v46  ;;  %v3690_v12 = vmul.f32 %v9776_v10, %v3689_v15 }
 0x4b5   : > { %v5026_v14 = vmul.f32 -1.442695, %v9822_v29  ;;  %v3661_v50 = vadd.f32 %v9738_v37, %v3660_v31  ;;  %v5651_v30 = vpop.eup %5650  ;;  %v3684_v25 = vor.u32 1.1754944e-38, %v3683_v18  ;;  %v9893_v42 = vmul.f32 %v3655_v4, %v9637_v35 }
 0x4b6   : > { %v3705_v47 = vmul.f32 %v9783_v9, %v3704_v40  ;;  %v3699_v35 = vor.u32 1.1754944e-38, %v3698_v43  ;;  %v3720_v11 = vmul.f32 %v9806_v38, %v3719_v16  ;;  %v3676_v31 = vadd.f32 %v9765_v5, %v3675_v54 }
 0x4b7   : > { %5658 = vpow2.f32 %v5026_v14  ;;  %11450 = vst [vmem:[#allocation10_spill] sm:$0xff] %v9893_v42  ;;  %v3665_v27 = vsel %vm9886_vm4, %v9738_v37, %v3661_v50  ;;  %v3691_v8 = vadd.f32 %v9776_v10, %v3690_v12  ;;  %v9916_v13 = vadd.f32 1.0, %v5651_v30 }
 0x4b8   : > { %v9907_v55 = vpop.eup %5652  ;;  %v3670_v39 = vsel %vm9851_vm7, %v3669_v57, %v3665_v27  ;;  %v3713_v15 = vand.u32 2147483648, %v9714_v23  ;;  %v3706_v51 = vadd.f32 %v9783_v9, %v3705_v47  ;;  %v3726_v57 = vand.u32 2147483647, %v9730_v28  ;;  %vm9976_vm7 = vmor %vm3722_vm10, %vm3723_vm5 }
 0x4b9   : > { %v5655_v49 = vpop.eup %5654  ;;  %vm3707_vm8 = vweird.f32 %v9714_v23  ;;  %v3721_v59 = vadd.f32 %v9806_v38, %v3720_v11  ;;  %v3733_v50 = vmul.f32 %v9907_v55, %v9828_v63  ;;  %v3680_v44 = vsel %vm9928_vm6, %v9765_v5, %v3676_v31  ;;  %v11467_v31 = vld [vmem:[#allocation23_spill] sm:$0xff] }
 0x4ba   : > { %v9751_v52 = vpop.f32.mrf.mxu3  ;;  %v9804_v62 = vpop.f32.mrf.mxu2  ;;  %v3695_v7 = vsel %vm9940_vm14, %v9776_v10, %v3691_v8  ;;  %v9956_v40 = vadd.f32 1.0, %v5655_v49  ;;  %vm9958_vm12 = vmor %vm3707_vm8, %vm3708_vm9  ;;  %v3714_v12 = vor.u32 1.1754944e-38, %v3713_v15  ;;  %vm9980_vm1 = vcmp.eq.f32.partialorder %v3726_v57, 8.507059e+37 }
 0x4bb   : > { %v9866_v19 = vadd.f32 %v9751_v52, %v11446_v20  ;;  %v5027_v52 = vmul.f32 -1.442695, %v9858_v26  ;;  %v9918_v2 = vpop.eup %5656  ;;  %v3710_v54 = vsel %vm9958_vm12, %v9783_v9, %v3706_v51  ;;  %v3729_v28 = vor.u32 1.1754944e-38, %v3728_v0 }
 0x4bc   : > { %v3748_v5 = vmul.f32 %v9918_v2, %v9847_v46  ;;  %v3700_v27 = vsel %vm9902_vm15, %v3699_v35, %v3695_v7  ;;  %v3725_v9 = vsel %vm9976_vm7, %v9806_v38, %v3721_v59  ;;  %v3734_v47 = vsub.f32 1.0, %v3733_v50 }
 0x4bd   : > { %v5028_v36 = vmul.f32 -1.442695, %v9866_v19  ;;  %5660 = vpow2.f32 %v5027_v52  ;;  %v5659_v14 = vpop.eup %5658  ;;  %v3741_v11 = vand.u32 2147483647, %v9828_v63  ;;  %v3743_v49 = vand.u32 2147483648, %v9828_v63 }
 0x4be   : > { %v9969_v16 = vadd.f32 1.0, %v5659_v14  ;;  %v9996_v8 = vadd.f32 %v9804_v62, %v11467_v31  ;;  %v3749_v34 = vsub.f32 1.0, %v3748_v5  ;;  %v10008_v6 = vmul.f32 %v3670_v39, %v9644_v3 }
 0x4bf   : > { %5662 = vpow2.f32 %v5028_v36  ;;  %v3685_v36 = vsel %vm9898_vm11, %v3684_v25, %v3680_v44  ;;  %v3715_v25 = vsel %vm9962_vm13, %v3714_v12, %v3710_v54  ;;  %v3730_v62 = vsel %vm9980_vm1, %v3729_v28, %v3725_v9 }
 0x4c0   : > { %5664 = vrcp.f32 %v9916_v13  ;;  %11468 = vst [vmem:[#allocation17_spill] sm:$0xff] %v9996_v8  ;;  %v10011_v15 = vmul.f32 %v3685_v36, %v9651_v56  ;;  %v10018_v20 = vmul.f32 %v3700_v27, %v9654_v60  ;;  %v3735_v51 = vmul.f32 %v9907_v55, %v3734_v47  ;;  %v11482_v36 = vld [vmem:[#allocation25_spill] sm:$0xff] }
 0x4c1   : > { %5666 = vrcp.f32 %v9956_v40  ;;  %11469 = vst [vmem:[#allocation37_spill] sm:$0xff] %v10008_v6  ;;  %vm3737_vm4 = vweird.f32 %v9828_v63  ;;  %v3756_v57 = vand.u32 2147483647, %v9847_v46  ;;  %v10024_v3 = vmul.f32 %v3715_v25, %v9660_v41 }
 0x4c2   : > { %v9849_v33 = vpop.f32.mrf.mxu3  ;;  %v9877_v17 = vpop.f32.mrf.mxu2  ;;  %5668 = vrcp.f32 %v9969_v16  ;;  %11470 = vst [vmem:[#allocation22_spill] sm:$0xff] %v10011_v15  ;;  %v3744_v39 = vor.u32 1.1754944e-38, %v3743_v49  ;;  %vm3752_vm3 = vweird.f32 %v9847_v46  ;;  %v5029_v56 = vmul.f32 -1.442695, %v9996_v8 }
 0x4c3   : > { %v5661_v10 = vpop.eup %5660  ;;  %11471 = vst [vmem:[#allocation35_spill] sm:$0xff] %v10018_v20  ;;  %v10029_v0 = vmul.f32 %v3730_v62, %v9668_v1  ;;  %vm10031_vm11 = vcmp.eq.f32.partialorder %v3741_v11, 8.507059e+37  ;;  %v3750_v18 = vmul.f32 %v9918_v2, %v3749_v34  ;;  %vm3738_vm15 = vweird.f32 %v9907_v55 }
 0x4c4   : > { %v10003_v38 = vadd.f32 1.0, %v5661_v10  ;;  %11472 = vst [vmem:[#allocation28_spill] sm:$0xff] %v10024_v3  ;;  %v3758_v44 = vand.u32 2147483648, %v9847_v46  ;;  %v10046_v1 = vadd.f32 %v9849_v33, %v11467_v31  ;;  %v3736_v4 = vadd.f32 %v9907_v55, %v3735_v51  ;;  %v11478_v10 = vld [vmem:[#allocation16_spill] sm:$0xff]  ;;  %v11480_v33 = vld [vmem:[#allocation26_spill] sm:$0xff]  ;;  %vm10075_vm6 = vmor %vm3737_vm4, %vm3738_vm15 }
 0x4c5   : > { %v5663_v45 = vpop.eup %5662  ;;  %vm10051_vm0 = vcmp.eq.f32.partialorder %v3756_v57, 8.507059e+37  ;;  %v3773_v5 = vand.u32 2147483648, %v9916_v13  ;;  %v10058_v54 = vadd.f32 %v9877_v17, %v11478_v10  ;;  %vm3753_vm2 = vweird.f32 %v9918_v2 }
 0x4c6   : > { %v10005_v35 = vpop.eup %5664  ;;  %v10015_v14 = vadd.f32 1.0, %v5663_v45  ;;  %5670 = vrcp.f32 %v10003_v38  ;;  %11475 = vst [vmem:[#allocation29_spill] sm:$0xff] %v10046_v1  ;;  %v3788_v12 = vand.u32 2147483648, %v9956_v40  ;;  %v3751_v30 = vadd.f32 %v9918_v2, %v3750_v18  ;;  %vm10101_vm14 = vmor %vm3752_vm3, %vm3753_vm2 }
 0x4c7   : > { %v3763_v59 = vmul.f32 %v10005_v35, %v9916_v13  ;;  %v10039_v50 = vpop.eup %5666  ;;  %11479 = vst [vmem:[#allocation15_spill] sm:$0xff] %v10058_v54  ;;  %v3759_v9 = vor.u32 1.1754944e-38, %v3758_v44  ;;  %v5030_v11 = vmul.f32 -1.442695, %v10046_v1  ;;  %v3740_v63 = vsel %vm10075_vm6, %v9907_v55, %v3736_v4 }
 0x4c8   : > { %5672 = vrcp.f32 %v10015_v14  ;;  %v10048_v7 = vpop.eup %5668  ;;  %v3778_v45 = vmul.f32 %v10039_v50, %v9956_v40  ;;  %vm3767_vm9 = vweird.f32 %v9916_v13  ;;  %v10091_v25 = vor.u32 1.1754944e-38, %v3773_v5 }
 0x4c9   : > { %5674 = vpow2.f32 %v5029_v56  ;;  %v3764_v28 = vsub.f32 1.0, %v3763_v59  ;;  %v3793_v47 = vmul.f32 %v10048_v7, %v9969_v16  ;;  %v3786_v34 = vand.u32 2147483647, %v9956_v40 }
 0x4ca   : > { %v9912_v37 = vpop.f32.mrf.mxu3  ;;  %v3405_v23 = vpop.f32.mrf.mxu2  ;;  %v5031_v62 = vmul.f32 -1.442695, %v10058_v54  ;;  %vm3768_vm8 = vweird.f32 %v10005_v35  ;;  %v10106_v55 = vor.u32 1.1754944e-38, %v3788_v12  ;;  %v3755_v59 = vsel %vm10101_vm14, %v9918_v2, %v3751_v30 }
 0x4cb   : > { %v10063_v52 = vadd.f32 %v3405_v23, %v11480_v33  ;;  %v3771_v23 = vand.u32 2147483647, %v9916_v13  ;;  %v10110_v56 = vadd.f32 %v9912_v37, %v11478_v10  ;;  %v3765_v46 = vmul.f32 %v10005_v35, %v3764_v28  ;;  %vm10156_vm7 = vmor %vm3767_vm9, %vm3768_vm8 }
 0x4cc   : > { %v10085_v31 = vpop.eup %5670  ;;  %v3745_v5 = vsel %vm10031_vm11, %v3744_v39, %v3740_v63  ;;  %v3794_v12 = vsub.f32 1.0, %v3793_v47  ;;  %5676 = vpow2.f32 %v5030_v11  ;;  %vm3782_vm12 = vweird.f32 %v9956_v40  ;;  %v11512_v40 = vld [vmem:[#allocation8_spill] sm:$0xff] }
 0x4cd   : > { %11481 = vst [vmem:[#allocation18_spill] sm:$0xff] %v10063_v52  ;;  %v5033_v18 = vmul.f32 -1.442695, %v10063_v52  ;;  %vm10124_vm5 = vcmp.eq.f32.partialorder %v3771_v23, 8.507059e+37  ;;  %v3803_v2 = vand.u32 2147483648, %v9969_v16  ;;  %v3808_v30 = vmul.f32 %v10085_v31, %v10003_v38 }
 0x4ce   : > { %v10095_v51 = vpop.eup %5672  ;;  %11487 = vst [vmem:[#allocation30_spill] sm:$0xff] %v10110_v56  ;;  %5678 = vpow2.f32 %v5031_v62  ;;  %v5032_v28 = vmul.f32 -1.442695, %v10110_v56  ;;  %v10143_v47 = vmul.f32 %v3745_v5, %v9698_v22  ;;  %v3795_v11 = vmul.f32 %v10048_v7, %v3794_v12 }
 0x4cf   : > { %v5675_v4 = vpop.eup %5674  ;;  %v3823_v39 = vmul.f32 %v10095_v51, %v10015_v14  ;;  %5680 = vpow2.f32 %v5033_v18  ;;  %vm3797_vm13 = vweird.f32 %v9969_v16  ;;  %vm3783_vm10 = vweird.f32 %v10039_v50 }
 0x4d0   : > { %v10140_v23 = vadd.f32 1.0, %v5675_v4  ;;  %v3809_v63 = vsub.f32 1.0, %v3808_v30  ;;  %vm10160_vm1 = vcmp.eq.f32.partialorder %v3786_v34, 8.507059e+37  ;;  %vm3812_vm4 = vweird.f32 %v10003_v38 }
 0x4d1   : > { %v3824_v62 = vsub.f32 1.0, %v3823_v39  ;;  %v3818_v34 = vand.u32 2147483648, %v10003_v38  ;;  %v3796_v12 = vadd.f32 %v10048_v7, %v3795_v11  ;;  %vm3798_vm11 = vweird.f32 %v10048_v7 }
 0x4d2   : > { %v9998_v48 = vpop.f32.mrf.mxu3  ;;  %v3407_v41 = vpop.f32.mrf.mxu2  ;;  %vm3827_vm15 = vweird.f32 %v10015_v14  ;;  %vm10211_vm2 = vmor %vm3797_vm13, %vm3798_vm11  ;;  %vm3813_vm6 = vweird.f32 %v10085_v31  ;;  %v3833_v10 = vand.u32 2147483648, %v10015_v14  ;;  %vm3828_vm14 = vweird.f32 %v10095_v51 }
 0x4d3   : > { %v10069_v27 = vadd.f32 %v3407_v41, %v11482_v36  ;;  %v3779_v41 = vsub.f32 1.0, %v3778_v45  ;;  %v10122_v37 = vadd.f32 %v9998_v48, %v11480_v33  ;;  %v3760_v48 = vsel %vm10051_vm0, %v3759_v9, %v3755_v59  ;;  %v5677_v57 = vpop.eup %5676  ;;  %vm10194_vm0 = vmor %vm3782_vm12, %vm3783_vm10 }
 0x4d4   : > { %v3801_v33 = vand.u32 2147483647, %v9969_v16  ;;  %v3766_v45 = vadd.f32 %v10005_v35, %v3765_v46  ;;  %v3804_v9 = vor.u32 1.1754944e-38, %v3803_v2  ;;  %v10150_v18 = vmul.f32 %v3760_v48, %v9709_v24  ;;  %v5679_v24 = vpop.eup %5678  ;;  %vm10250_vm8 = vmor %vm3812_vm4, %vm3813_vm6 }
 0x4d5   : > { %v5035_v44 = vmul.f32 -1.442695, %v10069_v27  ;;  %11488 = vst [vmem:[#allocation32_spill] sm:$0xff] %v10122_v37  ;;  %v3780_v17 = vmul.f32 %v10039_v50, %v3779_v41  ;;  %v5034_v43 = vmul.f32 -1.442695, %v10122_v37  ;;  %v5681_v5 = vpop.eup %5680  ;;  %v3825_v30 = vmul.f32 %v10095_v51, %v3824_v62  ;;  %v11505_v62 = vld [vmem:[#allocation13_spill] sm:$0xff] }
 0x4d6   : > { %v3816_v46 = vand.u32 2147483647, %v10003_v38  ;;  %vm10170_vm3 = vcmp.eq.f32.partialorder %v3801_v33, 8.507059e+37  ;;  %v10181_v39 = vadd.f32 1.0, %v5677_v57  ;;  %v10199_v11 = vadd.f32 1.0, %v5679_v24 }
 0x4d7   : > { %5682 = vpow2.f32 %v5035_v44  ;;  %v3770_v44 = vsel %vm10156_vm7, %v10005_v35, %v3766_v45  ;;  %v3781_v13 = vadd.f32 %v10039_v50, %v3780_v17  ;;  %v3810_v35 = vmul.f32 %v10085_v31, %v3809_v63 }
 0x4d8   : > { %5684 = vpow2.f32 %v5032_v28  ;;  %v3775_v28 = vsel %vm10124_vm5, %v10091_v25, %v3770_v44  ;;  %v3831_v17 = vand.u32 2147483647, %v10015_v14  ;;  %vm10216_vm9 = vcmp.eq.f32.partialorder %v3816_v46, 8.507059e+37  ;;  %vm10263_vm5 = vmor %vm3827_vm15, %vm3828_vm14 }
 0x4d9   : > { %5686 = vrcp.f32 %v10140_v23  ;;  %v3811_v46 = vadd.f32 %v10085_v31, %v3810_v35  ;;  %v3826_v24 = vadd.f32 %v10095_v51, %v3825_v30  ;;  %vm3842_vm13 = vweird.f32 %v10140_v23 }
 0x4da   : > { %v10083_v49 = vpop.f32.mrf.mxu3  ;;  %v3410_v60 = vpop.f32.mrf.mxu2  ;;  %5688 = vpow2.f32 %v5034_v43  ;;  %v11500_v43 = vld [vmem:[#allocation12_spill] sm:$0xff]  ;;  %vm3832_vm12 = vcmp.eq.f32.partialorder %v3831_v17, 8.507059e+37  ;;  %vm3872_vm7 = vweird.f32 %v10199_v11 }
 0x4db   : > { %v10185_v48 = vadd.f32 %v10083_v49, %v11482_v36  ;;  %v10202_v36 = vadd.f32 %v3410_v60, %v11500_v43  ;;  %v3785_v49 = vsel %vm10194_vm0, %v10039_v50, %v3781_v13  ;;  %v10221_v60 = vadd.f32 1.0, %v5681_v5 }
 0x4dc   : > { %v3800_v50 = vsel %vm10211_vm2, %v10048_v7, %v3796_v12  ;;  %5690 = vrcp.f32 %v10181_v39  ;;  %v3819_v5 = vor.u32 1.1754944e-38, %v3818_v34  ;;  %v3790_v35 = vsel %vm10160_vm1, %v10106_v55, %v3785_v49 }
 0x4dd   : > { %v5683_v2 = vpop.eup %5682  ;;  %11497 = vst [vmem:[#allocation36_spill] sm:$0xff] %v10185_v48  ;;  %v5036_v44 = vmul.f32 -1.442695, %v10185_v48  ;;  %5692 = vrcp.f32 %v10199_v11  ;;  %v5037_v7 = vmul.f32 -1.442695, %v10202_v36  ;;  %v3834_v34 = vor.u32 1.1754944e-38, %v3833_v10 }
 0x4de   : > { %v5685_v63 = vpop.eup %5684  ;;  %v10227_v16 = vadd.f32 1.0, %v5683_v2  ;;  %5694 = vrcp.f32 %v10221_v60  ;;  %v3815_v4 = vsel %vm10250_vm8, %v10085_v31, %v3811_v46  ;;  %v10287_v31 = vmul.f32 %v3775_v28, %v9774_v21 }
 0x4df   : > { %v10232_v22 = vpop.eup %5686  ;;  %v3820_v46 = vsel %vm10216_vm9, %v3819_v5, %v3815_v4 }
 0x4e0   : > { %11506 = vst [vmem:[#allocation33_spill] sm:$0xff] %v10232_v22  ;;  %v5689_v13 = vpop.eup %5688  ;;  %v3838_v38 = vmul.f32 %v10232_v22, %v10140_v23  ;;  %5696 = vrcp.f32 %v10227_v16  ;;  %vm3843_vm10 = vweird.f32 %v10232_v22  ;;  %vm3932_vm9 = vweird.f32 %v10227_v16 }
 0x4e1   : > { %v10277_v14 = vadd.f32 1.0, %v5689_v13  ;;  %5698 = vpow2.f32 %v5036_v44  ;;  %vm10373_vm1 = vmor %vm3842_vm13, %vm3843_vm10 }
 0x4e2   : > { %v3459_v41 = vpop.f32.mrf.mxu3  ;;  %v3412_v33 = vpop.f32.mrf.mxu2  ;;  %5700 = vpow2.f32 %v5037_v7  ;;  %v3839_v44 = vsub.f32 1.0, %v3838_v38 }
 0x4e3   : > { %v10230_v57 = vadd.f32 %v3412_v33, %v11505_v62  ;;  %v10241_v12 = vadd.f32 %v3459_v41, %v11500_v43  ;;  %v10254_v33 = vadd.f32 1.0, %v5685_v63  ;;  %v3805_v41 = vsel %vm10170_vm3, %v3804_v9, %v3800_v50  ;;  %v10284_v63 = vpop.eup %5690 }
 0x4e4   : > { %v3830_v9 = vsel %vm10263_vm5, %v10095_v51, %v3826_v24  ;;  %v3848_v43 = vand.u32 2147483648, %v10140_v23  ;;  %v10290_v50 = vmul.f32 %v3790_v35, %v9802_v58  ;;  %v10293_v51 = vpop.eup %5692  ;;  %v10300_v7 = vmul.f32 %v3805_v41, %v9822_v29 }
 0x4e5   : > { %11507 = vst [vmem:[#allocation39_spill] sm:$0xff] %v10241_v12  ;;  %v5039_v59 = vmul.f32 -1.442695, %v10230_v57  ;;  %v5038_v49 = vmul.f32 -1.442695, %v10241_v12  ;;  %5702 = vrcp.f32 %v10254_v33  ;;  %v3835_v24 = vsel %vm3832_vm12, %v3834_v34, %v3830_v9  ;;  %v10297_v13 = vpop.eup %5694 }
 0x4e6   : > { %11513 = vst [vmem:[#allocation24_spill] sm:$0xff] %v10300_v7  ;;  %v10307_v28 = vpop.eup %5696  ;;  %v10309_v17 = vor.u32 1.1754944e-38, %v3848_v43  ;;  %v3853_v25 = vmul.f32 %v10284_v63, %v10181_v39  ;;  %v10315_v29 = vmul.f32 %v3820_v46, %v9858_v26  ;;  %v10318_v30 = vmul.f32 %v3835_v24, %v9866_v19 }
 0x4e7   : > { %5704 = vpow2.f32 %v5039_v59  ;;  %v5699_v35 = vpop.eup %5698  ;;  %v3840_v55 = vmul.f32 %v10232_v22, %v3839_v44  ;;  %v3898_v26 = vmul.f32 %v10297_v13, %v10221_v60  ;;  %v3928_v9 = vmul.f32 %v10307_v28, %v10227_v16 }
 0x4e8   : > { %5706 = vrcp.f32 %v10277_v14  ;;  %11515 = vst [vmem:[#allocation38_spill] sm:$0xff] %v10309_v17  ;;  %v5701_v41 = vpop.eup %5700  ;;  %v10336_v46 = vadd.f32 1.0, %v5699_v35  ;;  %v3906_v35 = vand.u32 2147483647, %v10221_v60  ;;  %vm3873_vm4 = vweird.f32 %v10293_v51 }
 0x4e9   : > { %5708 = vpow2.f32 %v5038_v49  ;;  %v3854_v49 = vsub.f32 1.0, %v3853_v25  ;;  %v10346_v4 = vadd.f32 1.0, %v5701_v41  ;;  %v10349_v56 = vadd.f32 %v10232_v22, %v3840_v55  ;;  %vm10419_vm2 = vmor %vm3872_vm7, %vm3873_vm4 }
 0x4ea   : > { %v3461_v2 = vpop.f32.mrf.mxu3  ;;  %v3415_v45 = vpop.f32.mrf.mxu2  ;;  %v3899_v25 = vsub.f32 1.0, %v3898_v26  ;;  %vm3902_vm3 = vweird.f32 %v10221_v60  ;;  %vm10387_vm11 = vcmp.eq.f32.partialorder %v3906_v35, 8.507059e+37  ;;  %vm3903_vm15 = vweird.f32 %v10297_v13 }
 0x4eb   : > { %v10282_v10 = vadd.f32 %v3415_v45, %v11512_v40  ;;  %v10305_v58 = vadd.f32 %v3461_v2, %v11505_v62  ;;  %v3868_v62 = vmul.f32 %v10293_v51, %v10199_v11  ;;  %v3878_v2 = vand.u32 2147483648, %v10199_v11  ;;  %v10329_v19 = vpop.eup %5702  ;;  %11516 = vst [vmem:[#allocation19_spill] sm:$0xff] %v10349_v56  ;;  %vm10440_vm6 = vmor %vm3902_vm3, %vm3903_vm15 }
 0x4ec   : > { %v3900_v55 = vmul.f32 %v10297_v13, %v3899_v25  ;;  %v11522_v25 = vld [vmem:[#allocation14_spill] sm:$0xff]  ;;  %vm3933_vm0 = vweird.f32 %v10307_v28  ;;  %v3968_v37 = vand.u32 2147483648, %v10346_v4  ;;  %vm3962_vm5 = vweird.f32 %v10346_v4 }
 0x4ed   : > { %11514 = vst [vmem:[#allocation34_spill] sm:$0xff] %v10305_v58  ;;  %v5041_v5 = vmul.f32 -1.442695, %v10282_v10  ;;  %v5040_v45 = vmul.f32 -1.442695, %v10305_v58  ;;  %v5705_v43 = vpop.eup %5704  ;;  %v3869_v38 = vsub.f32 1.0, %v3868_v62  ;;  %vm10452_vm14 = vmor %vm3932_vm9, %vm3933_vm0 }
 0x4ee   : > { %v10341_v44 = vpop.eup %5706  ;;  %v10343_v59 = vor.u32 1.1754944e-38, %v3878_v2  ;;  %v3929_v62 = vsub.f32 1.0, %v3928_v9  ;;  %v10356_v2 = vadd.f32 1.0, %v5705_v43 }
 0x4ef   : > { %5710 = vpow2.f32 %v5041_v5  ;;  %v5709_v1 = vpop.eup %5708  ;;  %v3908_v5 = vand.u32 2147483648, %v10221_v60  ;;  %v3870_v26 = vmul.f32 %v10293_v51, %v3869_v38  ;;  %v3913_v21 = vmul.f32 %v10341_v44, %v10277_v14 }
 0x4f0   : > { %5712 = vpow2.f32 %v5040_v45  ;;  %v10367_v9 = vadd.f32 1.0, %v5709_v1  ;;  %v3930_v53 = vmul.f32 %v10307_v28, %v3929_v62  ;;  %vm3992_vm13 = vweird.f32 %v10356_v2 }
 0x4f1   : > { %5714 = vrcp.f32 %v10336_v46  ;;  %v3909_v48 = vor.u32 1.1754944e-38, %v3908_v5  ;;  %v3914_v62 = vsub.f32 1.0, %v3913_v21  ;;  %v3901_v5 = vadd.f32 %v10297_v13, %v3900_v55 }
 0x4f2   : > { %v3464_v34 = vpop.f32.mrf.mxu3  ;;  %5716 = vrcp.f32 %v10346_v4  ;;  %v3417_v43 = vpop.f32.mrf.mxu2  ;;  %v3936_v21 = vand.u32 2147483647, %v10227_v16 }
 0x4f3   : > { %v10339_v24 = vadd.f32 %v3464_v34, %v11512_v40  ;;  %v3883_v40 = vmul.f32 %v10329_v19, %v10254_v33  ;;  %v3855_v34 = vmul.f32 %v10284_v63, %v3854_v49  ;;  %v11517_v49 = vmov 0 }
 0x4f4   : > { %v11518_v49 = vsel %vm10373_vm1, 4294967295, %v11517_v49  ;;  %5718 = vrcp.f32 %v10356_v2  ;;  %v10394_v8 = vadd.f32 %v3417_v43, %v11522_v25  ;;  %v3905_v56 = vsel %vm10440_vm6, %v10297_v13, %v3901_v5 }
 0x4f5   : > { %v5042_v41 = vmul.f32 -1.442695, %v10339_v24  ;;  %v5711_v45 = vpop.eup %5710  ;;  %11519 = vst [vmem:[#allocation7_spill] sm:$0xff] %v11518_v49  ;;  %v3884_v32 = vsub.f32 1.0, %v3883_v40  ;;  %v10397_v54 = vadd.f32 %v10284_v63, %v3855_v34  ;;  %v10400_v40 = vadd.f32 %v10293_v51, %v3870_v26 }
 0x4f6   : > { %v10391_v38 = vadd.f32 1.0, %v5711_v45  ;;  %v5713_v12 = vpop.eup %5712  ;;  %v3931_v26 = vadd.f32 %v10307_v28, %v3930_v53  ;;  %vm3937_vm8 = vcmp.eq.f32.partialorder %v3936_v21, 8.507059e+37 }
 0x4f7   : > { %5720 = vpow2.f32 %v5042_v41  ;;  %11523 = vst [vmem:[#allocation9_spill] sm:$0xff] %v10397_v54  ;;  %v10403_v35 = vpop.eup %5714  ;;  %v3885_v34 = vmul.f32 %v10329_v19, %v3884_v32  ;;  %v10424_v1 = vadd.f32 1.0, %v5713_v12  ;;  %v5043_v32 = vmul.f32 -1.442695, %v10394_v8 }
 0x4f8   : > { %5722 = vrcp.f32 %v10367_v9  ;;  %v10409_v45 = vpop.eup %5716  ;;  %v3915_v12 = vmul.f32 %v10341_v44, %v3914_v62  ;;  %v3943_v60 = vmul.f32 %v10403_v35, %v10336_v46  ;;  %v3935_v13 = vsel %vm10452_vm14, %v10307_v28, %v3931_v26 }
 0x4f9   : > { %5724 = vrcp.f32 %v10391_v38  ;;  %v3958_v62 = vmul.f32 %v10409_v45, %v10346_v4  ;;  %vm3963_vm12 = vweird.f32 %v10409_v45  ;;  %vm4007_vm14 = vweird.f32 %v10424_v1 }
 0x4fa   : > { %v3466_v43 = vpop.f32.mrf.mxu3  ;;  %v10430_v54 = vpop.eup %5718  ;;  %5726 = vpow2.f32 %v5043_v32  ;;  %v10483_v28 = vadd.f32 %v10341_v44, %v3915_v12  ;;  %v3944_v21 = vsub.f32 1.0, %v3943_v60  ;;  %v10510_v60 = vor.u32 1.1754944e-38, %v3968_v37  ;;  %vm10547_vm4 = vmor %vm3962_vm5, %vm3963_vm12 }
 0x4fb   : > { %v10428_v53 = vadd.f32 %v3466_v43, %v11522_v25  ;;  %v3938_v25 = vand.u32 2147483648, %v10227_v16  ;;  %v10463_v16 = vadd.f32 %v10329_v19, %v3885_v34  ;;  %v3988_v49 = vmul.f32 %v10430_v54, %v10356_v2 }
 0x4fc   : > { %5728 = vrcp.f32 %v10424_v1  ;;  %v3959_v58 = vsub.f32 1.0, %v3958_v62  ;;  %v3966_v62 = vand.u32 2147483647, %v10346_v4  ;;  %v3945_v34 = vmul.f32 %v10403_v35, %v3944_v21 }
 0x4fd   : > { %v5721_v43 = vpop.eup %5720  ;;  %11530 = vst [vmem:[#allocation11_spill] sm:$0xff] %v10463_v16  ;;  %v5044_v32 = vmul.f32 -1.442695, %v10428_v53  ;;  %v10480_v16 = vsel %vm10387_vm11, %v3909_v48, %v3905_v56  ;;  %v3939_v17 = vor.u32 1.1754944e-38, %v3938_v25  ;;  %v3989_v12 = vsub.f32 1.0, %v3988_v49 }
 0x4fe   : > { %v10460_v22 = vpop.eup %5722  ;;  %v10468_v5 = vadd.f32 1.0, %v5721_v43  ;;  %v3960_v49 = vmul.f32 %v10409_v45, %v3959_v58  ;;  %v3998_v25 = vand.u32 2147483648, %v10356_v2  ;;  %v10526_v15 = vadd.f32 %v10403_v35, %v3945_v34 }
 0x4ff   : > { %v10470_v41 = vpop.eup %5724  ;;  %v3940_v52 = vsel %vm3937_vm8, %v3939_v17, %v3935_v13  ;;  %v3973_v56 = vmul.f32 %v10460_v22, %v10367_v9  ;;  %vm3993_vm7 = vweird.f32 %v10430_v54  ;;  %v4028_v34 = vand.u32 2147483648, %v10391_v38 }
 0x500   : > { %v4018_v26 = vmul.f32 %v10470_v41, %v10391_v38  ;;  %5730 = vrcp.f32 %v10468_v5  ;;  %v5727_v48 = vpop.eup %5726  ;;  %v10508_v61 = vmul.f32 %v3940_v52, %v10069_v27  ;;  %v10529_v21 = vadd.f32 %v10409_v45, %v3960_v49  ;;  %vm10570_vm0 = vmor %vm3992_vm13, %vm3993_vm7 }
 0x501   : > { %5732 = vpow2.f32 %v5044_v32  ;;  %v10499_v17 = vadd.f32 1.0, %v5727_v48  ;;  %v3996_v32 = vand.u32 2147483647, %v10356_v2  ;;  %v3974_v42 = vsub.f32 1.0, %v3973_v56 }
 0x502   : > { %v4019_v13 = vsub.f32 1.0, %v4018_v26  ;;  %v10501_v43 = vpop.eup %5728  ;;  %11531 = vst [vmem:[#allocation20_spill] sm:$0xff] %v10508_v61  ;;  %v3990_v48 = vmul.f32 %v10430_v54, %v3989_v12  ;;  %v3999_v12 = vor.u32 1.1754944e-38, %v3998_v25  ;;  %vm4023_vm3 = vweird.f32 %v10470_v41 }
 0x503   : > { %5734 = vrcp.f32 %v10499_v17  ;;  %v4003_v52 = vmul.f32 %v10501_v43, %v10424_v1  ;;  %vm10531_vm10 = vcmp.eq.f32.partialorder %v3996_v32, 8.507059e+37  ;;  %v3975_v3 = vmul.f32 %v10460_v22, %v3974_v42 }
 0x504   : > { %v4020_v27 = vmul.f32 %v10470_v41, %v4019_v13  ;;  %v3991_v61 = vadd.f32 %v10430_v54, %v3990_v48  ;;  %vm4022_vm11 = vweird.f32 %v10391_v38  ;;  %vm3978_vm15 = vweird.f32 %v10460_v22 }
 0x505   : > { %v4004_v25 = vsub.f32 1.0, %v4003_v52  ;;  %v10563_v52 = vadd.f32 %v10460_v22, %v3975_v3  ;;  %vm4008_vm6 = vweird.f32 %v10501_v43  ;;  %v4026_v13 = vand.u32 2147483647, %v10391_v38  ;;  %vm10588_vm8 = vmor %vm4022_vm11, %vm4023_vm3 }
 0x506   : > { %v10513_v26 = vpop.eup %5730  ;;  %vm10578_vm9 = vcmp.eq.f32.partialorder %v3966_v62, 8.507059e+37  ;;  %v3995_v6 = vsel %vm10570_vm0, %v10430_v54, %v3991_v61  ;;  %v4029_v38 = vor.u32 1.1754944e-38, %v4028_v34  ;;  %v4056_v54 = vand.u32 2147483647, %v10499_v17 }
 0x507   : > { %v4033_v37 = vmul.f32 %v10513_v26, %v10468_v5  ;;  %v5733_v56 = vpop.eup %5732  ;;  %v4005_v62 = vmul.f32 %v10501_v43, %v4004_v25  ;;  %v4114_v34 = vpack.c.bf16 %v10150_v18, %v10029_v0  ;;  %v4000_v25 = vsel %vm10531_vm10, %v3999_v12, %v3995_v6  ;;  %v11608_v0 = vld [vmem:[#allocation21_spill] sm:$0xff] }
 0x508   : > { %v10538_v20 = vadd.f32 1.0, %v5733_v56  ;;  %v4021_v56 = vadd.f32 %v10470_v41, %v4020_v27  ;;  %v4058_v27 = vand.u32 2147483648, %v10499_v17  ;;  %vm4027_vm7 = vcmp.eq.f32.partialorder %v4026_v13, 8.507059e+37 }
 0x509   : > { %v4034_v49 = vsub.f32 1.0, %v4033_v37  ;;  %v5735_v32 = vpop.eup %5734  ;;  %vm4038_vm3 = vweird.f32 %v10513_v26  ;;  %vm4052_vm11 = vweird.f32 %v10499_v17  ;;  %vm4037_vm12 = vweird.f32 %v10468_v5 }
 0x50a   : > { %5736 = vrcp.f32 %v10538_v20  ;;  %v4048_v4 = vmul.f32 %v5735_v32, %v10499_v17  ;;  %v4025_v61 = vsel %vm10588_vm8, %v10470_v41, %v4021_v56  ;;  %vm4053_vm13 = vweird.f32 %v5735_v32 }
 0x50b   : > { %v4035_v48 = vmul.f32 %v10513_v26, %v4034_v49  ;;  %v4030_v41 = vsel %vm4027_vm7, %v4029_v38, %v4025_v61  ;;  %v4041_v58 = vand.u32 2147483647, %v10468_v5  ;;  %v4043_v6 = vand.u32 2147483648, %v10468_v5  ;;  %vm4054_vm10 = vmor %vm4052_vm11, %vm4053_vm13 }
 0x50c   : > { %v4049_v37 = vsub.f32 1.0, %v4048_v4  ;;  %v4059_v12 = vor.u32 1.1754944e-38, %v4058_v27  ;;  %v11542_v17 = vand.u32 2147483647, %v10199_v11  ;;  %vm3917_vm8 = vweird.f32 %v10277_v14  ;;  %vm10629_vm13 = vmor %vm4037_vm12, %vm4038_vm3 }
 0x50d   : > { %v4036_v56 = vadd.f32 %v10513_v26, %v4035_v48  ;;  %vm4057_vm5 = vcmp.eq.f32.partialorder %v4056_v54, 8.507059e+37  ;;  %v4105_v5 = vmul.f32 %v4030_v41, %v10282_v10  ;;  %v4071_v27 = vand.u32 2147483647, %v10538_v20  ;;  %vm10660_vm12 = vmor %vm4007_vm14, %vm4008_vm6 }
 0x50e   : > { %v4050_v7 = vmul.f32 %v5735_v32, %v4049_v37  ;;  %vm10619_vm0 = vcmp.eq.f32.partialorder %v11542_v17, 8.507059e+37  ;;  %v4073_v17 = vand.u32 2147483648, %v10538_v20  ;;  %v11547_v49 = vand.u32 2147483647, %v10140_v23 }
 0x50f   : > { %vm3887_vm7 = vweird.f32 %v10254_v33  ;;  %v4040_v10 = vsel %vm10629_vm13, %v10513_v26, %v4036_v56  ;;  %v11550_v23 = vsel %vm10547_vm4, %v10409_v45, %v10529_v21  ;;  %v4103_v41 = vmul.f32 %v4000_v25, %v10230_v57  ;;  %v11583_v26 = vld [vmem:[#allocation11_spill] sm:$0xff] }
 0x510   : > { %v5737_v4 = vpop.eup %5736  ;;  %v4051_v37 = vadd.f32 %v5735_v32, %v4050_v7  ;;  %v4006_v7 = vadd.f32 %v10501_v43, %v4005_v62  ;;  %vm10637_vm11 = vcmp.eq.f32.partialorder %v11547_v49, 8.507059e+37  ;;  %v3970_v49 = vsel %vm10578_vm9, %v10510_v60, %v11550_v23 }
 0x511   : > { %v4063_v2 = vmul.f32 %v5737_v4, %v10538_v20  ;;  %vm4042_vm3 = vcmp.eq.f32.partialorder %v4041_v58, 8.507059e+37  ;;  %vm11553_vm4 = vweird.f32 %v10367_v9  ;;  %vm4067_vm6 = vweird.f32 %v10538_v20 }
 0x512   : > { %v4055_v48 = vsel %vm4054_vm10, %v5735_v32, %v4051_v37  ;;  %vm10669_vm10 = vmor %vm11553_vm4, %vm3978_vm15  ;;  %v4010_v57 = vsel %vm10660_vm12, %v10501_v43, %v4006_v7  ;;  %v11556_v42 = vand.u32 2147483647, %v10424_v1  ;;  %v11557_v3 = vand.u32 2147483648, %v10424_v1 }
 0x513   : > { %v4064_v38 = vsub.f32 1.0, %v4063_v2  ;;  %v4060_v11 = vsel %vm4057_vm5, %v4059_v12, %v4055_v48  ;;  %vm4068_vm5 = vweird.f32 %v5737_v4  ;;  %v4074_v37 = vor.u32 1.1754944e-38, %v4073_v17 }
 0x514   : > { %v4107_v32 = vmul.f32 %v4060_v11, %v10394_v8  ;;  %v4044_v8 = vor.u32 1.1754944e-38, %v4043_v6  ;;  %vm4012_vm9 = vcmp.eq.f32.partialorder %v11556_v42, 8.507059e+37  ;;  %v4014_v25 = vor.u32 1.1754944e-38, %v11557_v3  ;;  %vm4069_vm15 = vmor %vm4067_vm6, %vm4068_vm5  ;;  %v11573_v11 = vld [vmem:[#allocation33_spill] sm:$0xff] }
 0x515   : > { %v4065_v54 = vmul.f32 %v5737_v4, %v4064_v38  ;;  %v4101_v2 = vmul.f32 %v3970_v49, %v10202_v36  ;;  %v3980_v43 = vsel %vm10669_vm10, %v10460_v22, %v10563_v52  ;;  %vm4072_vm14 = vcmp.eq.f32.partialorder %v4071_v27, 8.507059e+37  ;;  %v11574_v27 = vld [vmem:[#allocation19_spill] sm:$0xff] }
 0x516   : > { %v4124_v60 = vpack.c.bf16 %v4107_v32, %v4105_v5  ;;  %v4045_v56 = vsel %vm4042_vm3, %v4044_v8, %v4040_v10  ;;  %vm11558_vm12 = vweird.f32 %v10403_v35  ;;  %vm11559_vm4 = vweird.f32 %v10336_v46  ;;  %v11565_v5 = vld [vmem:[#allocation18_spill] sm:$0xff]  ;;  %v11582_v49 = vld [vmem:[#allocation15_spill] sm:$0xff] }
 0x517   : > { %v4066_v21 = vadd.f32 %v5737_v4, %v4065_v54  ;;  %vm10691_vm13 = vmor %vm11559_vm4, %vm11558_vm12  ;;  %v11562_v1 = vand.u32 2147483647, %v10367_v9  ;;  %v11563_v36 = vand.u32 2147483648, %v10367_v9  ;;  %v4015_v12 = vsel %vm4012_vm9, %v4014_v25, %v4010_v57  ;;  %v11576_v10 = vld [vmem:[#allocation38_spill] sm:$0xff]  ;;  %v11584_v8 = vld [vmem:[#allocation39_spill] sm:$0xff] }
 0x518   : > { %4132 = vmatpush.bf16.msra.mxu0 %v4124_v60  ;;  %v3950_v22 = vsel %vm10691_vm13, %v10403_v35, %v10526_v15  ;;  %v4106_v52 = vmul.f32 %v4045_v56, %v10339_v24  ;;  %v4122_v48 = vpack.c.bf16 %v4103_v41, %v4101_v2  ;;  %v11564_v38 = vsel %vm10419_vm2, %v10293_v51, %v10400_v40  ;;  %v11571_v40 = vld [vmem:[#allocation34_spill] sm:$0xff]  ;;  %v11585_v57 = vld [vmem:[#allocation20_spill] sm:$0xff]  ;;  %v11592_v25 = vld [vmem:[#allocation17_spill] sm:$0xff] }
 0x519   : > { %v4070_v58 = vsel %vm4069_vm15, %v5737_v4, %v4066_v21  ;;  %vm3982_vm5 = vcmp.eq.f32.partialorder %v11562_v1, 8.507059e+37  ;;  %v3984_v6 = vor.u32 1.1754944e-38, %v11563_v36  ;;  %v3880_v9 = vsel %vm10619_vm0, %v10343_v59, %v11564_v38  ;;  %v11599_v38 = vld [vmem:[#allocation29_spill] sm:$0xff] }
 0x51a   : > { %v4075_v7 = vsel %vm4072_vm14, %v4074_v37, %v4070_v58  ;;  %v4097_v61 = vmul.f32 %v10480_v16, %v11565_v5  ;;  %vm11566_vm10 = vweird.f32 %v10341_v44  ;;  %v11569_v24 = vand.u32 2147483648, %v10336_v46  ;;  %v11593_v37 = vld [vmem:[#allocation9_spill] sm:$0xff] }
 0x51b   : > { %v4108_v4 = vmul.f32 %v4075_v7, %v10428_v53  ;;  %vm10719_vm3 = vmor %vm3917_vm8, %vm11566_vm10  ;;  %v3985_v55 = vsel %vm3982_vm5, %v3984_v6, %v3980_v43  ;;  %v11570_v59 = vand.u32 2147483647, %v10336_v46  ;;  %v4104_v53 = vmul.f32 %v4015_v12, %v11571_v40  ;;  %v11594_v43 = vld [vmem:[#allocation36_spill] sm:$0xff]  ;;  %v11613_v40 = vld [vmem:[#allocation10_spill] sm:$0xff] }
 0x51c   : > { %v3954_v35 = vor.u32 1.1754944e-38, %v11569_v24  ;;  %v3920_v51 = vsel %vm10719_vm3, %v10341_v44, %v10483_v28  ;;  %4133 = vmatpush.bf16.msra.mxu0 %v4122_v48  ;;  %v11575_v17 = vsel %vm10373_vm1, %v11573_v11, %v11574_v27  ;;  %vm11577_vm0 = vweird.f32 %v10329_v19  ;;  %v11603_v24 = vld [vmem:[#allocation35_spill] sm:$0xff] }
 0x51d   : > { %vm3952_vm2 = vcmp.eq.f32.partialorder %v11570_v59, 8.507059e+37  ;;  %v4125_v16 = vpack.c.bf16 %v4108_v4, %v4106_v52  ;;  %v3850_v32 = vsel %vm10637_vm11, %v11576_v10, %v11575_v17  ;;  %vm10744_vm8 = vmor %vm3887_vm7, %vm11577_vm0  ;;  %v11580_v44 = vand.u32 2147483647, %v10277_v14  ;;  %v11598_v4 = vld [vmem:[#allocation30_spill] sm:$0xff] }
 0x51e   : > { %v11581_v28 = vand.u32 2147483648, %v10277_v14  ;;  %v3955_v23 = vsel %vm3952_vm2, %v3954_v35, %v3950_v22  ;;  %v4095_v41 = vmul.f32 %v3880_v9, %v11582_v49  ;;  %v3890_v62 = vsel %vm10744_vm8, %v10329_v19, %v11583_v26  ;;  %v11604_v35 = vld [vmem:[#allocation37_spill] sm:$0xff] }
 0x51f   : > { %vm3922_vm13 = vcmp.eq.f32.partialorder %v11580_v44, 8.507059e+37  ;;  %v4102_v45 = vmul.f32 %v3985_v55, %v11584_v8  ;;  %4145 = vmatpush.bf16.msra.mxu1 %v4125_v16  ;;  %v4120_v60 = vpack.c.bf16 %v11585_v57, %v4097_v61  ;;  %vm11586_vm1 = vweird.f32 %v10284_v63 }
 0x520   : > { %v3924_v54 = vor.u32 1.1754944e-38, %v11581_v28  ;;  %vm11587_vm7 = vweird.f32 %v10181_v39  ;;  %v11590_v21 = vand.u32 2147483647, %v10254_v33  ;;  %v11591_v42 = vand.u32 2147483648, %v10254_v33  ;;  %v11597_v33 = vld [vmem:[#allocation32_spill] sm:$0xff] }
 0x521   : > { %vm10763_vm11 = vmor %vm11587_vm7, %vm11586_vm1  ;;  %v4093_v56 = vmul.f32 %v3850_v32, %v11592_v25  ;;  %v4100_v58 = vmul.f32 %v3955_v23, %v11594_v43  ;;  %v4123_v20 = vpack.c.bf16 %v4104_v53, %v4102_v45  ;;  %4134 = vmatpush.bf16.msra.mxu0 %v4120_v60  ;;  %v11595_v1 = vand.u32 2147483648, %v10181_v39  ;;  %v11614_v53 = vld [vmem:[#allocation31_spill] sm:$0xff] }
 0x522   : > { %vm3892_vm6 = vcmp.eq.f32.partialorder %v11590_v21, 8.507059e+37  ;;  %v3894_v3 = vor.u32 1.1754944e-38, %v11591_v42  ;;  %v3925_v19 = vsel %vm3922_vm13, %v3924_v54, %v3920_v51  ;;  %v3860_v2 = vsel %vm10763_vm11, %v10284_v63, %v11593_v37  ;;  %v11611_v51 = vld [vmem:[#allocation22_spill] sm:$0xff] }
 0x523   : > { %v3864_v36 = vor.u32 1.1754944e-38, %v11595_v1  ;;  %v11596_v12 = vand.u32 2147483647, %v10181_v39  ;;  %v4098_v7 = vmul.f32 %v3925_v19, %v11597_v33  ;;  %4146 = vmatpush.bf16.msra.mxu1 %v4123_v20  ;;  %v4118_v22 = vpack.c.bf16 %v4095_v41, %v4093_v56  ;;  %v11601_v39 = vld [vmem:[#allocation24_spill] sm:$0xff] }
 0x524   : > { %v3895_v6 = vsel %vm3892_vm6, %v3894_v3, %v3890_v62  ;;  %v11600_v61 = vpack.c.bf16 %v10315_v29, %v10290_v50  ;;  %v11602_v15 = vpack.c.bf16 %v10318_v30, %v11601_v39  ;;  %v11605_v55 = vpack.c.bf16 %v11603_v24, %v11604_v35  ;;  %v11607_v29 = vld [vmem:[#allocation27_spill] sm:$0xff]  ;;  %v4109_v30 = vld [vmem:[%s357_s20] sm:$0xf]  ;;  %s5752_s20 = sshra.s32 %s4480_s17, 4  ;;  %s5753_s20 = int_to_ptr.hbm [resolvable:$true] %s5752_s20 }
 0x525   : > { %vm3862_vm9 = vcmp.eq.f32.partialorder %v11596_v12, 8.507059e+37  ;;  %v4096_v48 = vmul.f32 %v3895_v6, %v11598_v4  ;;  %v4121_v63 = vpack.c.bf16 %v4100_v58, %v4098_v7  ;;  %4135 = vmatpush.bf16.msra.mxu0 %v4118_v22  ;;  %v11606_v50 = vpack.c.bf16 %v10287_v31, %v10143_v47  ;;  %v4130_v47 = vpop.permute.xlu1 %4129  ;;  %s5754_s29 = scalar_lea.hbm %s5753_s20, 8  ;;  %p5759_p1 = scmp.lt.s32.totalorder %s5753_s20, %s10857_s7 }
 0x526   : > { %v3865_v52 = vsel %vm3862_vm9, %v3864_v36, %v3860_v2  ;;  %v11609_v18 = vpack.c.bf16 %v11607_v29, %v11608_v0  ;;  %v11615_v16 = vpack.c.bf16 %v11613_v40, %v11614_v53  ;;  %v5820_v32 = vmov 0.0   ;;  %p5755_p12 = scmp.ne.s32.totalorder %s5753_s20, %s5754_s29  ;;  %p5760_p2 = scmp.lt.s32.totalorder %s5758_s16, %s5754_s29 }
 0x527   : > { %v4094_v9 = vmul.f32 %v3865_v52, %v11599_v38  ;;  %4147 = vmatpush.bf16.msra.mxu1 %v4121_v63  ;;  %366 = vst [vmem:[%s331_s22] sm:$0xff] %v5820_v32 }
 0x528   : > { %p5756_p13 = pnand %p5755_p12, %p5904_p4  ;;  %p5761_p3 = por %p5760_p2, %p5759_p1 }
 0x529   : > { %v4119_v5 = vpack.c.bf16 %v4096_v48, %v4094_v9  ;;  %4136 = vmatpush.bf16.msra.mxu0 %v11600_v61 }
 0x52a   : > { %p5757_p0 = pneg %p5756_p13 }
 0x52b   : > { %4148 = vmatpush.bf16.msra.mxu1 %v4119_v5 }
 0x52c   : > { %p5762_p5 = pnand %p5761_p3, %p5757_p0 }
 0x52d   : > { %4137 = vmatpush.bf16.msra.mxu0 %v4114_v34  ;;  %v11610_v34 = vld [vmem:[#allocation28_spill] sm:$0xff] }
 0x52e   : > { %v11612_v59 = vpack.c.bf16 %v11610_v34, %v11611_v51  ;;  %v4461_v28 = vld [vmem:[%s4460_s24] sm:$0xff] }
 0x52f   : > { %4149 = vmatpush.bf16.msra.mxu1 %v11602_v15 }
 0x531   : > { %4138 = vmatpush.bf16.msra.mxu0 %v11605_v55 }
 0x533   : > { %4150 = vmatpush.bf16.msra.mxu1 %v11606_v50 }
 0x535   : > { %4139 = vmatpush.bf16.msra.mxu0 %v11609_v18 }
 0x537   : > { %4151 = vmatpush.bf16.msra.mxu1 %v11612_v59 }
 0x538   : > { %4140 = vmatmul.bf16.vlgmr.msra.gmra.mxu0 %v4109_v30 }
 0x53b   : > { %4152 = vmatpush.bf16.msra.mxu1 %v11615_v16 }
 0x53e   : > { %4153 = vmatmul.bf16.vlgmr.msra.gmra.mxu1 %v4109_v30 }
 0x5b5   : > { %v4141_v31 = vpop.f32.mrf.mxu0 }
 0x5b6   : > { %v4142_v13 = vadd.f32 %v4141_v31, %v4130_v47 }
 0x5b8   : > { %4435 = vmatmul.f32.vlgmr.msra.gmra.mxu2 %v4142_v13 }
 0x5bb   : > { %v4154_v11 = vpop.f32.mrf.mxu1 }
 0x5bc   : > { %v4155_v27 = vadd.f32 %v4154_v11, %v4130_v47 }
 0x5bd   : > { %v4143_v17 = vpop.f32.mrf.mxu0 }
 0x5be   : > { %4455 = vmatmul.f32.vlgmr.msra.gmra.mxu3 %v4155_v27 }
 0x5c3   : > { %v4156_v10 = vpop.f32.mrf.mxu1 }
 0x63b   : > { %v4436_v46 = vpop.f32.mrf.mxu2 }
 0x641   : > { %v4456_v44 = vpop.f32.mrf.mxu3 }
 0x642   : > { %v4457_v54 = vadd.f32 %v4456_v44, %v4436_v46 }
 0x644   : > { %v4462_v23 = vadd.f32 %v4461_v28, %v4457_v54 }
 0x646   : > { %4463 = vst [vmem:[%s4460_s24] sm:$0xff] %v4462_v23 }
 0x647   : > { %5765 = shalt.err (!%p5762_p5)
}
 0x648   : > { %5165 = dma.vmem_to_hbm [thread:$0]  (%p5904_p4), %s4478_s25, 128, %s4480_s17, %s4465_s19  }
 0x649 PF: > { %p5171_p6 = scmp.ge.s32.totalorder %s5816_s8, 2  ;;  %s4491_s18 = sand.u32 1, %s5796_s26  }
 0x64a   : > { %s4492_s24 = scalar_lea.sflag [#allocation5], %s4491_s18 }
 0x64b   : > { %p5168_p7 = pnand %p5171_p6, %p5911_p8 }
 0x64d   : > { %p5169_p9 = pneg %p5168_p7 }
 0x64f   : > { %5791 = dma.done.wait (%p5169_p9), %s4492_s24, 128  }
 0x650   : > { %5793 = vsyncadd (%p5169_p9), %s4492_s24, 4294967168  ;;  %s21_s8 = sadd.s32 1, %s5816_s8   ;;  %s11616_s26 = smov %s5800_s27 }
 0x651   : > { %p18_p10 = scmp.ge.s32.totalorder %s21_s8, 4   ;;  %s11617_s27 = smov %s5804_s28 }
 0x652   : > { %s11618_s28 = smov %s5917_s15  ;;  %s11619_s29 = smov %s5812_s30 }
 0x653   : > { %s11620_s30 = smov %s11622_s10  ;;  %20 = sbr.rel (!%p18_p10) target bundleno = 6 (0x6), region = 105 }
 0x658   :  { %4498 = vsyncpa [#allocation5], 1 }
 0x659   :  { %4500 = vsyncpa [#allocation5 + $0x1], 1 }

</bundles_post_ra>
